<compile_context>
chip_gen: v7x
topology: tpu7x:2x2x1
jax: 0.10.0
libtpu: 0.0.40
codegen_flags: <defaults>
</compile_context>

<pallas_src>
import functools

import numpy as np

import jax
import jax.numpy as jnp
from jax.experimental import pallas as pl
from jax.experimental.pallas import tpu as pltpu


# -----------------------------------------------------------------------------
# Fused Pallas kernel: SelfAttentionEmbed (over chunk_len) + LayerNorm +
# chunk max-pool.  Each grid step processes `block_batches` batch elements.
#   x_ref      : [L, G, H]   zero-padded chunk features (G = Bblk * N rows,
#                             ordered batch-major / chunk-minor; position l is
#                             the leading axis so per-l slices are contiguous)
#   w_ref      : [H, H]      Dense weight
#   b_ref      : [1, H]      Dense bias + extra `bias` parameter (pre-summed)
#   q_ref      : [H, 1]      query vector (column, for the MXU matvec)
#   g_ref/beta : [1, H]      LayerNorm weight / bias
#   chunk_ref  : [G, H]      per-chunk embeddings
#   pooled_ref : [Bblk, H]   max over the chunk axis
# -----------------------------------------------------------------------------
def _chunk_attn_maxpool_kernel(x_ref, w_ref, b_ref, q_ref, g_ref, beta_ref,
                               chunk_ref, pooled_ref, *,
                               block_batches, num_chunks, chunk_len):
    h_dim = w_ref.shape[0]
    g_rows = block_batches * num_chunks          # rows per chunk position
    m_rows = chunk_len * g_rows                  # total MXU rows this step

    # [L, G, H] -> [L*G, H]; G is a multiple of 8, so this is a pure relabel.
    x2 = x_ref[...].reshape(m_rows, h_dim)

    # Dense + combined bias + tanh (MXU + EUP), fused epilogue in VMEM.
    h2 = jnp.tanh(jnp.dot(x2, w_ref[...], preferred_element_type=jnp.float32)
                  + b_ref[...])                                   # [L*G, H]

    # Attention score on the MXU: [L*G, H] @ [H, 1] matvec.
    s = jnp.dot(h2, q_ref[...], preferred_element_type=jnp.float32)  # [L*G, 1]

    # Softmax over chunk_len, unrolled over the static (tiny) L with
    # 128-row-aligned static slices.  NOTE: like the PyTorch reference, padded
    # positions are NOT masked in the softmax -- they hold x == 0, so they only
    # dilute the weights exactly as the reference does.
    s_l = [s[l * g_rows:(l + 1) * g_rows] for l in range(chunk_len)]  # [G, 1]
    m = s_l[0]
    for l in range(1, chunk_len):
        m = jnp.maximum(m, s_l[l])
    e_l = [jnp.exp(sl - m) for sl in s_l]
    denom = e_l[0]
    for l in range(1, chunk_len):
        denom = denom + e_l[l]
    inv = pl.reciprocal(denom, approx=True)          # EUP slot, not VPU divide

    # Attention-weighted sum over the chunk positions.
    out = x2[0:g_rows] * (e_l[0] * inv)
    for l in range(1, chunk_len):
        out = out + x2[l * g_rows:(l + 1) * g_rows] * (e_l[l] * inv)  # [G, H]

    # TF-style LayerNorm (biased variance, eps inside sqrt); dropout = identity.
    u = jnp.mean(out, axis=-1, keepdims=True)
    d = out - u
    var = jnp.mean(d * d, axis=-1, keepdims=True)
    y = g_ref[...] * (d * jax.lax.rsqrt(var + 1e-12)) + beta_ref[...]  # [G, H]

    chunk_ref[...] = y
    # Fused max-pool over the chunk axis (F.max_pool1d(kernel_size=N)).
    pooled_ref[...] = jnp.max(
        y.reshape(block_batches, num_chunks, h_dim), axis=1)       # [Bblk, H]


def chunk_attention_maxpool(feat, params, *, batch, num_chunks, chunk_len,
                            block_batches=None):
    """feat: [L, B*N, H] zero-padded chunk features -> ([B, N, H], [B, H])."""
    L, BN, H = feat.shape
    B, N = batch, num_chunks
    assert BN == B * N and L == chunk_len

    if block_batches is None:
        # ~512-2048 MXU rows per step; multiple of 8 for sublane-aligned output
        # blocks; keep >= 2 grid steps when possible (v7x has 2 TensorCores).
        bb = min(max(1, 2048 // max(N * L, 1)), max(1, pl.cdiv(B, 2)))
        bb = max(8, (bb // 8) * 8)
    else:
        bb = block_batches
    b_pad = pl.cdiv(B, bb) * bb
    if b_pad != B:                                  # pad batch; sliced off below
        feat = jnp.pad(feat, ((0, 0), (0, (b_pad - B) * N), (0, 0)))
    grid = (b_pad // bb,)
    g_rows = bb * N

    bsum = (params["dense_b"] + params["bias"]).reshape(1, H).astype(jnp.float32)
    q_col = params["query"].reshape(H, 1).astype(jnp.float32)
    gamma = params["ln_g"].reshape(1, H).astype(jnp.float32)
    beta = params["ln_b"].reshape(1, H).astype(jnp.float32)

    kernel = functools.partial(_chunk_attn_maxpool_kernel,
                               block_batches=bb, num_chunks=N, chunk_len=L)

    m_total = B * N * L
    cost = pl.CostEstimate(
        flops=2 * m_total * H * H + 2 * m_total * H + 6 * m_total * H,
        transcendentals=m_total * H + m_total + B * N,
        bytes_accessed=4 * (m_total * H + B * N * H + B * H + H * H + 4 * H))

    # Explicit VMEM budget: double-buffered x block + outputs + weights, with
    # generous margin, capped well below v7x's 64 MiB physical VMEM (and above
    # v5e's 16 MiB scoped default only if actually needed).
    block_bytes = 4 * (2 * L * g_rows * H          # double-buffered x
                       + 2 * g_rows * H            # chunk output
                       + 2 * bb * H                # pooled output
                       + H * H + 4 * H)            # weights / vectors
    vmem_limit = int(min(48 << 20, max(16 << 20, 4 * block_bytes)))

    chunk, pooled = pl.pallas_call(
        kernel,
        out_shape=(jax.ShapeDtypeStruct((b_pad * N, H), jnp.float32),
                   jax.ShapeDtypeStruct((b_pad, H), jnp.float32)),
        grid=grid,
        in_specs=[pl.BlockSpec((L, g_rows, H), lambda i: (0, i, 0)),
                  pl.BlockSpec((H, H), lambda i: (0, 0)),
                  pl.BlockSpec((1, H), lambda i: (0, 0)),
                  pl.BlockSpec((H, 1), lambda i: (0, 0)),
                  pl.BlockSpec((1, H), lambda i: (0, 0)),
                  pl.BlockSpec((1, H), lambda i: (0, 0))],
        out_specs=(pl.BlockSpec((g_rows, H), lambda i: (i, 0)),
                   pl.BlockSpec((bb, H), lambda i: (i, 0))),
        compiler_params=pltpu.CompilerParams(
            dimension_semantics=("parallel",),
            vmem_limit_bytes=vmem_limit),
        cost_estimate=cost,
    )(feat, params["dense_w"].astype(jnp.float32), bsum, q_col, gamma, beta)

    chunk = chunk[:B * N].reshape(B, N, H)
    pooled = pooled[:B]
    return chunk, pooled


# -----------------------------------------------------------------------------
# Chunk gather: vectorized equivalent of the nested Python-loop scatter.
# It emits feat directly in the kernel's [L, B*N, H] layout (no extra
# transpose pass in HBM).
# TODO(synk): fuse this data-dependent gather into the kernel (scalar-prefetch
# the offsets/lengths + per-chunk DMA from an pl.ANY token buffer) to remove
# the feat write+read HBM round-trip; deferred for lowering-risk reasons.
# -----------------------------------------------------------------------------
def build_chunk_features(tok_feat, chunk_lens, max_chunk_number, max_chunk_len):
    B, S, H = tok_feat.shape
    N, L = max_chunk_number, max_chunk_len
    lens = chunk_lens.astype(jnp.int32)                       # [B, N]
    offsets = jnp.cumsum(lens, axis=1) - lens                 # exclusive cumsum
    pos = jnp.arange(L, dtype=jnp.int32)                      # [L]
    idx = offsets[None, :, :] + pos[:, None, None]            # [L, B, N]
    valid = pos[:, None, None] < jnp.minimum(lens, L)[None, :, :]
    idx = jnp.clip(idx, 0, S - 1)
    bidx = jnp.broadcast_to(jnp.arange(B, dtype=jnp.int32)[None, :, None],
                            (L, B, N))
    gathered = tok_feat[bidx, idx]                            # [L, B, N, H]
    feat = jnp.where(valid[..., None], gathered, 0.0)
    return feat.reshape(L, B * N, H).astype(jnp.float32)


# -----------------------------------------------------------------------------
# Module forward
# -----------------------------------------------------------------------------
@functools.partial(jax.jit, static_argnames=("max_chunk_number",
                                             "max_chunk_len", "block_batches"))
def chunk_level_feature_encoder_attention_maxpool(token_level_features,
                                                  chunk_lens, params,
                                                  max_chunk_number,
                                                  max_chunk_len,
                                                  block_batches=None):
    B = token_level_features.shape[0]
    feat = build_chunk_features(token_level_features, chunk_lens,
                                max_chunk_number, max_chunk_len)
    chunk_feature, sentence_embedding = chunk_attention_maxpool(
        feat, params, batch=B, num_chunks=max_chunk_number,
        chunk_len=max_chunk_len, block_batches=block_batches)
    return chunk_feature, sentence_embedding


# -----------------------------------------------------------------------------
# Reference (literal translation of the PyTorch forward, including the
# nested-loop scatter) for correctness checking.
# -----------------------------------------------------------------------------
def reference_forward(token_level_features, chunk_lens, params,
                      max_chunk_number, max_chunk_len):
    tok = np.asarray(token_level_features)
    lens = np.asarray(chunk_lens)
    B, S, H = tok.shape
    N, L = max_chunk_number, max_chunk_len
    feat = np.zeros((B, N, L, H), np.float32)
    for b in range(B):
        wp = 0
        for n in range(N):
            ln = int(lens[b, n])
            t = min(ln, L)
            for i in range(t):
                feat[b, n, i] = tok[b, wp + i]
            wp += ln
    x = jnp.asarray(feat).reshape(B * N, L, H)
    h = jnp.tanh(jnp.einsum("mlh,hk->mlk", x, params["dense_w"],
                            precision="highest")
                 + params["dense_b"] + params["bias"])
    s = jnp.einsum("mlh,h->ml", h, params["query"], precision="highest")
    a = jax.nn.softmax(s, axis=-1)
    out = jnp.sum(x * a[:, :, None], axis=1)
    u = out.mean(-1, keepdims=True)
    var = ((out - u) ** 2).mean(-1, keepdims=True)
    y = params["ln_g"] * ((out - u) * jax.lax.rsqrt(var + 1e-12)) + params["ln_b"]
    chunk = y.reshape(B, N, H)
    pooled = jnp.max(chunk, axis=1)
    return chunk, pooled


# -----------------------------------------------------------------------------
if __name__ == "__main__":
    # Lane-dense hidden size (H = 128); batch large enough that the blocked
    # grid has >= 2 steps of 512 MXU rows each (Bblk=16 * N=8 * L=4).
    B, S, H = 32, 64, 128
    MAX_CHUNK_NUMBER, MAX_CHUNK_LEN = 8, 4

    key = jax.random.PRNGKey(0)
    k_feat, k_w, k_b, k_bias, k_q, k_len, k_g, k_beta = jax.random.split(key, 8)

    params = dict(
        dense_w=jax.random.normal(k_w, (H, H), jnp.float32) * 0.05,
        dense_b=jax.random.normal(k_b, (H,), jnp.float32) * 0.02,
        bias=jax.random.normal(k_bias, (H,), jnp.float32) * 0.02,
        query=jax.random.normal(k_q, (H,), jnp.float32),
        ln_g=1.0 + 0.1 * jax.random.normal(k_g, (H,), jnp.float32),
        ln_b=0.05 * jax.random.normal(k_beta, (H,), jnp.float32),
    )

    token_level_features = jax.random.normal(k_feat, (B, S, H), jnp.float32)
    # Per-batch chunk lengths: some exceed max_chunk_len (truncated), some 0.
    chunk_lens = jax.random.randint(k_len, (B, MAX_CHUNK_NUMBER), 0, 6,
                                    dtype=jnp.int32)

    chunk_feature, sent_embed = chunk_level_feature_encoder_attention_maxpool(
        token_level_features, chunk_lens, params,
        max_chunk_number=MAX_CHUNK_NUMBER, max_chunk_len=MAX_CHUNK_LEN)
    chunk_feature = jax.block_until_ready(chunk_feature)
    sent_embed = jax.block_until_ready(sent_embed)

    assert chunk_feature.shape == (B, MAX_CHUNK_NUMBER, H), chunk_feature.shape
    assert sent_embed.shape == (B, H), sent_embed.shape

    ref_chunk, ref_sent = reference_forward(
        token_level_features, chunk_lens, params,
        MAX_CHUNK_NUMBER, MAX_CHUNK_LEN)
    # 2e-3 tolerance: reference matmuls run at precision='highest' while the
    # kernel uses the native MXU f32 path + EUP approx reciprocal (whose
    # uniform per-row scale error cancels in LayerNorm).
    err_c = float(jnp.max(jnp.abs(chunk_feature - ref_chunk)))
    err_s = float(jnp.max(jnp.abs(sent_embed - ref_sent)))
    assert jnp.allclose(chunk_feature, ref_chunk, atol=2e-3, rtol=2e-3), (
        "chunk mismatch, max abs err = " + str(err_c))
    assert jnp.allclose(sent_embed, ref_sent, atol=2e-3, rtol=2e-3), (
        "pooled mismatch, max abs err = " + str(err_s))

    print("KERNEL_OK")
</pallas_src>

<mosaic_0001>
module attributes {stable_mosaic.version = 11 : i64} {
  func.func @_chunk_attn_maxpool_kernel(%arg0: i32, %arg1: memref<4x128x128xf32, #tpu.memory_space<vmem>>, %arg2: memref<128x128xf32, #tpu.memory_space<vmem>>, %arg3: memref<1x128xf32, #tpu.memory_space<vmem>>, %arg4: memref<128x1xf32, #tpu.memory_space<vmem>>, %arg5: memref<1x128xf32, #tpu.memory_space<vmem>>, %arg6: memref<1x128xf32, #tpu.memory_space<vmem>>, %arg7: memref<128x128xf32, #tpu.memory_space<vmem>>, %arg8: memref<16x128xf32, #tpu.memory_space<vmem>>) attributes {dimension_semantics = [#tpu.dimension_semantics<parallel>], iteration_bounds = array<i64: 2>, scalar_prefetch = 0 : i64, scratch_operands = 0 : i64, tpu.core_type = #tpu.core_type<tc>, window_params = [{transform_indices = @transform_0, window_bounds = array<i64: 4, 128, 128>}, {pipeline_mode = #tpu.pipeline_mode<synchronous>, transform_indices = @transform_1, window_bounds = array<i64: 128, 128>}, {pipeline_mode = #tpu.pipeline_mode<synchronous>, transform_indices = @transform_2, window_bounds = array<i64: 1, 128>}, {pipeline_mode = #tpu.pipeline_mode<synchronous>, transform_indices = @transform_3, window_bounds = array<i64: 128, 1>}, {pipeline_mode = #tpu.pipeline_mode<synchronous>, transform_indices = @transform_4, window_bounds = array<i64: 1, 128>}, {pipeline_mode = #tpu.pipeline_mode<synchronous>, transform_indices = @transform_5, window_bounds = array<i64: 1, 128>}, {transform_indices = @transform_6, window_bounds = array<i64: 128, 128>}, {transform_indices = @transform_7, window_bounds = array<i64: 16, 128>}]} {
    %c0 = arith.constant 0 : index
    %c0_0 = arith.constant 0 : index
    %c0_1 = arith.constant 0 : index
    %0 = vector.load %arg1[%c0, %c0_0, %c0_1] : memref<4x128x128xf32, #tpu.memory_space<vmem>>, vector<4x128x128xf32>
    %1 = vector.shape_cast %0 : vector<4x128x128xf32> to vector<512x128xf32>
    %c0_2 = arith.constant 0 : index
    %c0_3 = arith.constant 0 : index
    %2 = vector.load %arg2[%c0_2, %c0_3] : memref<128x128xf32, #tpu.memory_space<vmem>>, vector<128x128xf32>
    %cst = arith.constant dense<0.000000e+00> : vector<512x128xf32>
    %3 = tpu.matmul %1, %2, %cst {dimension_numbers = #tpu.dot_dimension_numbers<[1], [0], [0], [1], [0, 0, 1, 1], [], []>} : vector<512x128xf32>, vector<128x128xf32>, vector<512x128xf32> -> vector<512x128xf32>
    %c0_4 = arith.constant 0 : index
    %c0_5 = arith.constant 0 : index
    %4 = vector.load %arg3[%c0_4, %c0_5] : memref<1x128xf32, #tpu.memory_space<vmem>>, vector<1x128xf32>
    %5 = vector.broadcast %4 : vector<1x128xf32> to vector<512x128xf32>
    %6 = arith.addf %3, %5 : vector<512x128xf32>
    %7 = math.tanh %6 : vector<512x128xf32>
    %c0_6 = arith.constant 0 : index
    %c0_7 = arith.constant 0 : index
    %8 = vector.load %arg4[%c0_6, %c0_7] : memref<128x1xf32, #tpu.memory_space<vmem>>, vector<128x1xf32>
    %cst_8 = arith.constant dense<0.000000e+00> : vector<512x1xf32>
    %9 = tpu.matmul %7, %8, %cst_8 {dimension_numbers = #tpu.dot_dimension_numbers<[1], [0], [0], [1], [0, 0, 1, 1], [], []>} : vector<512x128xf32>, vector<128x1xf32>, vector<512x1xf32> -> vector<512x1xf32>
    %10 = vector.extract_strided_slice %9 {offsets = [0, 0], sizes = [128, 1], strides = [1, 1]} : vector<512x1xf32> to vector<128x1xf32>
    %11 = vector.extract_strided_slice %9 {offsets = [128, 0], sizes = [128, 1], strides = [1, 1]} : vector<512x1xf32> to vector<128x1xf32>
    %12 = vector.extract_strided_slice %9 {offsets = [256, 0], sizes = [128, 1], strides = [1, 1]} : vector<512x1xf32> to vector<128x1xf32>
    %13 = vector.extract_strided_slice %9 {offsets = [384, 0], sizes = [128, 1], strides = [1, 1]} : vector<512x1xf32> to vector<128x1xf32>
    %14 = arith.maximumf %10, %11 : vector<128x1xf32>
    %15 = arith.maximumf %14, %12 : vector<128x1xf32>
    %16 = arith.maximumf %15, %13 : vector<128x1xf32>
    %17 = arith.subf %10, %16 : vector<128x1xf32>
    %18 = math.exp %17 : vector<128x1xf32>
    %19 = arith.subf %11, %16 : vector<128x1xf32>
    %20 = math.exp %19 : vector<128x1xf32>
    %21 = arith.subf %12, %16 : vector<128x1xf32>
    %22 = math.exp %21 : vector<128x1xf32>
    %23 = arith.subf %13, %16 : vector<128x1xf32>
    %24 = math.exp %23 : vector<128x1xf32>
    %25 = arith.addf %18, %20 : vector<128x1xf32>
    %26 = arith.addf %25, %22 : vector<128x1xf32>
    %27 = arith.addf %26, %24 : vector<128x1xf32>
    %28 = tpu.reciprocal %27 {approx = true} : vector<128x1xf32> -> vector<128x1xf32>
    %29 = vector.extract_strided_slice %1 {offsets = [0, 0], sizes = [128, 128], strides = [1, 1]} : vector<512x128xf32> to vector<128x128xf32>
    %30 = arith.mulf %18, %28 : vector<128x1xf32>
    %31 = vector.broadcast %30 : vector<128x1xf32> to vector<128x128xf32>
    %32 = arith.mulf %29, %31 : vector<128x128xf32>
    %33 = vector.extract_strided_slice %1 {offsets = [128, 0], sizes = [128, 128], strides = [1, 1]} : vector<512x128xf32> to vector<128x128xf32>
    %34 = arith.mulf %20, %28 : vector<128x1xf32>
    %35 = vector.broadcast %34 : vector<128x1xf32> to vector<128x128xf32>
    %36 = arith.mulf %33, %35 : vector<128x128xf32>
    %37 = arith.addf %32, %36 : vector<128x128xf32>
    %38 = vector.extract_strided_slice %1 {offsets = [256, 0], sizes = [128, 128], strides = [1, 1]} : vector<512x128xf32> to vector<128x128xf32>
    %39 = arith.mulf %22, %28 : vector<128x1xf32>
    %40 = vector.broadcast %39 : vector<128x1xf32> to vector<128x128xf32>
    %41 = arith.mulf %38, %40 : vector<128x128xf32>
    %42 = arith.addf %37, %41 : vector<128x128xf32>
    %43 = vector.extract_strided_slice %1 {offsets = [384, 0], sizes = [128, 128], strides = [1, 1]} : vector<512x128xf32> to vector<128x128xf32>
    %44 = arith.mulf %24, %28 : vector<128x1xf32>
    %45 = vector.broadcast %44 : vector<128x1xf32> to vector<128x128xf32>
    %46 = arith.mulf %43, %45 : vector<128x128xf32>
    %47 = arith.addf %42, %46 : vector<128x128xf32>
    %cst_9 = arith.constant dense<0.000000e+00> : vector<128xf32>
    %48 = vector.multi_reduction <add>, %47, %cst_9 [1] : vector<128x128xf32> to vector<128xf32>
    %49 = vector.shape_cast %48 : vector<128xf32> to vector<128x1xf32>
    %cst_10 = arith.constant 1.280000e+02 : f32
    %50 = vector.broadcast %cst_10 : f32 to vector<128x1xf32>
    %51 = arith.divf %49, %50 : vector<128x1xf32>
    %52 = vector.broadcast %51 : vector<128x1xf32> to vector<128x128xf32>
    %53 = arith.subf %47, %52 : vector<128x128xf32>
    %54 = arith.mulf %53, %53 : vector<128x128xf32>
    %cst_11 = arith.constant dense<0.000000e+00> : vector<128xf32>
    %55 = vector.multi_reduction <add>, %54, %cst_11 [1] : vector<128x128xf32> to vector<128xf32>
    %56 = vector.shape_cast %55 : vector<128xf32> to vector<128x1xf32>
    %cst_12 = arith.constant 1.280000e+02 : f32
    %57 = vector.broadcast %cst_12 : f32 to vector<128x1xf32>
    %58 = arith.divf %56, %57 : vector<128x1xf32>
    %c0_13 = arith.constant 0 : index
    %c0_14 = arith.constant 0 : index
    %59 = vector.load %arg5[%c0_13, %c0_14] : memref<1x128xf32, #tpu.memory_space<vmem>>, vector<1x128xf32>
    %cst_15 = arith.constant 9.99999996E-13 : f32
    %60 = vector.broadcast %cst_15 : f32 to vector<128x1xf32>
    %61 = arith.addf %58, %60 : vector<128x1xf32>
    %62 = math.rsqrt %61 : vector<128x1xf32>
    %63 = vector.broadcast %62 : vector<128x1xf32> to vector<128x128xf32>
    %64 = arith.mulf %53, %63 : vector<128x128xf32>
    %65 = vector.broadcast %59 : vector<1x128xf32> to vector<128x128xf32>
    %66 = arith.mulf %65, %64 : vector<128x128xf32>
    %c0_16 = arith.constant 0 : index
    %c0_17 = arith.constant 0 : index
    %67 = vector.load %arg6[%c0_16, %c0_17] : memref<1x128xf32, #tpu.memory_space<vmem>>, vector<1x128xf32>
    %68 = vector.broadcast %67 : vector<1x128xf32> to vector<128x128xf32>
    %69 = arith.addf %66, %68 : vector<128x128xf32>
    %c0_18 = arith.constant 0 : index
    %c0_19 = arith.constant 0 : index
    %70 = vector.load %arg7[%c0_18, %c0_19] : memref<128x128xf32, #tpu.memory_space<vmem>>, vector<128x128xf32>
    tpu.vector_store %arg7[%c0_18, %c0_19], %69 {strides = array<i32>} : memref<128x128xf32, #tpu.memory_space<vmem>>, vector<128x128xf32>,
    %71 = vector.shape_cast %69 : vector<128x128xf32> to vector<16x8x128xf32>
    %cst_20 = arith.constant dense<0xFF800000> : vector<16x128xf32>
    %72 = vector.multi_reduction <maximumf>, %71, %cst_20 [1] : vector<16x8x128xf32> to vector<16x128xf32>
    %c0_21 = arith.constant 0 : index
    %c0_22 = arith.constant 0 : index
    %73 = vector.load %arg8[%c0_21, %c0_22] : memref<16x128xf32, #tpu.memory_space<vmem>>, vector<16x128xf32>
    tpu.vector_store %arg8[%c0_21, %c0_22], %72 {strides = array<i32>} : memref<16x128xf32, #tpu.memory_space<vmem>>, vector<16x128xf32>,
    return
  }
  func.func @transform_0(%arg0: i32) -> (i32, i32, i32) {
    %c0_i32 = arith.constant 0 : i32
    %c0_i32_0 = arith.constant 0 : i32
    %c0_i32_1 = arith.constant 0 : i32
    return %c0_i32, %arg0, %c0_i32_0 : i32, i32, i32
  }
  func.func @transform_1(%arg0: i32) -> (i32, i32) {
    %c0_i32 = arith.constant 0 : i32
    %c0_i32_0 = arith.constant 0 : i32
    %c0_i32_1 = arith.constant 0 : i32
    return %c0_i32, %c0_i32_0 : i32, i32
  }
  func.func @transform_2(%arg0: i32) -> (i32, i32) {
    %c0_i32 = arith.constant 0 : i32
    %c0_i32_0 = arith.constant 0 : i32
    %c0_i32_1 = arith.constant 0 : i32
    return %c0_i32, %c0_i32_0 : i32, i32
  }
  func.func @transform_3(%arg0: i32) -> (i32, i32) {
    %c0_i32 = arith.constant 0 : i32
    %c0_i32_0 = arith.constant 0 : i32
    %c0_i32_1 = arith.constant 0 : i32
    return %c0_i32, %c0_i32_0 : i32, i32
  }
  func.func @transform_4(%arg0: i32) -> (i32, i32) {
    %c0_i32 = arith.constant 0 : i32
    %c0_i32_0 = arith.constant 0 : i32
    %c0_i32_1 = arith.constant 0 : i32
    return %c0_i32, %c0_i32_0 : i32, i32
  }
  func.func @transform_5(%arg0: i32) -> (i32, i32) {
    %c0_i32 = arith.constant 0 : i32
    %c0_i32_0 = arith.constant 0 : i32
    %c0_i32_1 = arith.constant 0 : i32
    return %c0_i32, %c0_i32_0 : i32, i32
  }
  func.func @transform_6(%arg0: i32) -> (i32, i32) {
    %c0_i32 = arith.constant 0 : i32
    %c0_i32_0 = arith.constant 0 : i32
    return %arg0, %c0_i32 : i32, i32
  }
  func.func @transform_7(%arg0: i32) -> (i32, i32) {
    %c0_i32 = arith.constant 0 : i32
    %c0_i32_0 = arith.constant 0 : i32
    return %arg0, %c0_i32 : i32, i32
  }
}

</mosaic_0001>

<bundles_post_ra>
// kernel: chunk_level_feature_encoder_attention_maxpool.1
= control target key start
LH: loop header
LB: loop body
LE: loop exit
PB: predicated region body
PF: predicated region fallthrough
CT: control target
= control target key end

     0   :  { %13 = vsyncpa [#allocation4], 0  ;;  %s5492_s0 = inlined_call_operand.vmem [shape: f32[4,256,128], index: 0, kind: input, shape index: {}]   ;;  %s5493_s1 = inlined_call_operand.vmem [shape: f32[128,128], index: 1, kind: input, shape index: {}]   ;;  %s5494_s2 = inlined_call_operand.vmem [shape: f32[1,128], index: 2, kind: input, shape index: {}]   ;;  %s5495_s3 = inlined_call_operand.vmem [shape: f32[128,1], index: 3, kind: input, shape index: {}]   ;;  %s5496_s4 = inlined_call_operand.vmem [shape: f32[1,128], index: 4, kind: input, shape index: {}]   ;;  %s5497_s5 = inlined_call_operand.vmem [shape: f32[1,128], index: 5, kind: input, shape index: {}]   ;;  %s5498_s6 = inlined_call_operand.hbm [shape: f32[256,128], index: 6, kind: output, shape index: {0}]   ;;  %s5499_s7 = inlined_call_operand.hbm [shape: f32[32,128], index: 7, kind: output, shape index: {1}]  }
   0x1   :  { %15 = vsyncpa [#allocation4 + $0x1], 0 }
   0x2   :  { %16 = vsyncpa [#allocation6], 0 }
   0x3   :  { %18 = vsyncpa [#allocation6 + $0x1], 0  ;;  %s3904_s24 = smov 0   ;;  %s3906_s25 = smov 0  }
   0x4   :  { %s3908_s26 = smov 0   ;;  %s3910_s27 = smov 0  }
   0x5 LB: > { %s3925_s28 = sadd.s32 4294967295, %s3857_s27   ;;  %s2826_s29 = sadd.s32 4294967294, %s3857_s27   ;;  %s3857_s27 = sphi %s3910_s27, %s5591_s27   ;;  %s3853_s26 = sphi %s3908_s26, %s5590_s26   ;;  %s3849_s25 = sphi %s3906_s25, %s5589_s25   ;;  %s3845_s24 = sphi %s3904_s24, %s5588_s24  }
   0x6   : > { %s3929_s30 = sadd.s32 1, %s3857_s27   ;;  %s31_s8 = sadd.s32 1, %s3853_s26 }
   0x7   : > { %s28_s9 = ssub.s32 %s3857_s27, %s3929_s30  ;;  %p38_p0 = scmp.ne.s32.totalorder %s3853_s26, %s3849_s25 }
   0x8   : > { %p29_p1 = scmp.eq.s32.totalorder %s28_s9, 0  ;;  %p39_p2 = scmp.eq.s32.totalorder %s3857_s27, 0 }
   0x9   : > { %p173_p3 = scmp.eq.s32.totalorder %s3925_s28, 1  ;;  %p178_p4 = scmp.ne.s32.totalorder %s3849_s25, %s3845_s24 }
   0xa   : > { %s3941_s10 = scalar_select %p29_p1, %s3853_s26, %s31_s8  }
   0xb   : > { %p40_p5 = por %p39_p2, %p38_p0  ;;  %p3943_p6 = por %p173_p3, %p38_p0 }
   0xc   : > { %p179_p7 = scmp.eq.s32.totalorder %s2826_s29, 1  ;;  %p2828_p9 = scmp.ge.s32.totalorder %s3857_s27, 2 }
   0xe   : > { %p3947_p8 = por %p179_p7, %p178_p4  ;;  %236 = sbr.rel (%p2828_p9) target bundleno = 57 (0x39), region = 36 }
  0x15   : > { %239 = sbr.rel (!%p40_p5) target bundleno = 57 (0x39), region = 40  ;;  %s241_s13 = sand.u32 (%p40_p5), 1, %s3853_s26  }
  0x16   : > { %s2847_s14 = sshll.u32 (%p40_p5), %s3857_s27, 7  ;;  %s2829_s15 = sshll.u32 (%p40_p5), %s241_s13, 9 }
  0x17   : > { %s3959_s18 = scalar_lea.vmem (%p40_p5), %s5492_s0, %s2847_s14  ;;  %s3964_s19 = scalar_lea.vmem (%p40_p5), [#allocation2], %s2829_s15 }
  0x18   : > { %v400_v0 = vld [vmem:[%s3959_s18] sm:$0xff] (%p40_p5)  ;;  %v402_v1 = vld [vmem:[%s3959_s18 + $0x8] sm:$0xff] (%p40_p5)  ;;  %v404_v2 = vld [vmem:[%s3959_s18 + $0x10] sm:$0xff] (%p40_p5) }
  0x19   : > { %401 = vst [vmem:[%s3964_s19] sm:$0xff] (%p40_p5), %v400_v0  ;;  %403 = vst [vmem:[%s3964_s19 + $0x8] sm:$0xff] (%p40_p5), %v402_v1  ;;  %v406_v3 = vld [vmem:[%s3959_s18 + $0x18] sm:$0xff] (%p40_p5)  ;;  %v408_v4 = vld [vmem:[%s3959_s18 + $0x20] sm:$0xff] (%p40_p5) }
  0x1a   : > { %405 = vst [vmem:[%s3964_s19 + $0x10] sm:$0xff] (%p40_p5), %v404_v2  ;;  %v410_v5 = vld [vmem:[%s3959_s18 + $0x28] sm:$0xff] (%p40_p5)  ;;  %407 = vst [vmem:[%s3964_s19 + $0x18] sm:$0xff] (%p40_p5), %v406_v3  ;;  %v412_v6 = vld [vmem:[%s3959_s18 + $0x30] sm:$0xff] (%p40_p5) }
  0x1b   : > { %409 = vst [vmem:[%s3964_s19 + $0x20] sm:$0xff] (%p40_p5), %v408_v4  ;;  %411 = vst [vmem:[%s3964_s19 + $0x28] sm:$0xff] (%p40_p5), %v410_v5  ;;  %v414_v7 = vld [vmem:[%s3959_s18 + $0x38] sm:$0xff] (%p40_p5)  ;;  %v416_v8 = vld [vmem:[%s3959_s18 + $0x40] sm:$0xff] (%p40_p5) }
  0x1c   : > { %413 = vst [vmem:[%s3964_s19 + $0x30] sm:$0xff] %v412_v6  ;;  %415 = vst [vmem:[%s3964_s19 + $0x38] sm:$0xff] %v414_v7  ;;  %v418_v9 = vld [vmem:[%s3959_s18 + $0x48] sm:$0xff]  ;;  %v420_v10 = vld [vmem:[%s3959_s18 + $0x50] sm:$0xff] }
  0x1d   : > { %417 = vst [vmem:[%s3964_s19 + $0x40] sm:$0xff] %v416_v8  ;;  %v422_v11 = vld [vmem:[%s3959_s18 + $0x58] sm:$0xff]  ;;  %419 = vst [vmem:[%s3964_s19 + $0x48] sm:$0xff] %v418_v9  ;;  %v424_v12 = vld [vmem:[%s3959_s18 + $0x60] sm:$0xff] }
  0x1e   : > { %421 = vst [vmem:[%s3964_s19 + $0x50] sm:$0xff] %v420_v10  ;;  %423 = vst [vmem:[%s3964_s19 + $0x58] sm:$0xff] %v422_v11  ;;  %v426_v13 = vld [vmem:[%s3959_s18 + $0x68] sm:$0xff]  ;;  %v428_v14 = vld [vmem:[%s3959_s18 + $0x70] sm:$0xff] }
  0x1f   : > { %425 = vst [vmem:[%s3964_s19 + $0x60] sm:$0xff] %v424_v12  ;;  %427 = vst [vmem:[%s3964_s19 + $0x68] sm:$0xff] %v426_v13  ;;  %v430_v15 = vld [vmem:[%s3959_s18 + $0x78] sm:$0xff]  ;;  %v432_v16 = vld [vmem:[%s3959_s18 + $0x100] sm:$0xff] }
  0x20   : > { %429 = vst [vmem:[%s3964_s19 + $0x70] sm:$0xff] %v428_v14  ;;  %v434_v17 = vld [vmem:[%s3959_s18 + $0x108] sm:$0xff]  ;;  %431 = vst [vmem:[%s3964_s19 + $0x78] sm:$0xff] %v430_v15  ;;  %v436_v18 = vld [vmem:[%s3959_s18 + $0x110] sm:$0xff] }
  0x21   : > { %433 = vst [vmem:[%s3964_s19 + $0x80] sm:$0xff] %v432_v16  ;;  %435 = vst [vmem:[%s3964_s19 + $0x88] sm:$0xff] %v434_v17  ;;  %v438_v19 = vld [vmem:[%s3959_s18 + $0x118] sm:$0xff]  ;;  %v440_v20 = vld [vmem:[%s3959_s18 + $0x120] sm:$0xff] }
  0x22   : > { %437 = vst [vmem:[%s3964_s19 + $0x90] sm:$0xff] %v436_v18  ;;  %439 = vst [vmem:[%s3964_s19 + $0x98] sm:$0xff] %v438_v19  ;;  %v442_v21 = vld [vmem:[%s3959_s18 + $0x128] sm:$0xff]  ;;  %v444_v22 = vld [vmem:[%s3959_s18 + $0x130] sm:$0xff] }
  0x23   : > { %441 = vst [vmem:[%s3964_s19 + $0xa0] sm:$0xff] %v440_v20  ;;  %v446_v23 = vld [vmem:[%s3959_s18 + $0x138] sm:$0xff]  ;;  %443 = vst [vmem:[%s3964_s19 + $0xa8] sm:$0xff] %v442_v21  ;;  %v448_v24 = vld [vmem:[%s3959_s18 + $0x140] sm:$0xff] }
  0x24   : > { %445 = vst [vmem:[%s3964_s19 + $0xb0] sm:$0xff] %v444_v22  ;;  %447 = vst [vmem:[%s3964_s19 + $0xb8] sm:$0xff] %v446_v23  ;;  %v450_v25 = vld [vmem:[%s3959_s18 + $0x148] sm:$0xff]  ;;  %v452_v26 = vld [vmem:[%s3959_s18 + $0x150] sm:$0xff] }
  0x25   : > { %449 = vst [vmem:[%s3964_s19 + $0xc0] sm:$0xff] %v448_v24  ;;  %451 = vst [vmem:[%s3964_s19 + $0xc8] sm:$0xff] %v450_v25  ;;  %v454_v27 = vld [vmem:[%s3959_s18 + $0x158] sm:$0xff]  ;;  %v456_v28 = vld [vmem:[%s3959_s18 + $0x160] sm:$0xff] }
  0x26   : > { %453 = vst [vmem:[%s3964_s19 + $0xd0] sm:$0xff] %v452_v26  ;;  %v458_v29 = vld [vmem:[%s3959_s18 + $0x168] sm:$0xff]  ;;  %455 = vst [vmem:[%s3964_s19 + $0xd8] sm:$0xff] %v454_v27  ;;  %v460_v30 = vld [vmem:[%s3959_s18 + $0x170] sm:$0xff] }
  0x27   : > { %457 = vst [vmem:[%s3964_s19 + $0xe0] sm:$0xff] %v456_v28  ;;  %459 = vst [vmem:[%s3964_s19 + $0xe8] sm:$0xff] %v458_v29  ;;  %v462_v31 = vld [vmem:[%s3959_s18 + $0x178] sm:$0xff]  ;;  %v464_v32 = vld [vmem:[%s3959_s18 + $0x200] sm:$0xff] }
  0x28   : > { %461 = vst [vmem:[%s3964_s19 + $0xf0] sm:$0xff] %v460_v30  ;;  %463 = vst [vmem:[%s3964_s19 + $0xf8] sm:$0xff] %v462_v31  ;;  %v466_v33 = vld [vmem:[%s3959_s18 + $0x208] sm:$0xff]  ;;  %v468_v34 = vld [vmem:[%s3959_s18 + $0x210] sm:$0xff] }
  0x29   : > { %465 = vst [vmem:[%s3964_s19 + $0x100] sm:$0xff] %v464_v32  ;;  %v470_v35 = vld [vmem:[%s3959_s18 + $0x218] sm:$0xff]  ;;  %467 = vst [vmem:[%s3964_s19 + $0x108] sm:$0xff] %v466_v33  ;;  %v472_v36 = vld [vmem:[%s3959_s18 + $0x220] sm:$0xff] }
  0x2a   : > { %469 = vst [vmem:[%s3964_s19 + $0x110] sm:$0xff] %v468_v34  ;;  %471 = vst [vmem:[%s3964_s19 + $0x118] sm:$0xff] %v470_v35  ;;  %v474_v37 = vld [vmem:[%s3959_s18 + $0x228] sm:$0xff]  ;;  %v476_v38 = vld [vmem:[%s3959_s18 + $0x230] sm:$0xff] }
  0x2b   : > { %473 = vst [vmem:[%s3964_s19 + $0x120] sm:$0xff] %v472_v36  ;;  %475 = vst [vmem:[%s3964_s19 + $0x128] sm:$0xff] %v474_v37  ;;  %v478_v39 = vld [vmem:[%s3959_s18 + $0x238] sm:$0xff]  ;;  %v480_v40 = vld [vmem:[%s3959_s18 + $0x240] sm:$0xff] }
  0x2c   : > { %477 = vst [vmem:[%s3964_s19 + $0x130] sm:$0xff] %v476_v38  ;;  %v482_v41 = vld [vmem:[%s3959_s18 + $0x248] sm:$0xff]  ;;  %479 = vst [vmem:[%s3964_s19 + $0x138] sm:$0xff] %v478_v39  ;;  %v484_v42 = vld [vmem:[%s3959_s18 + $0x250] sm:$0xff] }
  0x2d   : > { %481 = vst [vmem:[%s3964_s19 + $0x140] sm:$0xff] %v480_v40  ;;  %483 = vst [vmem:[%s3964_s19 + $0x148] sm:$0xff] %v482_v41  ;;  %v486_v43 = vld [vmem:[%s3959_s18 + $0x258] sm:$0xff]  ;;  %v488_v44 = vld [vmem:[%s3959_s18 + $0x260] sm:$0xff] }
  0x2e   : > { %485 = vst [vmem:[%s3964_s19 + $0x150] sm:$0xff] %v484_v42  ;;  %487 = vst [vmem:[%s3964_s19 + $0x158] sm:$0xff] %v486_v43  ;;  %v490_v45 = vld [vmem:[%s3959_s18 + $0x268] sm:$0xff]  ;;  %v492_v46 = vld [vmem:[%s3959_s18 + $0x270] sm:$0xff] }
  0x2f   : > { %489 = vst [vmem:[%s3964_s19 + $0x160] sm:$0xff] %v488_v44  ;;  %v494_v47 = vld [vmem:[%s3959_s18 + $0x278] sm:$0xff]  ;;  %491 = vst [vmem:[%s3964_s19 + $0x168] sm:$0xff] %v490_v45  ;;  %v496_v48 = vld [vmem:[%s3959_s18 + $0x300] sm:$0xff] }
  0x30   : > { %493 = vst [vmem:[%s3964_s19 + $0x170] sm:$0xff] %v492_v46  ;;  %495 = vst [vmem:[%s3964_s19 + $0x178] sm:$0xff] %v494_v47  ;;  %v498_v49 = vld [vmem:[%s3959_s18 + $0x308] sm:$0xff]  ;;  %v500_v50 = vld [vmem:[%s3959_s18 + $0x310] sm:$0xff] }
  0x31   : > { %497 = vst [vmem:[%s3964_s19 + $0x180] sm:$0xff] %v496_v48  ;;  %499 = vst [vmem:[%s3964_s19 + $0x188] sm:$0xff] %v498_v49  ;;  %v502_v51 = vld [vmem:[%s3959_s18 + $0x318] sm:$0xff]  ;;  %v504_v52 = vld [vmem:[%s3959_s18 + $0x320] sm:$0xff] }
  0x32   : > { %501 = vst [vmem:[%s3964_s19 + $0x190] sm:$0xff] %v500_v50  ;;  %v506_v53 = vld [vmem:[%s3959_s18 + $0x328] sm:$0xff]  ;;  %503 = vst [vmem:[%s3964_s19 + $0x198] sm:$0xff] %v502_v51  ;;  %v508_v54 = vld [vmem:[%s3959_s18 + $0x330] sm:$0xff] }
  0x33   : > { %505 = vst [vmem:[%s3964_s19 + $0x1a0] sm:$0xff] %v504_v52  ;;  %507 = vst [vmem:[%s3964_s19 + $0x1a8] sm:$0xff] %v506_v53  ;;  %v510_v55 = vld [vmem:[%s3959_s18 + $0x338] sm:$0xff]  ;;  %v512_v56 = vld [vmem:[%s3959_s18 + $0x340] sm:$0xff] }
  0x34   : > { %509 = vst [vmem:[%s3964_s19 + $0x1b0] sm:$0xff] %v508_v54  ;;  %511 = vst [vmem:[%s3964_s19 + $0x1b8] sm:$0xff] %v510_v55  ;;  %v514_v57 = vld [vmem:[%s3959_s18 + $0x348] sm:$0xff]  ;;  %v516_v58 = vld [vmem:[%s3959_s18 + $0x350] sm:$0xff] }
  0x35   : > { %513 = vst [vmem:[%s3964_s19 + $0x1c0] sm:$0xff] %v512_v56  ;;  %v518_v59 = vld [vmem:[%s3959_s18 + $0x358] sm:$0xff]  ;;  %515 = vst [vmem:[%s3964_s19 + $0x1c8] sm:$0xff] %v514_v57  ;;  %v520_v60 = vld [vmem:[%s3959_s18 + $0x360] sm:$0xff] }
  0x36   : > { %517 = vst [vmem:[%s3964_s19 + $0x1d0] sm:$0xff] %v516_v58  ;;  %519 = vst [vmem:[%s3964_s19 + $0x1d8] sm:$0xff] %v518_v59  ;;  %v522_v61 = vld [vmem:[%s3959_s18 + $0x368] sm:$0xff]  ;;  %v524_v62 = vld [vmem:[%s3959_s18 + $0x370] sm:$0xff] }
  0x37   : > { %521 = vst [vmem:[%s3964_s19 + $0x1e0] sm:$0xff] %v520_v60  ;;  %523 = vst [vmem:[%s3964_s19 + $0x1e8] sm:$0xff] %v522_v61  ;;  %v526_v63 = vld [vmem:[%s3959_s18 + $0x378] sm:$0xff] }
  0x38   : > { %525 = vst [vmem:[%s3964_s19 + $0x1f0] sm:$0xff] %v524_v62  ;;  %527 = vst [vmem:[%s3964_s19 + $0x1f8] sm:$0xff] %v526_v63 }
  0x39 PF: > { %p2832_p10 = scmp.ge.s32.totalorder %s3857_s27, 1  ;;  %p532_p11 = scmp.lt.s32.totalorder %s3857_s27, 3 }
  0x3b   : > { %p533_p12 = pnand %p2832_p10, %p532_p11 }
  0x3d   : > { %536 = sbr.rel (%p533_p12) target bundleno = 1312 (0x520), region = 78 }
  0x44   : > { %v642_v0 = vld [vmem:[%s5493_s1] sm:$0xff]  ;;  %v643_v1 = vld [vmem:[%s5493_s1 + $0x8] sm:$0xff]  ;;  %v644_v2 = vld [vmem:[%s5493_s1 + $0x10] sm:$0xff]  ;;  %s4103_s9 = sand.u32 1, %s3849_s25   ;;  %vm2666_vm0 = vcmask 1041409   ;;  %vm2668_vm1 = vcmask 1042434  }
  0x45   : > { %v3266_v3 = vpack.c.bf16 %v643_v1, %v642_v0  ;;  %v645_v4 = vld [vmem:[%s5493_s1 + $0x18] sm:$0xff]  ;;  %s2833_s15 = sshll.u32 %s4103_s9, 9  ;;  %v646_v6 = vld [vmem:[%s5493_s1 + $0x20] sm:$0xff]  ;;  %v647_v7 = vld [vmem:[%s5493_s1 + $0x28] sm:$0xff]  ;;  %vm2670_vm2 = vcmask 1043459   ;;  %vm2672_vm3 = vcmask 1044484  }
  0x46   : > { %v3270_v5 = vpack.c.bf16 %v645_v4, %v644_v2  ;;  %v3274_v8 = vpack.c.bf16 %v647_v7, %v646_v6  ;;  %s4115_s20 = scalar_lea.vmem [#allocation2], %s2833_s15  ;;  %v648_v10 = vld [vmem:[%s5493_s1 + $0x30] sm:$0xff]  ;;  %v649_v11 = vld [vmem:[%s5493_s1 + $0x38] sm:$0xff]  ;;  %v650_v13 = vld [vmem:[%s5493_s1 + $0x40] sm:$0xff]  ;;  %s2834_s15 = sshll.u32 %s4103_s9, 7  ;;  %vm2674_vm4 = vcmask 1045509  }
  0x47   : > { %3267 = vmatprep.subr.bf16.mxu0 %v3266_v3  ;;  %v578_v9 = vld [vmem:[%s4115_s20] sm:$0xff]  ;;  %v3278_v12 = vpack.c.bf16 %v649_v11, %v648_v10  ;;  %v651_v14 = vld [vmem:[%s5493_s1 + $0x48] sm:$0xff]  ;;  %v652_v16 = vld [vmem:[%s5493_s1 + $0x50] sm:$0xff]  ;;  %s5313_s18 = scalar_lea.vmem [#allocation3], %s2834_s15  ;;  %s2835_s19 = sshll.u32 %s4103_s9, 4  ;;  %vm2676_vm5 = vcmask 1046534  }
  0x48   : > { %3269 = vmatpush3.bf16.msra.mxu0 %v3266_v3  ;;  %3042 = vmatprep.mubr.f32.mxu0 %v578_v9  ;;  %v3282_v15 = vpack.c.bf16 %v651_v14, %v650_v13  ;;  %v653_v17 = vld [vmem:[%s5493_s1 + $0x58] sm:$0xff]  ;;  %v654_v19 = vld [vmem:[%s5493_s1 + $0x60] sm:$0xff]  ;;  %v655_v20 = vld [vmem:[%s5493_s1 + $0x68] sm:$0xff]  ;;  %vm2678_vm6 = vcmask 1047559   ;;  %s2848_s21 = sshll.u32 %s3925_s28, 11  ;;  %s2710_s22 = sshll.u32 %s5313_s18, 4  ;;  %s5395_s22 = int_to_ptr.vmem [resolvable:$true] %s2710_s22 }
  0x49   : > { %3271 = vmatprep.subr.bf16.mxu0 %v3270_v5  ;;  %v3286_v18 = vpack.c.bf16 %v653_v17, %v652_v16  ;;  %v3290_v21 = vpack.c.bf16 %v655_v20, %v654_v19  ;;  %v656_v22 = vld [vmem:[%s5493_s1 + $0x70] sm:$0xff]  ;;  %v657_v23 = vld [vmem:[%s5493_s1 + $0x78] sm:$0xff]  ;;  %v1114_v25 = vld [vmem:[%s5495_s3] sm:$0xff]  ;;  %s5393_s8 = scalar_lea.hbm %s5498_s6, %s2848_s21  ;;  %s5399_s13 = scalar_lea.vmem [#allocation5], %s2835_s19 }
  0x4a   : > { %v3294_v24 = vpack.c.bf16 %v657_v23, %v656_v22  ;;  %v1115_v26 = vld [vmem:[%s5495_s3 + $0x8] sm:$0xff]  ;;  %v1116_v27 = vld [vmem:[%s5495_s3 + $0x10] sm:$0xff]  ;;  %v1117_v30 = vld [vmem:[%s5495_s3 + $0x18] sm:$0xff]  ;;  %s3763_s14 = scalar_lea.vmem %s5395_s22, 2048  ;;  %s3860_s15 = smov [#allocation3]  }
  0x4b   : > { %v579_v28 = vld [vmem:[%s4115_s20 + $0x8] sm:$0xff]  ;;  %v3298_v29 = vpack.c.bf16 %v1115_v26, %v1114_v25  ;;  %v580_v31 = vld [vmem:[%s4115_s20 + $0x10] sm:$0xff]  ;;  %v3302_v32 = vpack.c.bf16 %v1117_v30, %v1116_v27  ;;  %v1118_v33 = vld [vmem:[%s5495_s3 + $0x20] sm:$0xff]  ;;  %p3764_p13 = scmp.ne.s32.totalorder %s5395_s22, %s3763_s14  ;;  %s3767_s16 = sshll.u32 %s3860_s15, 4  ;;  %s3768_s16 = int_to_ptr.vmem [resolvable:$false] %s3767_s16 }
  0x4c   : > { %3273 = vmatpush3.bf16.msra.mxu0 %v3270_v5  ;;  %v1119_v34 = vld [vmem:[%s5495_s3 + $0x28] sm:$0xff]  ;;  %v581_v35 = vld [vmem:[%s4115_s20 + $0x18] sm:$0xff]  ;;  %v582_v37 = vld [vmem:[%s4115_s20 + $0x20] sm:$0xff]  ;;  %s3769_s17 = scalar_lea.vmem %s3768_s16, 4096  ;;  %p3770_p2 = scmp.lt.s32.totalorder %s5395_s22, %s3768_s16 }
  0x4d   : > { %3275 = vmatprep.subr.bf16.mxu0 %v3274_v8  ;;  %3299 = vmatprep.subr.bf16.mxu1 %v3298_v29  ;;  %v3306_v36 = vpack.c.bf16 %v1119_v34, %v1118_v33  ;;  %v1120_v38 = vld [vmem:[%s5495_s3 + $0x30] sm:$0xff]  ;;  %v1121_v39 = vld [vmem:[%s5495_s3 + $0x38] sm:$0xff]  ;;  %v583_v40 = vld [vmem:[%s4115_s20 + $0x28] sm:$0xff]  ;;  %p3765_p0 = pnand %p3764_p13, %p3943_p6  ;;  %p3771_p3 = scmp.lt.s32.totalorder %s3769_s17, %s3763_s14 }
  0x4e   : > { %3301 = vmatpush3.bf16.msra.mxu1 %v3298_v29  ;;  %v3310_v41 = vpack.c.bf16 %v1121_v39, %v1120_v38  ;;  %v584_v42 = vld [vmem:[%s4115_s20 + $0x30] sm:$0xff]  ;;  %v585_v43 = vld [vmem:[%s4115_s20 + $0x38] sm:$0xff]  ;;  %v586_v44 = vld [vmem:[%s4115_s20 + $0x40] sm:$0xff] }
  0x4f   : > { %3303 = vmatprep.subr.bf16.mxu1 %v3302_v32  ;;  %v587_v45 = vld [vmem:[%s4115_s20 + $0x48] sm:$0xff]  ;;  %v588_v46 = vld [vmem:[%s4115_s20 + $0x50] sm:$0xff]  ;;  %v589_v47 = vld [vmem:[%s4115_s20 + $0x58] sm:$0xff]  ;;  %p3766_p1 = pneg %p3765_p0  ;;  %p3772_p4 = por %p3771_p3, %p3770_p2 }
  0x50   : > { %3277 = vmatpush3.bf16.msra.mxu0 %v3274_v8  ;;  %v590_v48 = vld [vmem:[%s4115_s20 + $0x60] sm:$0xff]  ;;  %v591_v49 = vld [vmem:[%s4115_s20 + $0x68] sm:$0xff]  ;;  %v592_v50 = vld [vmem:[%s4115_s20 + $0x70] sm:$0xff] }
  0x51   : > { %3279 = vmatprep.subr.bf16.mxu0 %v3278_v12  ;;  %v593_v51 = vld [vmem:[%s4115_s20 + $0x78] sm:$0xff]  ;;  %v594_v52 = vld [vmem:[%s4115_s20 + $0x80] sm:$0xff]  ;;  %v595_v53 = vld [vmem:[%s4115_s20 + $0x88] sm:$0xff]  ;;  %p3773_p5 = pnand %p3772_p4, %p3766_p1 }
  0x52   : > { %3305 = vmatpush3.bf16.msra.mxu1 %v3302_v32  ;;  %v596_v54 = vld [vmem:[%s4115_s20 + $0x90] sm:$0xff]  ;;  %v597_v55 = vld [vmem:[%s4115_s20 + $0x98] sm:$0xff]  ;;  %v598_v56 = vld [vmem:[%s4115_s20 + $0xa0] sm:$0xff] }
  0x53   : > { %3307 = vmatprep.subr.bf16.mxu1 %v3306_v36  ;;  %v599_v57 = vld [vmem:[%s4115_s20 + $0xa8] sm:$0xff]  ;;  %v600_v58 = vld [vmem:[%s4115_s20 + $0xb0] sm:$0xff]  ;;  %v601_v59 = vld [vmem:[%s4115_s20 + $0xb8] sm:$0xff] }
  0x54   : > { %3281 = vmatpush3.bf16.msra.mxu0 %v3278_v12  ;;  %v602_v60 = vld [vmem:[%s4115_s20 + $0xc0] sm:$0xff]  ;;  %v603_v61 = vld [vmem:[%s4115_s20 + $0xc8] sm:$0xff]  ;;  %v604_v62 = vld [vmem:[%s4115_s20 + $0xd0] sm:$0xff] }
  0x55   : > { %3283 = vmatprep.subr.bf16.mxu0 %v3282_v15  ;;  %v605_v63 = vld [vmem:[%s4115_s20 + $0xd8] sm:$0xff]  ;;  %v606_v0 = vld [vmem:[%s4115_s20 + $0xe0] sm:$0xff]  ;;  %v607_v1 = vld [vmem:[%s4115_s20 + $0xe8] sm:$0xff] }
  0x56   : > { %3309 = vmatpush3.bf16.msra.mxu1 %v3306_v36  ;;  %v608_v2 = vld [vmem:[%s4115_s20 + $0xf0] sm:$0xff]  ;;  %v609_v3 = vld [vmem:[%s4115_s20 + $0xf8] sm:$0xff]  ;;  %v610_v4 = vld [vmem:[%s4115_s20 + $0x100] sm:$0xff] }
  0x57   : > { %3311 = vmatprep.subr.bf16.mxu1 %v3310_v41  ;;  %v611_v5 = vld [vmem:[%s4115_s20 + $0x108] sm:$0xff]  ;;  %v612_v6 = vld [vmem:[%s4115_s20 + $0x110] sm:$0xff]  ;;  %v613_v7 = vld [vmem:[%s4115_s20 + $0x118] sm:$0xff] }
  0x58   : > { %3285 = vmatpush3.bf16.msra.mxu0 %v3282_v15  ;;  %v614_v8 = vld [vmem:[%s4115_s20 + $0x120] sm:$0xff]  ;;  %v615_v9 = vld [vmem:[%s4115_s20 + $0x128] sm:$0xff]  ;;  %v616_v10 = vld [vmem:[%s4115_s20 + $0x130] sm:$0xff] }
  0x59   : > { %3287 = vmatprep.subr.bf16.mxu0 %v3286_v18  ;;  %v617_v11 = vld [vmem:[%s4115_s20 + $0x138] sm:$0xff]  ;;  %v618_v12 = vld [vmem:[%s4115_s20 + $0x140] sm:$0xff]  ;;  %v619_v13 = vld [vmem:[%s4115_s20 + $0x148] sm:$0xff] }
  0x5a   : > { %3313 = vmatpush3.bf16.msra.mxu1 %v3310_v41  ;;  %v620_v14 = vld [vmem:[%s4115_s20 + $0x150] sm:$0xff]  ;;  %v1122_v15 = vld [vmem:[%s5495_s3 + $0x40] sm:$0xff]  ;;  %v1123_v16 = vld [vmem:[%s5495_s3 + $0x48] sm:$0xff] }
  0x5b   : > { %v621_v17 = vld [vmem:[%s4115_s20 + $0x158] sm:$0xff]  ;;  %v622_v19 = vld [vmem:[%s4115_s20 + $0x160] sm:$0xff]  ;;  %v1124_v20 = vld [vmem:[%s5495_s3 + $0x50] sm:$0xff] }
  0x5c   : > { %3289 = vmatpush3.bf16.msra.mxu0 %v3286_v18  ;;  %v3314_v18 = vpack.c.bf16 %v1123_v16, %v1122_v15  ;;  %v623_v22 = vld [vmem:[%s4115_s20 + $0x168] sm:$0xff]  ;;  %v1126_v25 = vld [vmem:[%s5495_s3 + $0x60] sm:$0xff]  ;;  %v625_v27 = vld [vmem:[%s4115_s20 + $0x178] sm:$0xff] }
  0x5d   : > { %3291 = vmatprep.subr.bf16.mxu0 %v3290_v21  ;;  %v1127_v26 = vld [vmem:[%s5495_s3 + $0x68] sm:$0xff]  ;;  %v626_v29 = vld [vmem:[%s4115_s20 + $0x180] sm:$0xff]  ;;  %v1128_v30 = vld [vmem:[%s5495_s3 + $0x70] sm:$0xff] }
  0x5e   : > { %3315 = vmatprep.subr.bf16.mxu1 %v3314_v18  ;;  %v627_v32 = vld [vmem:[%s4115_s20 + $0x188] sm:$0xff]  ;;  %v628_v34 = vld [vmem:[%s4115_s20 + $0x190] sm:$0xff]  ;;  %v630_v36 = vld [vmem:[%s4115_s20 + $0x1a0] sm:$0xff] }
  0x5f   : > { %3317 = vmatpush3.bf16.msra.mxu1 %v3314_v18  ;;  %v632_v38 = vld [vmem:[%s4115_s20 + $0x1b0] sm:$0xff]  ;;  %v633_v39 = vld [vmem:[%s4115_s20 + $0x1b8] sm:$0xff]  ;;  %v635_v41 = vld [vmem:[%s4115_s20 + $0x1c8] sm:$0xff] }
  0x60   : > { %3293 = vmatpush3.bf16.msra.mxu0 %v3290_v21  ;;  %v1125_v21 = vld [vmem:[%s5495_s3 + $0x58] sm:$0xff] }
  0x61   : > { %3295 = vmatprep.subr.bf16.mxu0 %v3294_v24  ;;  %v3318_v23 = vpack.c.bf16 %v1125_v21, %v1124_v20 }
  0x63   : > { %3319 = vmatprep.subr.bf16.mxu1 %v3318_v23 }
  0x64   : > { %3297 = vmatpush3.bf16.msra.mxu0 %v3294_v24  ;;  %v624_v24 = vld [vmem:[%s4115_s20 + $0x170] sm:$0xff]  ;;  %3321 = vmatpush3.bf16.msra.mxu1 %v3318_v23 }
  0x67   : > { %3043 = vmatmul.mubr.f32.vlgmr.msra.gmra.mrb[0].mxu0 %v579_v28  ;;  %v3322_v28 = vpack.c.bf16 %v1127_v26, %v1126_v25 }
  0x68   : > { %3045 = vmatprep.mubr.f32.mxu0 %v580_v31  ;;  %v1129_v31 = vld [vmem:[%s5495_s3 + $0x78] sm:$0xff] }
  0x69   : > { %3323 = vmatprep.subr.bf16.mxu1 %v3322_v28  ;;  %v3326_v33 = vpack.c.bf16 %v1129_v31, %v1128_v30 }
  0x6a   : > { %3325 = vmatpush3.bf16.msra.mxu1 %v3322_v28 }
  0x6b   : > { %3046 = vmatmul.mubr.f32.gmra.mrb[2].mxu0 %v581_v35  ;;  %3327 = vmatprep.subr.bf16.mxu1 %v3326_v33  ;;  %v629_v35 = vld [vmem:[%s4115_s20 + $0x198] sm:$0xff] }
  0x6c   : > { %3048 = vmatprep.mubr.f32.mxu0 %v582_v37  ;;  %v631_v37 = vld [vmem:[%s4115_s20 + $0x1a8] sm:$0xff] }
  0x6e   : > { %3329 = vmatpush3.bf16.msra.mxu1 %v3326_v33 }
  0x6f   : > { %3049 = vmatmul.mubr.f32.gmra.mrb[4].mxu0 %v583_v40  ;;  %v634_v40 = vld [vmem:[%s4115_s20 + $0x1c0] sm:$0xff] }
  0x70   : > { %3051 = vmatprep.mubr.f32.mxu0 %v584_v42  ;;  %v636_v42 = vld [vmem:[%s4115_s20 + $0x1d0] sm:$0xff] }
  0x73   : > { %3052 = vmatmul.mubr.f32.gmra.mrb[6].mxu0 %v585_v43  ;;  %v637_v43 = vld [vmem:[%s4115_s20 + $0x1d8] sm:$0xff] }
  0x74   : > { %3054 = vmatprep.mubr.f32.mxu0 %v586_v44  ;;  %v638_v44 = vld [vmem:[%s4115_s20 + $0x1e0] sm:$0xff] }
  0x77   : > { %3055 = vmatmul.mubr.f32.gmra.mrb[8].mxu0 %v587_v45  ;;  %v639_v45 = vld [vmem:[%s4115_s20 + $0x1e8] sm:$0xff] }
  0x78   : > { %3057 = vmatprep.mubr.f32.mxu0 %v588_v46  ;;  %v640_v46 = vld [vmem:[%s4115_s20 + $0x1f0] sm:$0xff] }
  0x7b   : > { %3058 = vmatmul.mubr.f32.gmra.mrb[10].mxu0 %v589_v47  ;;  %v641_v47 = vld [vmem:[%s4115_s20 + $0x1f8] sm:$0xff] }
  0x7c   : > { %3060 = vmatprep.mubr.f32.mxu0 %v590_v48  ;;  %v4262_v48 = vld [vmem:[%s5494_s2] ss:$0 sm:$0xff] }
  0x7f   : > { %3061 = vmatmul.mubr.f32.gmra.mrb[12].mxu0 %v591_v49 }
  0x80   : > { %3063 = vmatprep.mubr.f32.mxu0 %v592_v50 }
  0x83   : > { %3064 = vmatmul.mubr.f32.gmra.mrb[14].mxu0 %v593_v51 }
  0x84   : > { %3066 = vmatprep.mubr.f32.mxu0 %v594_v52 }
  0x87   : > { %3067 = vmatmul.mubr.f32.gmra.mrb[16].mxu0 %v595_v53 }
  0x88   : > { %3069 = vmatprep.mubr.f32.mxu0 %v596_v54 }
  0x8b   : > { %3070 = vmatmul.mubr.f32.gmra.mrb[18].mxu0 %v597_v55 }
  0x8c   : > { %3072 = vmatprep.mubr.f32.mxu0 %v598_v56 }
  0x8f   : > { %3073 = vmatmul.mubr.f32.gmra.mrb[20].mxu0 %v599_v57 }
  0x90   : > { %3075 = vmatprep.mubr.f32.mxu0 %v600_v58 }
  0x93   : > { %3076 = vmatmul.mubr.f32.gmra.mrb[22].mxu0 %v601_v59 }
  0x94   : > { %3078 = vmatprep.mubr.f32.mxu0 %v602_v60 }
  0x97   : > { %3079 = vmatmul.mubr.f32.gmra.mrb[24].mxu0 %v603_v61 }
  0x98   : > { %3081 = vmatprep.mubr.f32.mxu0 %v604_v62 }
  0x9b   : > { %3082 = vmatmul.mubr.f32.gmra.mrb[26].mxu0 %v605_v63 }
  0x9c   : > { %3084 = vmatprep.mubr.f32.mxu0 %v606_v0 }
  0x9f   : > { %3085 = vmatmul.mubr.f32.gmra.mrb[28].mxu0 %v607_v1 }
  0xa0   : > { %3087 = vmatprep.mubr.f32.mxu0 %v608_v2 }
  0xa3   : > { %3088 = vmatmul.mubr.f32.gmra.mrb[30].mxu0 %v609_v3 }
  0xa4   : > { %3090 = vmatprep.mubr.f32.mxu0 %v610_v4 }
  0xa7   : > { %3091 = vmatmul.mubr.f32.gmra.mrb[32].mxu0 %v611_v5 }
  0xa8   : > { %3093 = vmatprep.mubr.f32.mxu0 %v612_v6 }
  0xab   : > { %3094 = vmatmul.mubr.f32.gmra.mrb[34].mxu0 %v613_v7 }
  0xac   : > { %3096 = vmatprep.mubr.f32.mxu0 %v614_v8 }
  0xaf   : > { %3097 = vmatmul.mubr.f32.gmra.mrb[36].mxu0 %v615_v9 }
  0xb0   : > { %3099 = vmatprep.mubr.f32.mxu0 %v616_v10 }
  0xb3   : > { %3100 = vmatmul.mubr.f32.gmra.mrb[38].mxu0 %v617_v11 }
  0xb4   : > { %3102 = vmatprep.mubr.f32.mxu0 %v618_v12 }
  0xb7   : > { %3103 = vmatmul.mubr.f32.gmra.mrb[40].mxu0 %v619_v13 }
  0xb8   : > { %3105 = vmatprep.mubr.f32.mxu0 %v620_v14 }
  0xbb   : > { %3106 = vmatmul.mubr.f32.gmra.mrb[42].mxu0 %v621_v17 }
  0xbc   : > { %3108 = vmatprep.mubr.f32.mxu0 %v622_v19 }
  0xbf   : > { %3109 = vmatmul.mubr.f32.gmra.mrb[44].mxu0 %v623_v22 }
  0xc0   : > { %3111 = vmatprep.mubr.f32.mxu0 %v624_v24 }
  0xc3   : > { %3112 = vmatmul.mubr.f32.gmra.mrb[46].mxu0 %v625_v27 }
  0xc4   : > { %3114 = vmatprep.mubr.f32.mxu0 %v626_v29 }
  0xc7   : > { %3115 = vmatmul.mubr.f32.gmra.mrb[48].mxu0 %v627_v32 }
  0xc8   : > { %3117 = vmatprep.mubr.f32.mxu0 %v628_v34 }
  0xcb   : > { %3118 = vmatmul.mubr.f32.gmra.mrb[50].mxu0 %v629_v35 }
  0xcc   : > { %3120 = vmatprep.mubr.f32.mxu0 %v630_v36 }
  0xcf   : > { %3121 = vmatmul.mubr.f32.gmra.mrb[52].mxu0 %v631_v37 }
  0xd0   : > { %3123 = vmatprep.mubr.f32.mxu0 %v632_v38 }
  0xd3   : > { %3124 = vmatmul.mubr.f32.gmra.mrb[54].mxu0 %v633_v39 }
  0xd4   : > { %3126 = vmatprep.mubr.f32.mxu0 %v634_v40 }
  0xd7   : > { %3127 = vmatmul.mubr.f32.gmra.mrb[56].mxu0 %v635_v41 }
  0xd8   : > { %3129 = vmatprep.mubr.f32.mxu0 %v636_v42 }
  0xdb   : > { %3130 = vmatmul.mubr.f32.gmra.mrb[58].mxu0 %v637_v43 }
  0xdc   : > { %3132 = vmatprep.mubr.f32.mxu0 %v638_v44 }
  0xdf   : > { %3133 = vmatmul.mubr.f32.gmra.mrb[60].mxu0 %v639_v45 }
  0xe0   : > { %3135 = vmatprep.mubr.f32.mxu0 %v640_v46 }
  0xe3   : > { %3136 = vmatmul.mubr.f32.gmra.mrb[62].mxu0 %v641_v47 }
 0x13a   : > { %v3044_v49 = vpop.f32.mrb[0].mxu0 }
 0x13b   : > { %v737_v50 = vadd.f32 %v3044_v49, %v4262_v48  ;;  %v731_v51 = vpop.f32.mrb[1].mxu0 }
 0x13c   : > { %v732_v52 = vadd.f32 %v4262_v48, %v731_v51 }
 0x13e   : > { %3379 = vtanh.f32 %v732_v52  ;;  %v3047_v53 = vpop.f32.mrb[2].mxu0 }
 0x13f   : > { %3381 = vtanh.f32 %v737_v50  ;;  %v747_v54 = vadd.f32 %v3047_v53, %v4262_v48  ;;  %v741_v55 = vpop.f32.mrb[3].mxu0 }
 0x140   : > { %v742_v56 = vadd.f32 %v4262_v48, %v741_v55 }
 0x142   : > { %3383 = vtanh.f32 %v742_v56  ;;  %v3050_v57 = vpop.f32.mrb[4].mxu0 }
 0x143   : > { %3385 = vtanh.f32 %v747_v54  ;;  %v757_v58 = vadd.f32 %v3050_v57, %v4262_v48  ;;  %v751_v59 = vpop.f32.mrb[5].mxu0 }
 0x144   : > { %v752_v60 = vadd.f32 %v4262_v48, %v751_v59 }
 0x146   : > { %3387 = vtanh.f32 %v752_v60  ;;  %v3053_v61 = vpop.f32.mrb[6].mxu0 }
 0x147   : > { %3389 = vtanh.f32 %v757_v58  ;;  %v767_v62 = vadd.f32 %v3053_v61, %v4262_v48  ;;  %v761_v63 = vpop.f32.mrb[7].mxu0 }
 0x148   : > { %v3380_v0 = vpop.eup %3379  ;;  %v762_v1 = vadd.f32 %v4262_v48, %v761_v63 }
 0x149   : > { %v3382_v2 = vpop.eup %3381  ;;  %3170 = vmatprep.mubr.f32.mxu1 %v3380_v0 }
 0x14a   : > { %3391 = vtanh.f32 %v762_v1  ;;  %v3056_v3 = vpop.f32.mrb[8].mxu0  ;;  %3171 = vmatmul.mubr.f32.vlgmr.msra.gmra.mrb[0].mxu1 %v3382_v2 }
 0x14b   : > { %3393 = vtanh.f32 %v767_v62  ;;  %v777_v4 = vadd.f32 %v3056_v3, %v4262_v48  ;;  %v771_v5 = vpop.f32.mrb[9].mxu0 }
 0x14c   : > { %v3384_v6 = vpop.eup %3383  ;;  %v772_v7 = vadd.f32 %v4262_v48, %v771_v5 }
 0x14d   : > { %v3386_v8 = vpop.eup %3385  ;;  %3173 = vmatprep.mubr.f32.mxu1 %v3384_v6 }
 0x14e   : > { %3395 = vtanh.f32 %v772_v7  ;;  %v3059_v9 = vpop.f32.mrb[10].mxu0  ;;  %3174 = vmatmul.mubr.f32.gmra.mrb[2].mxu1 %v3386_v8 }
 0x14f   : > { %3397 = vtanh.f32 %v777_v4  ;;  %v787_v10 = vadd.f32 %v3059_v9, %v4262_v48  ;;  %v781_v11 = vpop.f32.mrb[11].mxu0 }
 0x150   : > { %v3388_v12 = vpop.eup %3387  ;;  %v782_v13 = vadd.f32 %v4262_v48, %v781_v11 }
 0x151   : > { %v3390_v14 = vpop.eup %3389  ;;  %3176 = vmatprep.mubr.f32.mxu1 %v3388_v12 }
 0x152   : > { %3399 = vtanh.f32 %v782_v13  ;;  %v3062_v15 = vpop.f32.mrb[12].mxu0  ;;  %3177 = vmatmul.mubr.f32.gmra.mrb[4].mxu1 %v3390_v14 }
 0x153   : > { %3401 = vtanh.f32 %v787_v10  ;;  %v797_v16 = vadd.f32 %v3062_v15, %v4262_v48  ;;  %v791_v17 = vpop.f32.mrb[13].mxu0 }
 0x154   : > { %v3392_v18 = vpop.eup %3391  ;;  %v792_v19 = vadd.f32 %v4262_v48, %v791_v17 }
 0x155   : > { %v3394_v20 = vpop.eup %3393  ;;  %3179 = vmatprep.mubr.f32.mxu1 %v3392_v18 }
 0x156   : > { %3403 = vtanh.f32 %v792_v19  ;;  %v3065_v21 = vpop.f32.mrb[14].mxu0  ;;  %3180 = vmatmul.mubr.f32.gmra.mrb[6].mxu1 %v3394_v20 }
 0x157   : > { %3405 = vtanh.f32 %v797_v16  ;;  %v807_v22 = vadd.f32 %v3065_v21, %v4262_v48  ;;  %v801_v23 = vpop.f32.mrb[15].mxu0 }
 0x158   : > { %v3396_v24 = vpop.eup %3395  ;;  %v802_v25 = vadd.f32 %v4262_v48, %v801_v23 }
 0x159   : > { %v3398_v26 = vpop.eup %3397  ;;  %3182 = vmatprep.mubr.f32.mxu1 %v3396_v24 }
 0x15a   : > { %3407 = vtanh.f32 %v802_v25  ;;  %v3068_v27 = vpop.f32.mrb[16].mxu0  ;;  %3183 = vmatmul.mubr.f32.gmra.mrb[8].mxu1 %v3398_v26 }
 0x15b   : > { %3409 = vtanh.f32 %v807_v22  ;;  %v817_v28 = vadd.f32 %v3068_v27, %v4262_v48  ;;  %v811_v29 = vpop.f32.mrb[17].mxu0 }
 0x15c   : > { %v3400_v30 = vpop.eup %3399  ;;  %v812_v31 = vadd.f32 %v4262_v48, %v811_v29 }
 0x15d   : > { %v3402_v32 = vpop.eup %3401  ;;  %3185 = vmatprep.mubr.f32.mxu1 %v3400_v30 }
 0x15e   : > { %3411 = vtanh.f32 %v812_v31  ;;  %v3071_v33 = vpop.f32.mrb[18].mxu0  ;;  %3186 = vmatmul.mubr.f32.gmra.mrb[10].mxu1 %v3402_v32 }
 0x15f   : > { %3413 = vtanh.f32 %v817_v28  ;;  %v827_v34 = vadd.f32 %v3071_v33, %v4262_v48  ;;  %v821_v35 = vpop.f32.mrb[19].mxu0 }
 0x160   : > { %v3404_v36 = vpop.eup %3403  ;;  %v822_v37 = vadd.f32 %v4262_v48, %v821_v35 }
 0x161   : > { %v3406_v38 = vpop.eup %3405  ;;  %3188 = vmatprep.mubr.f32.mxu1 %v3404_v36 }
 0x162   : > { %3415 = vtanh.f32 %v822_v37  ;;  %v3074_v39 = vpop.f32.mrb[20].mxu0  ;;  %3189 = vmatmul.mubr.f32.gmra.mrb[12].mxu1 %v3406_v38 }
 0x163   : > { %3417 = vtanh.f32 %v827_v34  ;;  %v837_v40 = vadd.f32 %v3074_v39, %v4262_v48  ;;  %v831_v41 = vpop.f32.mrb[21].mxu0 }
 0x164   : > { %v3408_v42 = vpop.eup %3407  ;;  %v832_v43 = vadd.f32 %v4262_v48, %v831_v41 }
 0x165   : > { %v3410_v44 = vpop.eup %3409  ;;  %3191 = vmatprep.mubr.f32.mxu1 %v3408_v42 }
 0x166   : > { %3419 = vtanh.f32 %v832_v43  ;;  %v3077_v45 = vpop.f32.mrb[22].mxu0  ;;  %3192 = vmatmul.mubr.f32.gmra.mrb[14].mxu1 %v3410_v44 }
 0x167   : > { %3421 = vtanh.f32 %v837_v40  ;;  %v847_v46 = vadd.f32 %v3077_v45, %v4262_v48  ;;  %v841_v47 = vpop.f32.mrb[23].mxu0 }
 0x168   : > { %v3412_v49 = vpop.eup %3411  ;;  %v842_v50 = vadd.f32 %v4262_v48, %v841_v47 }
 0x169   : > { %v3414_v51 = vpop.eup %3413  ;;  %3194 = vmatprep.mubr.f32.mxu1 %v3412_v49 }
 0x16a   : > { %3423 = vtanh.f32 %v842_v50  ;;  %v3080_v52 = vpop.f32.mrb[24].mxu0  ;;  %3195 = vmatmul.mubr.f32.gmra.mrb[16].mxu1 %v3414_v51 }
 0x16b   : > { %3425 = vtanh.f32 %v847_v46  ;;  %v857_v53 = vadd.f32 %v3080_v52, %v4262_v48  ;;  %v851_v54 = vpop.f32.mrb[25].mxu0 }
 0x16c   : > { %v3416_v55 = vpop.eup %3415  ;;  %v852_v56 = vadd.f32 %v4262_v48, %v851_v54 }
 0x16d   : > { %v3418_v57 = vpop.eup %3417  ;;  %3197 = vmatprep.mubr.f32.mxu1 %v3416_v55 }
 0x16e   : > { %3427 = vtanh.f32 %v852_v56  ;;  %v3083_v58 = vpop.f32.mrb[26].mxu0  ;;  %3198 = vmatmul.mubr.f32.gmra.mrb[18].mxu1 %v3418_v57 }
 0x16f   : > { %3429 = vtanh.f32 %v857_v53  ;;  %v867_v59 = vadd.f32 %v3083_v58, %v4262_v48  ;;  %v861_v60 = vpop.f32.mrb[27].mxu0 }
 0x170   : > { %v3420_v61 = vpop.eup %3419  ;;  %v862_v62 = vadd.f32 %v4262_v48, %v861_v60 }
 0x171   : > { %v3422_v63 = vpop.eup %3421  ;;  %3200 = vmatprep.mubr.f32.mxu1 %v3420_v61 }
 0x172   : > { %3431 = vtanh.f32 %v862_v62  ;;  %v3086_v0 = vpop.f32.mrb[28].mxu0  ;;  %3201 = vmatmul.mubr.f32.gmra.mrb[20].mxu1 %v3422_v63 }
 0x173   : > { %3433 = vtanh.f32 %v867_v59  ;;  %v877_v1 = vadd.f32 %v3086_v0, %v4262_v48  ;;  %v871_v2 = vpop.f32.mrb[29].mxu0 }
 0x174   : > { %v3424_v3 = vpop.eup %3423  ;;  %v872_v4 = vadd.f32 %v4262_v48, %v871_v2 }
 0x175   : > { %v3426_v5 = vpop.eup %3425  ;;  %3203 = vmatprep.mubr.f32.mxu1 %v3424_v3 }
 0x176   : > { %3435 = vtanh.f32 %v872_v4  ;;  %v3089_v6 = vpop.f32.mrb[30].mxu0  ;;  %3204 = vmatmul.mubr.f32.gmra.mrb[22].mxu1 %v3426_v5 }
 0x177   : > { %3437 = vtanh.f32 %v877_v1  ;;  %v887_v7 = vadd.f32 %v3089_v6, %v4262_v48  ;;  %v881_v8 = vpop.f32.mrb[31].mxu0 }
 0x178   : > { %v3428_v9 = vpop.eup %3427  ;;  %v882_v10 = vadd.f32 %v4262_v48, %v881_v8 }
 0x179   : > { %v3430_v11 = vpop.eup %3429  ;;  %3206 = vmatprep.mubr.f32.mxu1 %v3428_v9 }
 0x17a   : > { %3439 = vtanh.f32 %v882_v10  ;;  %v3092_v12 = vpop.f32.mrb[32].mxu0  ;;  %3207 = vmatmul.mubr.f32.gmra.mrb[24].mxu1 %v3430_v11 }
 0x17b   : > { %3441 = vtanh.f32 %v887_v7  ;;  %v897_v13 = vadd.f32 %v3092_v12, %v4262_v48  ;;  %v891_v14 = vpop.f32.mrb[33].mxu0 }
 0x17c   : > { %v3432_v15 = vpop.eup %3431  ;;  %v892_v16 = vadd.f32 %v4262_v48, %v891_v14 }
 0x17d   : > { %v3434_v17 = vpop.eup %3433  ;;  %3209 = vmatprep.mubr.f32.mxu1 %v3432_v15 }
 0x17e   : > { %3443 = vtanh.f32 %v892_v16  ;;  %v3095_v18 = vpop.f32.mrb[34].mxu0  ;;  %3210 = vmatmul.mubr.f32.gmra.mrb[26].mxu1 %v3434_v17 }
 0x17f   : > { %3445 = vtanh.f32 %v897_v13  ;;  %v907_v19 = vadd.f32 %v3095_v18, %v4262_v48  ;;  %v901_v20 = vpop.f32.mrb[35].mxu0 }
 0x180   : > { %v3436_v21 = vpop.eup %3435  ;;  %v902_v22 = vadd.f32 %v4262_v48, %v901_v20 }
 0x181   : > { %v3438_v23 = vpop.eup %3437  ;;  %3212 = vmatprep.mubr.f32.mxu1 %v3436_v21 }
 0x182   : > { %3447 = vtanh.f32 %v902_v22  ;;  %v3098_v24 = vpop.f32.mrb[36].mxu0  ;;  %3213 = vmatmul.mubr.f32.gmra.mrb[28].mxu1 %v3438_v23 }
 0x183   : > { %3449 = vtanh.f32 %v907_v19  ;;  %v917_v25 = vadd.f32 %v3098_v24, %v4262_v48  ;;  %v911_v26 = vpop.f32.mrb[37].mxu0 }
 0x184   : > { %v3440_v27 = vpop.eup %3439  ;;  %v912_v28 = vadd.f32 %v4262_v48, %v911_v26 }
 0x185   : > { %v3442_v29 = vpop.eup %3441  ;;  %3215 = vmatprep.mubr.f32.mxu1 %v3440_v27 }
 0x186   : > { %3451 = vtanh.f32 %v912_v28  ;;  %v3101_v30 = vpop.f32.mrb[38].mxu0  ;;  %3216 = vmatmul.mubr.f32.gmra.mrb[30].mxu1 %v3442_v29 }
 0x187   : > { %3453 = vtanh.f32 %v917_v25  ;;  %v927_v31 = vadd.f32 %v3101_v30, %v4262_v48  ;;  %v921_v32 = vpop.f32.mrb[39].mxu0 }
 0x188   : > { %v3444_v33 = vpop.eup %3443  ;;  %v922_v34 = vadd.f32 %v4262_v48, %v921_v32 }
 0x189   : > { %v3446_v35 = vpop.eup %3445  ;;  %3218 = vmatprep.mubr.f32.mxu1 %v3444_v33 }
 0x18a   : > { %3455 = vtanh.f32 %v922_v34  ;;  %v3104_v36 = vpop.f32.mrb[40].mxu0  ;;  %3219 = vmatmul.mubr.f32.gmra.mrb[32].mxu1 %v3446_v35 }
 0x18b   : > { %3457 = vtanh.f32 %v927_v31  ;;  %v937_v37 = vadd.f32 %v3104_v36, %v4262_v48  ;;  %v931_v38 = vpop.f32.mrb[41].mxu0 }
 0x18c   : > { %v3448_v39 = vpop.eup %3447  ;;  %v932_v40 = vadd.f32 %v4262_v48, %v931_v38 }
 0x18d   : > { %v3450_v41 = vpop.eup %3449  ;;  %3221 = vmatprep.mubr.f32.mxu1 %v3448_v39 }
 0x18e   : > { %3459 = vtanh.f32 %v932_v40  ;;  %v3107_v42 = vpop.f32.mrb[42].mxu0  ;;  %3222 = vmatmul.mubr.f32.gmra.mrb[34].mxu1 %v3450_v41 }
 0x18f   : > { %3461 = vtanh.f32 %v937_v37  ;;  %v947_v43 = vadd.f32 %v3107_v42, %v4262_v48  ;;  %v941_v44 = vpop.f32.mrb[43].mxu0 }
 0x190   : > { %v3452_v45 = vpop.eup %3451  ;;  %v942_v46 = vadd.f32 %v4262_v48, %v941_v44 }
 0x191   : > { %v3454_v47 = vpop.eup %3453  ;;  %3224 = vmatprep.mubr.f32.mxu1 %v3452_v45 }
 0x192   : > { %3463 = vtanh.f32 %v942_v46  ;;  %v3110_v49 = vpop.f32.mrb[44].mxu0  ;;  %3225 = vmatmul.mubr.f32.gmra.mrb[36].mxu1 %v3454_v47 }
 0x193   : > { %3465 = vtanh.f32 %v947_v43  ;;  %v957_v50 = vadd.f32 %v3110_v49, %v4262_v48  ;;  %v951_v51 = vpop.f32.mrb[45].mxu0 }
 0x194   : > { %v3456_v52 = vpop.eup %3455  ;;  %v952_v53 = vadd.f32 %v4262_v48, %v951_v51 }
 0x195   : > { %v3458_v54 = vpop.eup %3457  ;;  %3227 = vmatprep.mubr.f32.mxu1 %v3456_v52 }
 0x196   : > { %3467 = vtanh.f32 %v952_v53  ;;  %v3113_v55 = vpop.f32.mrb[46].mxu0  ;;  %3228 = vmatmul.mubr.f32.gmra.mrb[38].mxu1 %v3458_v54 }
 0x197   : > { %3469 = vtanh.f32 %v957_v50  ;;  %v967_v56 = vadd.f32 %v3113_v55, %v4262_v48  ;;  %v961_v57 = vpop.f32.mrb[47].mxu0 }
 0x198   : > { %v3460_v58 = vpop.eup %3459  ;;  %v962_v59 = vadd.f32 %v4262_v48, %v961_v57 }
 0x199   : > { %v3462_v60 = vpop.eup %3461  ;;  %3230 = vmatprep.mubr.f32.mxu1 %v3460_v58 }
 0x19a   : > { %3471 = vtanh.f32 %v962_v59  ;;  %v3116_v61 = vpop.f32.mrb[48].mxu0  ;;  %3231 = vmatmul.mubr.f32.gmra.mrb[40].mxu1 %v3462_v60 }
 0x19b   : > { %3473 = vtanh.f32 %v967_v56  ;;  %v977_v62 = vadd.f32 %v3116_v61, %v4262_v48  ;;  %v971_v63 = vpop.f32.mrb[49].mxu0 }
 0x19c   : > { %v3464_v0 = vpop.eup %3463  ;;  %v972_v1 = vadd.f32 %v4262_v48, %v971_v63 }
 0x19d   : > { %v3466_v2 = vpop.eup %3465  ;;  %3233 = vmatprep.mubr.f32.mxu1 %v3464_v0 }
 0x19e   : > { %3475 = vtanh.f32 %v972_v1  ;;  %v3119_v3 = vpop.f32.mrb[50].mxu0  ;;  %3234 = vmatmul.mubr.f32.gmra.mrb[42].mxu1 %v3466_v2 }
 0x19f   : > { %3477 = vtanh.f32 %v977_v62  ;;  %v987_v4 = vadd.f32 %v3119_v3, %v4262_v48  ;;  %v981_v5 = vpop.f32.mrb[51].mxu0 }
 0x1a0   : > { %v3468_v6 = vpop.eup %3467  ;;  %v982_v7 = vadd.f32 %v4262_v48, %v981_v5 }
 0x1a1   : > { %v3470_v8 = vpop.eup %3469  ;;  %3479 = vtanh.f32 %v987_v4  ;;  %3236 = vmatprep.mubr.f32.mxu1 %v3468_v6 }
 0x1a2   : > { %3481 = vtanh.f32 %v982_v7  ;;  %v3122_v9 = vpop.f32.mrb[52].mxu0  ;;  %3237 = vmatmul.mubr.f32.gmra.mrb[44].mxu1 %v3470_v8 }
 0x1a3   : > { %v997_v10 = vadd.f32 %v3122_v9, %v4262_v48  ;;  %v991_v11 = vpop.f32.mrb[53].mxu0 }
 0x1a4   : > { %v3472_v12 = vpop.eup %3471  ;;  %v992_v13 = vadd.f32 %v4262_v48, %v991_v11 }
 0x1a5   : > { %v3474_v14 = vpop.eup %3473  ;;  %3483 = vtanh.f32 %v997_v10  ;;  %3239 = vmatprep.mubr.f32.mxu1 %v3472_v12 }
 0x1a6   : > { %3485 = vtanh.f32 %v992_v13  ;;  %v3125_v15 = vpop.f32.mrb[54].mxu0  ;;  %3240 = vmatmul.mubr.f32.gmra.mrb[46].mxu1 %v3474_v14 }
 0x1a7   : > { %v1007_v16 = vadd.f32 %v3125_v15, %v4262_v48  ;;  %v1001_v17 = vpop.f32.mrb[55].mxu0 }
 0x1a8   : > { %v3476_v18 = vpop.eup %3475  ;;  %v1002_v19 = vadd.f32 %v4262_v48, %v1001_v17 }
 0x1a9   : > { %v3478_v20 = vpop.eup %3477  ;;  %3487 = vtanh.f32 %v1007_v16  ;;  %3242 = vmatprep.mubr.f32.mxu1 %v3476_v18 }
 0x1aa   : > { %3489 = vtanh.f32 %v1002_v19  ;;  %v3128_v21 = vpop.f32.mrb[56].mxu0  ;;  %3243 = vmatmul.mubr.f32.gmra.mrb[48].mxu1 %v3478_v20 }
 0x1ab   : > { %v3480_v22 = vpop.eup %3479  ;;  %v1017_v23 = vadd.f32 %v3128_v21, %v4262_v48  ;;  %v1011_v24 = vpop.f32.mrb[57].mxu0 }
 0x1ac   : > { %v3482_v25 = vpop.eup %3481  ;;  %v1012_v26 = vadd.f32 %v4262_v48, %v1011_v24 }
 0x1ad   : > { %3491 = vtanh.f32 %v1017_v23  ;;  %3245 = vmatprep.mubr.f32.mxu1 %v3482_v25  ;;  %v3859_v23 = vmov 0  }
 0x1ae   : > { %3493 = vtanh.f32 %v1012_v26  ;;  %v3131_v27 = vpop.f32.mrb[58].mxu0  ;;  %3246 = vmatmul.mubr.f32.gmra.mrb[50].mxu1 %v3480_v22  ;;  %3378 = vset.pattern.permute.xlu1 %v3859_v23 }
 0x1af   : > { %v3484_v28 = vpop.eup %3483  ;;  %v1027_v29 = vadd.f32 %v3131_v27, %v4262_v48  ;;  %v1021_v30 = vpop.f32.mrb[59].mxu0  ;;  %3377 = vset.pattern.permute.xlu0 %v3859_v23 }
 0x1b0   : > { %v3486_v31 = vpop.eup %3485  ;;  %v1022_v32 = vadd.f32 %v4262_v48, %v1021_v30 }
 0x1b1   : > { %3495 = vtanh.f32 %v1027_v29  ;;  %3248 = vmatprep.mubr.f32.mxu1 %v3486_v31 }
 0x1b2   : > { %3497 = vtanh.f32 %v1022_v32  ;;  %v3134_v33 = vpop.f32.mrb[60].mxu0  ;;  %3249 = vmatmul.mubr.f32.gmra.mrb[52].mxu1 %v3484_v28 }
 0x1b3   : > { %v3488_v34 = vpop.eup %3487  ;;  %v1037_v35 = vadd.f32 %v3134_v33, %v4262_v48  ;;  %v1031_v36 = vpop.f32.mrb[61].mxu0 }
 0x1b4   : > { %v3490_v37 = vpop.eup %3489  ;;  %v1032_v38 = vadd.f32 %v4262_v48, %v1031_v36 }
 0x1b5   : > { %3499 = vtanh.f32 %v1037_v35  ;;  %3251 = vmatprep.mubr.f32.mxu1 %v3490_v37 }
 0x1b6   : > { %3501 = vtanh.f32 %v1032_v38  ;;  %v3137_v39 = vpop.f32.mrb[62].mxu0  ;;  %3252 = vmatmul.mubr.f32.gmra.mrb[54].mxu1 %v3488_v34 }
 0x1b7   : > { %v3492_v40 = vpop.eup %3491  ;;  %v1047_v41 = vadd.f32 %v3137_v39, %v4262_v48  ;;  %v1041_v42 = vpop.f32.mrb[63].mxu0 }
 0x1b8   : > { %v3494_v43 = vpop.eup %3493  ;;  %v1042_v44 = vadd.f32 %v4262_v48, %v1041_v42 }
 0x1b9   : > { %3503 = vtanh.f32 %v1047_v41  ;;  %3254 = vmatprep.mubr.f32.mxu1 %v3494_v43 }
 0x1ba   : > { %3505 = vtanh.f32 %v1042_v44  ;;  %3255 = vmatmul.mubr.f32.gmra.mrb[56].mxu1 %v3492_v40 }
 0x1bb   : > { %v3496_v45 = vpop.eup %3495 }
 0x1bc   : > { %v3498_v46 = vpop.eup %3497 }
 0x1bd   : > { %3257 = vmatprep.mubr.f32.mxu1 %v3498_v46 }
 0x1be   : > { %3258 = vmatmul.mubr.f32.gmra.mrb[58].mxu1 %v3496_v45 }
 0x1bf   : > { %v3500_v47 = vpop.eup %3499 }
 0x1c0   : > { %v3502_v49 = vpop.eup %3501 }
 0x1c1   : > { %3260 = vmatprep.mubr.f32.mxu1 %v3502_v49 }
 0x1c2   : > { %3261 = vmatmul.mubr.f32.gmra.mrb[60].mxu1 %v3500_v47 }
 0x1c3   : > { %v3504_v50 = vpop.eup %3503 }
 0x1c4   : > { %v3506_v51 = vpop.eup %3505 }
 0x1c5   : > { %3263 = vmatprep.mubr.f32.mxu1 %v3506_v51 }
 0x1c6   : > { %3264 = vmatmul.mubr.f32.gmra.mrb[62].mxu1 %v3504_v50 }
 0x21d   : > { %v4328_v52 = vpop.f32.mrb[0].mxu1 }
 0x21e   : > { %v4330_v53 = vpop.f32.mrb[1].mxu1 }
 0x221   : > { %v4332_v48 = vpop.f32.mrb[2].mxu1 }
 0x222   : > { %v4334_v54 = vpop.f32.mrb[3].mxu1 }
 0x225   : > { %v4336_v55 = vpop.f32.mrb[4].mxu1 }
 0x226   : > { %v4338_v56 = vpop.f32.mrb[5].mxu1 }
 0x229   : > { %v4340_v57 = vpop.f32.mrb[6].mxu1 }
 0x22a   : > { %v4342_v58 = vpop.f32.mrb[7].mxu1 }
 0x22d   : > { %v4344_v59 = vpop.f32.mrb[8].mxu1 }
 0x22e   : > { %v4346_v60 = vpop.f32.mrb[9].mxu1 }
 0x231   : > { %v4348_v61 = vpop.f32.mrb[10].mxu1 }
 0x232   : > { %v4350_v62 = vpop.f32.mrb[11].mxu1 }
 0x235   : > { %v4352_v63 = vpop.f32.mrb[12].mxu1 }
 0x236   : > { %5528 = vst [vmem:[#allocation9_spill] sm:$0xff] %v4352_v63  ;;  %v4354_v0 = vpop.f32.mrb[13].mxu1 }
 0x237   : > { %5529 = vst [vmem:[#allocation10_spill] sm:$0xff] %v4354_v0 }
 0x239   : > { %v4356_v1 = vpop.f32.mrb[14].mxu1 }
 0x23a   : > { %5530 = vst [vmem:[#allocation11_spill] sm:$0xff] %v4356_v1  ;;  %v4358_v2 = vpop.f32.mrb[15].mxu1 }
 0x23b   : > { %5531 = vst [vmem:[#allocation12_spill] sm:$0xff] %v4358_v2 }
 0x23d   : > { %v4360_v3 = vpop.f32.mrb[16].mxu1 }
 0x23e   : > { %v1516_v4 = vmax.f32 %v4328_v52, %v4360_v3  ;;  %v4364_v5 = vpop.f32.mrb[17].mxu1 }
 0x23f   : > { %v1515_v6 = vmax.f32 %v4330_v53, %v4364_v5 }
 0x241   : > { %v4368_v7 = vpop.f32.mrb[18].mxu1 }
 0x242   : > { %v1518_v8 = vmax.f32 %v4332_v48, %v4368_v7  ;;  %v4372_v9 = vpop.f32.mrb[19].mxu1 }
 0x243   : > { %v1517_v10 = vmax.f32 %v4334_v54, %v4372_v9 }
 0x245   : > { %v4376_v11 = vpop.f32.mrb[20].mxu1 }
 0x246   : > { %v1520_v12 = vmax.f32 %v4336_v55, %v4376_v11  ;;  %v4380_v13 = vpop.f32.mrb[21].mxu1 }
 0x247   : > { %v1519_v14 = vmax.f32 %v4338_v56, %v4380_v13 }
 0x249   : > { %v4384_v15 = vpop.f32.mrb[22].mxu1 }
 0x24a   : > { %v1522_v16 = vmax.f32 %v4340_v57, %v4384_v15  ;;  %v4388_v17 = vpop.f32.mrb[23].mxu1 }
 0x24b   : > { %v1521_v18 = vmax.f32 %v4342_v58, %v4388_v17 }
 0x24d   : > { %v4392_v19 = vpop.f32.mrb[24].mxu1 }
 0x24e   : > { %v1524_v20 = vmax.f32 %v4344_v59, %v4392_v19  ;;  %v4396_v21 = vpop.f32.mrb[25].mxu1 }
 0x24f   : > { %v1523_v22 = vmax.f32 %v4346_v60, %v4396_v21 }
 0x251   : > { %v4400_v24 = vpop.f32.mrb[26].mxu1 }
 0x252   : > { %v1526_v25 = vmax.f32 %v4348_v61, %v4400_v24  ;;  %v4404_v26 = vpop.f32.mrb[27].mxu1 }
 0x253   : > { %5532 = vst [vmem:[#allocation13_spill] sm:$0xff] %v4404_v26  ;;  %v1525_v27 = vmax.f32 %v4350_v62, %v4404_v26 }
 0x255   : > { %v4408_v28 = vpop.f32.mrb[28].mxu1 }
 0x256   : > { %5533 = vst [vmem:[#allocation14_spill] sm:$0xff] %v4408_v28  ;;  %v1528_v29 = vmax.f32 %v4352_v63, %v4408_v28  ;;  %v4412_v30 = vpop.f32.mrb[29].mxu1 }
 0x257   : > { %5534 = vst [vmem:[#allocation15_spill] sm:$0xff] %v4412_v30  ;;  %v1527_v31 = vmax.f32 %v4354_v0, %v4412_v30 }
 0x259   : > { %v4416_v32 = vpop.f32.mrb[30].mxu1 }
 0x25a   : > { %5535 = vst [vmem:[#allocation16_spill] sm:$0xff] %v4416_v32  ;;  %v1530_v33 = vmax.f32 %v4356_v1, %v4416_v32  ;;  %v4420_v34 = vpop.f32.mrb[31].mxu1 }
 0x25b   : > { %5536 = vst [vmem:[#allocation17_spill] sm:$0xff] %v4420_v34  ;;  %v1529_v35 = vmax.f32 %v4358_v2, %v4420_v34 }
 0x25d   : > { %v3220_v36 = vpop.f32.mrb[32].mxu1 }
 0x25e   : > { %v1532_v37 = vmax.f32 %v1516_v4, %v3220_v36  ;;  %v1356_v38 = vpop.f32.mrb[33].mxu1 }
 0x25f   : > { %v1531_v39 = vmax.f32 %v1515_v6, %v1356_v38 }
 0x261   : > { %v4424_v40 = vpop.f32.mrb[34].mxu1 }
 0x262   : > { %v1534_v41 = vmax.f32 %v1518_v8, %v4424_v40  ;;  %v4427_v42 = vpop.f32.mrb[35].mxu1 }
 0x263   : > { %v1533_v43 = vmax.f32 %v1517_v10, %v4427_v42 }
 0x265   : > { %v4430_v44 = vpop.f32.mrb[36].mxu1 }
 0x266   : > { %v1536_v45 = vmax.f32 %v1520_v12, %v4430_v44  ;;  %v4433_v46 = vpop.f32.mrb[37].mxu1 }
 0x267   : > { %v4436_v47 = vmax.f32 %v1519_v14, %v4433_v46 }
 0x269   : > { %v4438_v49 = vpop.f32.mrb[38].mxu1 }
 0x26a   : > { %v4441_v50 = vmax.f32 %v1522_v16, %v4438_v49  ;;  %v4443_v51 = vpop.f32.mrb[39].mxu1 }
 0x26b   : > { %v4446_v4 = vmax.f32 %v1521_v18, %v4443_v51 }
 0x26d   : > { %v4448_v6 = vpop.f32.mrb[40].mxu1 }
 0x26e   : > { %v4451_v8 = vmax.f32 %v1524_v20, %v4448_v6  ;;  %v4453_v10 = vpop.f32.mrb[41].mxu1 }
 0x26f   : > { %v4456_v12 = vmax.f32 %v1523_v22, %v4453_v10 }
 0x271   : > { %v4458_v14 = vpop.f32.mrb[42].mxu1 }
 0x272   : > { %v4461_v16 = vmax.f32 %v1526_v25, %v4458_v14  ;;  %v4463_v23 = vpop.f32.mrb[43].mxu1 }
 0x273   : > { %5537 = vst [vmem:[#allocation18_spill] sm:$0xff] %v4463_v23  ;;  %v4466_v18 = vmax.f32 %v1525_v27, %v4463_v23 }
 0x275   : > { %v4468_v34 = vpop.f32.mrb[44].mxu1 }
 0x276   : > { %5538 = vst [vmem:[#allocation19_spill] sm:$0xff] %v4468_v34  ;;  %v4471_v20 = vmax.f32 %v1528_v29, %v4468_v34  ;;  %v4473_v2 = vpop.f32.mrb[45].mxu1 }
 0x277   : > { %5540 = vst [vmem:[#allocation21_spill] sm:$0xff] %v4473_v2  ;;  %v4476_v22 = vmax.f32 %v1527_v31, %v4473_v2 }
 0x278   : > { %5539 = vst [vmem:[#allocation20_spill] sm:$0xff] %v4471_v20 }
 0x279   : > { %5541 = vst [vmem:[#allocation22_spill] sm:$0xff] %v4476_v22  ;;  %v4478_v32 = vpop.f32.mrb[46].mxu1 }
 0x27a   : > { %5542 = vst [vmem:[#allocation23_spill] sm:$0xff] %v4478_v32  ;;  %v4481_v25 = vmax.f32 %v1530_v33, %v4478_v32  ;;  %v4483_v1 = vpop.f32.mrb[47].mxu1 }
 0x27b   : > { %5544 = vst [vmem:[#allocation25_spill] sm:$0xff] %v4483_v1  ;;  %v4486_v27 = vmax.f32 %v1529_v35, %v4483_v1 }
 0x27c   : > { %5543 = vst [vmem:[#allocation24_spill] sm:$0xff] %v4481_v25 }
 0x27d   : > { %5545 = vst [vmem:[#allocation26_spill] sm:$0xff] %v4486_v27  ;;  %v3244_v30 = vpop.f32.mrb[48].mxu1 }
 0x27e   : > { %v1548_v0 = vmax.f32 %v1532_v37, %v3244_v30  ;;  %v1436_v28 = vpop.f32.mrb[49].mxu1 }
 0x27f   : > { %v1547_v29 = vmax.f32 %v1531_v39, %v1436_v28 }
 0x280   : > { %v1564_v34 = vsub.f32 %v4328_v52, %v1548_v0  ;;  %v1612_v63 = vsub.f32 %v4360_v3, %v1548_v0  ;;  %v1660_v31 = vsub.f32 %v3220_v36, %v1548_v0  ;;  %v1708_v2 = vsub.f32 %v3244_v30, %v1548_v0 }
 0x281   : > { %v1563_v22 = vsub.f32 %v4330_v53, %v1547_v29  ;;  %v1611_v33 = vsub.f32 %v4364_v5, %v1547_v29  ;;  %v1659_v32 = vsub.f32 %v1356_v38, %v1547_v29  ;;  %v1707_v25 = vsub.f32 %v1436_v28, %v1547_v29  ;;  %v3247_v20 = vpop.f32.mrb[50].mxu1 }
 0x282   : > { %v1581_v23 = vmul.f32 1.442695, %v1564_v34  ;;  %v1629_v35 = vmul.f32 1.442695, %v1612_v63  ;;  %v1677_v1 = vmul.f32 1.442695, %v1660_v31  ;;  %v1550_v27 = vmax.f32 %v1534_v41, %v3247_v20 }
 0x283   : > { %v1725_v37 = vmul.f32 1.442695, %v1708_v2  ;;  %v1579_v39 = vmul.f32 1.442695, %v1563_v22  ;;  %v1627_v26 = vmul.f32 1.442695, %v1611_v33 }
 0x284   : > { %3507 = vpow2.f32 %v1581_v23  ;;  %v1566_v52 = vsub.f32 %v4332_v48, %v1550_v27  ;;  %v1446_v3 = vpop.f32.mrb[51].mxu1  ;;  %v1614_v0 = vsub.f32 %v4368_v7, %v1550_v27  ;;  %v1662_v53 = vsub.f32 %v4424_v40, %v1550_v27 }
 0x285   : > { %3509 = vpow2.f32 %v1629_v35  ;;  %v1710_v5 = vsub.f32 %v3247_v20, %v1550_v27  ;;  %v4495_v30 = vpop.f32.mrb[52].mxu1  ;;  %v1675_v28 = vmul.f32 1.442695, %v1659_v32  ;;  %v1549_v63 = vmax.f32 %v1533_v43, %v1446_v3 }
 0x286   : > { %3511 = vpow2.f32 %v1677_v1  ;;  %v4498_v34 = vmax.f32 %v1536_v45, %v4495_v30  ;;  %v4500_v2 = vpop.f32.mrb[53].mxu1  ;;  %v1723_v36 = vmul.f32 1.442695, %v1707_v25  ;;  %v1585_v48 = vmul.f32 1.442695, %v1566_v52 }
 0x287   : > { %3513 = vpow2.f32 %v1725_v37  ;;  %v1633_v38 = vmul.f32 1.442695, %v1614_v0  ;;  %v1565_v7 = vsub.f32 %v4334_v54, %v1549_v63  ;;  %v1613_v40 = vsub.f32 %v4372_v9, %v1549_v63 }
 0x288   : > { %3515 = vpow2.f32 %v1579_v39  ;;  %v1661_v41 = vsub.f32 %v4427_v42, %v1549_v63  ;;  %v1709_v1 = vsub.f32 %v1446_v3, %v1549_v63  ;;  %v1568_v32 = vsub.f32 %v4336_v55, %v4498_v34 }
 0x289   : > { %3517 = vpow2.f32 %v1627_v26  ;;  %v1616_v43 = vsub.f32 %v4376_v11, %v4498_v34  ;;  %v4509_v45 = vpop.f32.mrb[54].mxu1  ;;  %v1681_v23 = vmul.f32 1.442695, %v1662_v53  ;;  %v1729_v20 = vmul.f32 1.442695, %v1710_v5 }
 0x28a   : > { %3519 = vpow2.f32 %v1675_v28  ;;  %v1583_v22 = vmul.f32 1.442695, %v1565_v7  ;;  %v1664_v54 = vsub.f32 %v4430_v44, %v4498_v34  ;;  %v1712_v9 = vsub.f32 %v4495_v30, %v4498_v34  ;;  %v4519_v26 = vpop.f32.mrb[55].mxu1 }
 0x28b   : > { %3521 = vpow2.f32 %v1723_v36  ;;  %v4517_v55 = vmax.f32 %v4436_v47, %v4500_v2  ;;  %v1631_v11 = vmul.f32 1.442695, %v1613_v40  ;;  %v4523_v42 = vmax.f32 %v4441_v50, %v4509_v45 }
 0x28c   : > { %3523 = vpow2.f32 %v1585_v48  ;;  %v4527_v25 = vmax.f32 %v4446_v4, %v4519_v26  ;;  %v1679_v29 = vmul.f32 1.442695, %v1661_v41  ;;  %v1727_v47 = vmul.f32 1.442695, %v1709_v1 }
 0x28d   : > { %3525 = vpow2.f32 %v1633_v38  ;;  %v4529_v44 = vpop.f32.mrb[56].mxu1  ;;  %v1567_v31 = vsub.f32 %v4338_v56, %v4517_v55  ;;  %v1615_v50 = vsub.f32 %v4380_v13, %v4517_v55  ;;  %v1663_v4 = vsub.f32 %v4433_v46, %v4517_v55 }
 0x28e   : > { %v4531_v27 = vpop.eup %3507  ;;  %3527 = vpow2.f32 %v1681_v23  ;;  %v4535_v33 = vpop.f32.mrb[57].mxu1  ;;  %v1711_v37 = vsub.f32 %v4500_v2, %v4517_v55  ;;  %v1589_v56 = vmul.f32 1.442695, %v1568_v32  ;;  %v1570_v3 = vsub.f32 %v4340_v57, %v4523_v42 }
 0x28f   : > { %v4537_v35 = vpop.eup %3509  ;;  %3529 = vpow2.f32 %v1729_v20  ;;  %v1637_v13 = vmul.f32 1.442695, %v1616_v43  ;;  %v1685_v5 = vmul.f32 1.442695, %v1664_v54  ;;  %v1618_v30 = vsub.f32 %v4384_v15, %v4523_v42 }
 0x290   : > { %v4545_v39 = vpop.eup %3511  ;;  %v1756_v52 = vadd.f32 %v4537_v35, %v4531_v27  ;;  %3531 = vpow2.f32 %v1583_v22  ;;  %v1666_v57 = vsub.f32 %v4438_v49, %v4523_v42  ;;  %v1714_v34 = vsub.f32 %v4509_v45, %v4523_v42 }
 0x291   : > { %v4551_v0 = vpop.eup %3513  ;;  %3533 = vpow2.f32 %v1631_v11  ;;  %v4558_v28 = vpop.f32.mrb[58].mxu1  ;;  %v1569_v2 = vsub.f32 %v4342_v58, %v4527_v25  ;;  %v1733_v7 = vmul.f32 1.442695, %v1712_v9  ;;  %v1587_v49 = vmul.f32 1.442695, %v1567_v31 }
 0x292   : > { %v4553_v53 = vpop.eup %3515  ;;  %v1772_v46 = vadd.f32 %v4545_v39, %v1756_v52  ;;  %3535 = vpow2.f32 %v1679_v29  ;;  %v4568_v36 = vpop.f32.mrb[59].mxu1  ;;  %v1635_v41 = vmul.f32 1.442695, %v1615_v50  ;;  %v1617_v32 = vsub.f32 %v4388_v17, %v4527_v25 }
 0x293   : > { %v4560_v63 = vpop.eup %3517  ;;  %3537 = vpow2.f32 %v1727_v47  ;;  %v1665_v43 = vsub.f32 %v4443_v51, %v4527_v25  ;;  %v1713_v20 = vsub.f32 %v4519_v26, %v4527_v25  ;;  %v4592_v22 = vmax.f32 %v4451_v8, %v4529_v44 }
 0x294   : > { %v4570_v48 = vpop.eup %3519  ;;  %v1788_v15 = vadd.f32 %v4551_v0, %v1772_v46  ;;  %v1755_v38 = vadd.f32 %v4560_v63, %v4553_v53  ;;  %3539 = vpow2.f32 %v1589_v56  ;;  %v4596_v54 = vmax.f32 %v4456_v12, %v4535_v33 }
 0x295   : > { %v4575_v40 = vpop.eup %3521  ;;  %3541 = vpow2.f32 %v1637_v13  ;;  %v4584_v45 = vpop.f32.mrb[60].mxu1  ;;  %v1683_v11 = vmul.f32 1.442695, %v1663_v4  ;;  %v1731_v8 = vmul.f32 1.442695, %v1711_v37  ;;  %v1572_v12 = vsub.f32 %v4344_v59, %v4592_v22 }
 0x296   : > { %v4577_v1 = vpop.eup %3523  ;;  %3543 = vrcp.f32 %v1788_v15  ;;  %v1771_v58 = vadd.f32 %v4570_v48, %v1755_v38  ;;  %v4598_v17 = vpop.f32.mrb[61].mxu1  ;;  %v1593_v42 = vmul.f32 1.442695, %v1570_v3  ;;  %v1620_v31 = vsub.f32 %v4392_v19, %v4592_v22 }
 0x297   : > { %v4586_v23 = vpop.eup %3525  ;;  %3545 = vpow2.f32 %v1685_v5  ;;  %v1668_v50 = vsub.f32 %v4448_v6, %v4592_v22  ;;  %v1641_v52 = vmul.f32 1.442695, %v1618_v30  ;;  %v1716_v59 = vsub.f32 %v4529_v44, %v4592_v22 }
 0x298   : > { %v4600_v9 = vpop.eup %3527  ;;  %v1787_v51 = vadd.f32 %v4575_v40, %v1771_v58  ;;  %v1758_v55 = vadd.f32 %v4586_v23, %v4577_v1  ;;  %3547 = vpow2.f32 %v1733_v7  ;;  %v1571_v56 = vsub.f32 %v4346_v60, %v4596_v54 }
 0x299   : > { %v4605_v26 = vpop.eup %3529  ;;  %3549 = vpow2.f32 %v1587_v49  ;;  %v4609_v25 = vpop.f32.mrb[62].mxu1  ;;  %v1689_v6 = vmul.f32 1.442695, %v1666_v57  ;;  %v1737_v5 = vmul.f32 1.442695, %v1714_v34  ;;  %v1619_v44 = vsub.f32 %v4396_v21, %v4596_v54 }
 0x29a   : > { %5546 = vst [vmem:[#allocation27_spill] sm:$0xff] %v4609_v25  ;;  %v4611_v29 = vpop.eup %3531  ;;  %3551 = vrcp.f32 %v1787_v51  ;;  %v1774_v47 = vadd.f32 %v4600_v9, %v1758_v55  ;;  %v4618_v4 = vpop.f32.mrb[63].mxu1  ;;  %v1591_v30 = vmul.f32 1.442695, %v1569_v2  ;;  %v1639_v15 = vmul.f32 1.442695, %v1617_v32 }
 0x29b   : > { %v4620_v37 = vpop.eup %3533  ;;  %3553 = vpow2.f32 %v1635_v41  ;;  %v1667_v7 = vsub.f32 %v4453_v10, %v4596_v54  ;;  %v1715_v57 = vsub.f32 %v4535_v33, %v4596_v54  ;;  %v4646_v34 = vmax.f32 %v4461_v16, %v4558_v28 }
 0x29c   : > { %v4626_v3 = vpop.eup %3535  ;;  %v1790_v13 = vadd.f32 %v4605_v26, %v1774_v47  ;;  %v1757_v19 = vadd.f32 %v4620_v37, %v4611_v29  ;;  %3555 = vpow2.f32 %v1683_v11  ;;  %v4650_v2 = vmax.f32 %v4466_v18, %v4568_v36 }
 0x29d   : > { %v4631_v46 = vpop.eup %3537  ;;  %3557 = vpow2.f32 %v1731_v8  ;;  %v1687_v58 = vmul.f32 1.442695, %v1665_v43  ;;  %v1735_v33 = vmul.f32 1.442695, %v1713_v20  ;;  %v1597_v22 = vmul.f32 1.442695, %v1572_v12 }
 0x29e   : > { %v4633_v38 = vpop.eup %3539  ;;  %3559 = vrcp.f32 %v1790_v13  ;;  %v1773_v60 = vadd.f32 %v4626_v3, %v1757_v19  ;;  %v1574_v16 = vsub.f32 %v4348_v61, %v4646_v34  ;;  %v1622_v51 = vsub.f32 %v4400_v24, %v4646_v34 }
 0x29f   : > { %v4640_v49 = vpop.eup %3541  ;;  %3561 = vpow2.f32 %v1593_v42  ;;  %v1670_v55 = vsub.f32 %v4458_v14, %v4646_v34  ;;  %v1645_v11 = vmul.f32 1.442695, %v1620_v31  ;;  %v1718_v20 = vsub.f32 %v4558_v28, %v4646_v34  ;;  %v5547_v31 = vld [vmem:[#allocation13_spill] sm:$0xff]  ;;  %v5549_v28 = vld [vmem:[#allocation18_spill] sm:$0xff] }
 0x2a0   : > { %v4652_v41 = vpop.eup %3543  ;;  %v1789_v21 = vadd.f32 %v4631_v46, %v1773_v60  ;;  %v1760_v10 = vadd.f32 %v4640_v49, %v4633_v38  ;;  %3563 = vpow2.f32 %v1641_v52  ;;  %v1573_v61 = vsub.f32 %v4350_v62, %v4650_v2 }
 0x2a1   : > { %v4657_v32 = vpop.eup %3545  ;;  %3565 = vpow2.f32 %v1689_v6  ;;  %v1693_v12 = vmul.f32 1.442695, %v1668_v50  ;;  %v1741_v24 = vmul.f32 1.442695, %v1716_v59  ;;  %v1595_v14 = vmul.f32 1.442695, %v1571_v56 }
 0x2a2   : > { %v4661_v54 = vpop.eup %3547  ;;  %3567 = vrcp.f32 %v1789_v21  ;;  %v1776_v18 = vadd.f32 %v4657_v32, %v1760_v10  ;;  %v1643_v52 = vmul.f32 1.442695, %v1619_v44  ;;  %v1621_v13 = vsub.f32 %v5547_v31, %v4650_v2 }
 0x2a3   : > { %v4668_v43 = vpop.eup %3549  ;;  %3569 = vpow2.f32 %v1737_v5  ;;  %v1669_v6 = vsub.f32 %v5549_v28, %v4650_v2  ;;  %v1717_v50 = vsub.f32 %v4568_v36, %v4650_v2  ;;  %v1691_v56 = vmul.f32 1.442695, %v1667_v7  ;;  %v5551_v5 = vld [vmem:[#allocation20_spill] sm:$0xff]  ;;  %v5553_v36 = vld [vmem:[#allocation9_spill] sm:$0xff]  ;;  %v5554_v7 = vld [vmem:[#allocation14_spill] sm:$0xff] }
 0x2a4   : > { %v4674_v8 = vpop.eup %3551  ;;  %v1792_v42 = vadd.f32 %v4661_v54, %v1776_v18  ;;  %3571 = vpow2.f32 %v1591_v30  ;;  %v1560_v30 = vmax.f32 %v5551_v5, %v4584_v45  ;;  %v1739_v21 = vmul.f32 1.442695, %v1715_v57 }
 0x2a5   : > { %v4677_v47 = vpop.eup %3553  ;;  %3573 = vpow2.f32 %v1639_v15  ;;  %v5552_v15 = vld [vmem:[#allocation22_spill] sm:$0xff]  ;;  %v1601_v10 = vmul.f32 1.442695, %v1574_v16 }
 0x2a6   : > { %v4681_v19 = vpop.eup %3555  ;;  %3575 = vrcp.f32 %v1792_v42  ;;  %v1759_v62 = vadd.f32 %v4677_v47, %v4668_v43  ;;  %v4695_v60 = vmax.f32 %v5552_v15, %v4598_v17  ;;  %v1576_v2 = vsub.f32 %v5553_v36, %v1560_v30  ;;  %v5555_v42 = vld [vmem:[#allocation19_spill] sm:$0xff] }
 0x2a7   : > { %5548 = vst [vmem:[#allocation13_spill] sm:$0xff] %v4681_v19  ;;  %v4689_v59 = vpop.eup %3557  ;;  %3577 = vpow2.f32 %v1687_v58  ;;  %v1624_v58 = vsub.f32 %v5554_v7, %v1560_v30  ;;  %v1672_v31 = vsub.f32 %v5555_v42, %v1560_v30  ;;  %v1720_v15 = vsub.f32 %v4584_v45, %v1560_v30  ;;  %v5560_v30 = vld [vmem:[#allocation15_spill] sm:$0xff] }
 0x2a8   : > { %5550 = vst [vmem:[#allocation18_spill] sm:$0xff] %v4689_v59  ;;  %v4697_v44 = vpop.eup %3559  ;;  %v1775_v34 = vadd.f32 %v4681_v19, %v1759_v62  ;;  %3579 = vpow2.f32 %v1735_v33  ;;  %v5557_v33 = vld [vmem:[#allocation10_spill] sm:$0xff]  ;;  %v1649_v62 = vmul.f32 1.442695, %v1622_v51  ;;  %v1697_v36 = vmul.f32 1.442695, %v1670_v55 }
 0x2a9   : > { %v4700_v18 = vpop.eup %3561  ;;  %3581 = vpow2.f32 %v1597_v22  ;;  %v1575_v57 = vsub.f32 %v5557_v33, %v4695_v60  ;;  %v1745_v42 = vmul.f32 1.442695, %v1718_v20  ;;  %v1599_v19 = vmul.f32 1.442695, %v1573_v61  ;;  %v5562_v20 = vld [vmem:[#allocation24_spill] sm:$0xff] }
 0x2aa   : > { %v4705_v28 = vpop.eup %3563  ;;  %v1791_v5 = vadd.f32 %v4689_v59, %v1775_v34  ;;  %3583 = vpow2.f32 %v1645_v11  ;;  %v4717_v34 = vmul.f32 1.442695, %v1621_v13  ;;  %v1623_v33 = vsub.f32 %v5560_v30, %v4695_v60  ;;  %v5563_v13 = vld [vmem:[#allocation26_spill] sm:$0xff] }
 0x2ab   : > { %5556 = vst [vmem:[#allocation20_spill] sm:$0xff] %v4705_v28  ;;  %v4711_v16 = vpop.eup %3565  ;;  %v1762_v22 = vadd.f32 %v4705_v28, %v4700_v18  ;;  %3585 = vpow2.f32 %v1693_v12  ;;  %v5561_v28 = vld [vmem:[#allocation21_spill] sm:$0xff]  ;;  %v1719_v55 = vsub.f32 %v4598_v17, %v4695_v60  ;;  %v4732_v61 = vmax.f32 %v5562_v20, %v4609_v25  ;;  %v5565_v20 = vld [vmem:[#allocation11_spill] sm:$0xff] }
 0x2ac   : > { %5558 = vst [vmem:[#allocation22_spill] sm:$0xff] %v4711_v16  ;;  %v4715_v7 = vpop.eup %3567  ;;  %3587 = vrcp.f32 %v1791_v5  ;;  %v1671_v12 = vsub.f32 %v5561_v28, %v4695_v60  ;;  %v4736_v5 = vmax.f32 %v5563_v13, %v4618_v4  ;;  %v1695_v28 = vmul.f32 1.442695, %v1669_v6  ;;  %v5567_v6 = vld [vmem:[#allocation23_spill] sm:$0xff] }
 0x2ad   : > { %v4719_v11 = vpop.eup %3569  ;;  %v1778_v45 = vadd.f32 %v4711_v16, %v1762_v22  ;;  %3589 = vpow2.f32 %v1741_v24  ;;  %v4741_v30 = vmul.f32 1.442695, %v1717_v50  ;;  %v4747_v60 = vmul.f32 1.442695, %v1576_v2 }
 0x2ae   : > { %5559 = vst [vmem:[#allocation9_spill] sm:$0xff] %v4719_v11  ;;  %v4726_v51 = vpop.eup %3571  ;;  %3591 = vpow2.f32 %v1595_v14  ;;  %v1578_v13 = vsub.f32 %v5565_v20, %v4732_v61  ;;  %v4762_v2 = vmul.f32 1.442695, %v1624_v58  ;;  %v4772_v50 = vmul.f32 1.442695, %v1575_v57  ;;  %v5569_v58 = vld [vmem:[#allocation17_spill] sm:$0xff] }
 0x2af   : > { %v4738_v24 = vpop.eup %3573  ;;  %v1794_v22 = vadd.f32 %v4719_v11, %v1778_v45  ;;  %3593 = vpow2.f32 %v1643_v52  ;;  %v4768_v52 = vmul.f32 1.442695, %v1672_v31  ;;  %v4770_v45 = vmul.f32 1.442695, %v1720_v15 }
 0x2b0   : > { %5564 = vst [vmem:[#allocation14_spill] sm:$0xff] %v4738_v24  ;;  %v4743_v14 = vpop.eup %3575  ;;  %v1761_v17 = vadd.f32 %v4738_v24, %v4726_v51  ;;  %3595 = vpow2.f32 %v1691_v56  ;;  %v4800_v15 = vmul.f32 1.442695, %v1719_v55  ;;  %v4802_v31 = vmul.f32 1.442695, %v1578_v13 }
 0x2b1   : > { %v4751_v16 = vpop.eup %3577  ;;  %3597 = vrcp.f32 %v1794_v22  ;;  %v2059_v55 = vmul.f32 %v4674_v8, %v4570_v48  ;;  %v4836_v48 = vmul.f32 %v4697_v44, %v4586_v23 }
 0x2b2   : > { %v4759_v59 = vpop.eup %3579  ;;  %v1777_v56 = vadd.f32 %v4751_v16, %v1761_v17  ;;  %3599 = vpow2.f32 %v1739_v21  ;;  %v4777_v21 = vmul.f32 1.442695, %v1623_v33  ;;  %v1932_v33 = vmul.f32 %v4652_v41, %v4537_v35 }
 0x2b3   : > { %v4766_v22 = vpop.eup %3581  ;;  %3601 = vpow2.f32 %v1601_v10  ;;  %v2060_v35 = vmul.f32 %v4652_v41, %v4545_v39 }
 0x2b4   : > { %v4774_v11 = vpop.eup %3583  ;;  %v1793_v25 = vadd.f32 %v4759_v59, %v1777_v56  ;;  %3603 = vpow2.f32 %v1649_v62  ;;  %v4791_v62 = vmul.f32 1.442695, %v1671_v12  ;;  %v1820_v56 = vmul.f32 %v4652_v41, %v4531_v27  ;;  %1954 = vperm.xlu1 %3378, %v1932_v33  }
 0x2b5   : > { %v4781_v24 = vpop.eup %3585  ;;  %v1764_v10 = vadd.f32 %v4774_v11, %v4766_v22  ;;  %3605 = vpow2.f32 %v1697_v36  ;;  %v1819_v27 = vmul.f32 %v4674_v8, %v4553_v53  ;;  %v4828_v53 = vmul.f32 %v4674_v8, %v4575_v40 }
 0x2b6   : > { %v4789_v20 = vpop.eup %3587  ;;  %3607 = vrcp.f32 %v1793_v25  ;;  %1842 = vperm.xlu0 %3377, %v1820_v56   ;;  %v2188_v25 = vmul.f32 %v4652_v41, %v4551_v0  ;;  %v1822_v0 = vmul.f32 %v4697_v44, %v4577_v1  ;;  %v4848_v40 = vmul.f32 %v4697_v44, %v4600_v9 }
 0x2b7   : > { %v4797_v17 = vpop.eup %3589  ;;  %v1780_v36 = vadd.f32 %v4781_v24, %v1764_v10  ;;  %3609 = vpow2.f32 %v1745_v42 }
 0x2b8   : > { %v4804_v57 = vpop.eup %3591  ;;  %3611 = vpow2.f32 %v1599_v19  ;;  %v1931_v19 = vmul.f32 %v4674_v8, %v4560_v63  ;;  %v4832_v63 = vmul.f32 %v4715_v7, %v4611_v29  ;;  %2082 = vperm.xlu1 %3378, %v2060_v35   ;;  %v4862_v8 = vmul.f32 %v4715_v7, %v4620_v37 }
 0x2b9   : > { %v4812_v12 = vpop.eup %3593  ;;  %v1796_v42 = vadd.f32 %v4797_v17, %v1780_v36  ;;  %3613 = vpow2.f32 %v4717_v34  ;;  %v4840_v34 = vmul.f32 %v4743_v14, %v4633_v38  ;;  %v4858_v38 = vmul.f32 %v4697_v44, %v4605_v26 }
 0x2ba   : > { %v4820_v13 = vpop.eup %3595  ;;  %v1763_v39 = vadd.f32 %v4812_v12, %v4804_v57  ;;  %3615 = vpow2.f32 %v1695_v28  ;;  %1837 = vperm.xlu0 %3377, %v1819_v27   ;;  %v4878_v26 = vmul.f32 %v4743_v14, %v4640_v49  ;;  %v4887_v44 = vmul.f32 %v4743_v14, %v4657_v32  ;;  %v5575_v27 = vld [vmem:[#allocation9_spill] sm:$0xff] }
 0x2bb   : > { %v3598_v41 = vpop.eup %3597  ;;  %3617 = vrcp.f32 %v1796_v42  ;;  %v4895_v49 = vmul.f32 %v4789_v20, %v4668_v43  ;;  %v5573_v43 = vld [vmem:[#allocation20_spill] sm:$0xff] }
 0x2bc   : > { %v4842_v28 = vpop.eup %3599  ;;  %v1779_v1 = vadd.f32 %v4820_v13, %v1763_v39  ;;  %3619 = vpow2.f32 %v4741_v30  ;;  %v4851_v29 = vmul.f32 %v3598_v41, %v4700_v18  ;;  %v4866_v30 = vmul.f32 %v4715_v7, %v4626_v3  ;;  %2210 = vperm.xlu1 %3378, %v2188_v25  }
 0x2bd   : > { %v4853_v23 = vpop.eup %3601  ;;  %3621 = vpow2.f32 %v4747_v60  ;;  %v4874_v60 = vmul.f32 %v4715_v7, %v4631_v46  ;;  %v4899_v7 = vmul.f32 %v4789_v20, %v4677_v47  ;;  %v4914_v56 = vmul.f32 %v3598_v41, %v5573_v43  ;;  %v5574_v47 = vld [vmem:[#allocation22_spill] sm:$0xff] }
 0x2be   : > { %v4868_v9 = vpop.eup %3603  ;;  %v1795_v18 = vadd.f32 %v4842_v28, %v1779_v1  ;;  %3623 = vpow2.f32 %v4762_v2  ;;  %v4891_v2 = vmul.f32 %v4743_v14, %v4661_v54  ;;  %1949 = vperm.xlu0 %3377, %v1931_v19   ;;  %v5572_v14 = vld [vmem:[#allocation18_spill] sm:$0xff]  ;;  %v4920_v35 = vmul.f32 %v3598_v41, %v5574_v47 }
 0x2bf   : > { %v4880_v37 = vpop.eup %3605  ;;  %v1766_v3 = vadd.f32 %v4868_v9, %v4853_v23  ;;  %3625 = vpow2.f32 %v4768_v52  ;;  %v5571_v52 = vld [vmem:[#allocation13_spill] sm:$0xff]  ;;  %v4911_v33 = vmul.f32 %v4789_v20, %v5572_v14  ;;  %v4923_v25 = vmul.f32 %v3598_v41, %v5575_v27  ;;  %v5576_v19 = vld [vmem:[#allocation14_spill] sm:$0xff] }
 0x2c0   : > { %v3608_v46 = vpop.eup %3607  ;;  %3627 = vrcp.f32 %v1795_v18  ;;  %v4903_v32 = vmul.f32 %v4789_v20, %v5571_v52  ;;  %1852 = vperm.xlu1 %3378, %v1822_v0  }
 0x2c1   : > { %v4905_v10 = vpop.eup %3609  ;;  %v1782_v54 = vadd.f32 %v4880_v37, %v1766_v3  ;;  %3629 = vpow2.f32 %v4770_v45  ;;  %v4926_v42 = vmul.f32 %v3608_v46, %v4726_v51  ;;  %v4933_v39 = vmul.f32 %v3608_v46, %v5576_v19  ;;  %v5577_v51 = vld [vmem:[#allocation16_spill] sm:$0xff] }
 0x2c2   : > { %v4916_v36 = vpop.eup %3611  ;;  %3631 = vpow2.f32 %v4772_v50  ;;  %v4936_v50 = vmul.f32 %v3608_v46, %v4751_v16  ;;  %v5578_v18 = vsub.f32 %v5577_v51, %v4732_v61  ;;  %2077 = vperm.xlu0 %3377, %v2059_v55   ;;  %v5579_v16 = vsub.f32 %v5567_v6, %v4732_v61  ;;  %v5585_v51 = vld [vmem:[#allocation25_spill] sm:$0xff] }
 0x2c3   : > { %v4928_v45 = vpop.eup %3613  ;;  %v1798_v20 = vadd.f32 %v4905_v10, %v1782_v54  ;;  %3633 = vpow2.f32 %v4777_v21  ;;  %v4947_v21 = vmul.f32 %v3608_v46, %v4759_v59  ;;  %v5580_v59 = vld [vmem:[#allocation27_spill] sm:$0xff] }
 0x2c4   : > { %v4938_v1 = vpop.eup %3615  ;;  %v1765_v41 = vadd.f32 %v4928_v45, %v4916_v36  ;;  %3635 = vpow2.f32 %v4791_v62  ;;  %v1657_v3 = vmul.f32 1.442695, %v5578_v18  ;;  %v1705_v54 = vmul.f32 1.442695, %v5579_v16  ;;  %1847 = vperm.xlu1 %3378, %v4832_v63  }
 0x2c5   : > { %v3618_v52 = vpop.eup %3617  ;;  %3637 = vrcp.f32 %v1798_v20  ;;  %v5581_v46 = vsub.f32 %v5580_v59, %v4732_v61  ;;  %v5586_v18 = vsub.f32 %v5585_v51, %v4736_v5 }
 0x2c6   : > { %v4952_v14 = vpop.eup %3619  ;;  %v1781_v43 = vadd.f32 %v4938_v1, %v1765_v41  ;;  %3639 = vpow2.f32 %v4800_v15  ;;  %v1828_v62 = vmul.f32 %v3618_v52, %v4766_v22  ;;  %v4958_v55 = vmul.f32 %v3618_v52, %v4774_v11  ;;  %v5582_v11 = vld [vmem:[#allocation12_spill] sm:$0xff]  ;;  %2205 = vperm.xlu0 %3377, %v4828_v53  }
 0x2c7   : > { %v4960_v0 = vpop.eup %3621  ;;  %3641 = vpow2.f32 %v4802_v31  ;;  %v1753_v6 = vmul.f32 1.442695, %v5581_v46  ;;  %v4967_v47 = vmul.f32 %v3618_v52, %v4781_v24  ;;  %v4970_v27 = vmul.f32 %v3618_v52, %v4797_v17 }
 0x2c8   : > { %v4972_v15 = vpop.eup %3623  ;;  %v1797_v22 = vadd.f32 %v4952_v14, %v1781_v43  ;;  %3643 = vpow2.f32 %v1657_v3  ;;  %v5583_v20 = vsub.f32 %v5582_v11, %v4736_v5  ;;  %v5584_v17 = vsub.f32 %v5569_v58, %v4736_v5  ;;  %1862 = vperm.xlu1 %3378, %v4840_v34  }
 0x2c9   : > { %v4980_v61 = vpop.eup %3625  ;;  %v1768_v24 = vadd.f32 %v4972_v15, %v4960_v0  ;;  %3645 = vpow2.f32 %v1705_v54  ;;  %v1703_v3 = vmul.f32 1.442695, %v5586_v18 }
 0x2ca   : > { %v1607_v19 = vmul.f32 1.442695, %v5583_v20  ;;  %v1655_v31 = vmul.f32 1.442695, %v5584_v17  ;;  %v3628_v41 = vpop.eup %3627  ;;  %3647 = vrcp.f32 %v1797_v22  ;;  %1964 = vperm.xlu0 %3377, %v4836_v48  }
 0x2cb   : > { %v3630_v52 = vpop.eup %3629  ;;  %v1784_v53 = vadd.f32 %v4980_v61, %v1768_v24  ;;  %3649 = vpow2.f32 %v1753_v6  ;;  %v4992_v63 = vmul.f32 %v3628_v41, %v4804_v57  ;;  %v4995_v16 = vmul.f32 %v3628_v41, %v4812_v12 }
 0x2cc   : > { %v3632_v54 = vpop.eup %3631  ;;  %3651 = vpow2.f32 %v1607_v19  ;;  %v5000_v58 = vmul.f32 %v3628_v41, %v4820_v13  ;;  %v5003_v43 = vmul.f32 %v3628_v41, %v4842_v28  ;;  %v5587_v57 = vsub.f32 %v4618_v4, %v4736_v5  ;;  %1872 = vperm.xlu1 %3378, %v4851_v29  }
 0x2cd   : > { %v3634_v59 = vpop.eup %3633  ;;  %v1800_v46 = vadd.f32 %v3630_v52, %v1784_v53  ;;  %3653 = vpow2.f32 %v1655_v31 }
 0x2ce   : > { %v1751_v12 = vmul.f32 1.442695, %v5587_v57  ;;  %v3636_v6 = vpop.eup %3635  ;;  %v1767_v22 = vadd.f32 %v3634_v59, %v3632_v54  ;;  %3655 = vpow2.f32 %v1703_v3  ;;  %2092 = vperm.xlu0 %3377, %v4848_v40  }
 0x2cf   : > { %v3638_v11 = vpop.eup %3637  ;;  %3657 = vrcp.f32 %v1800_v46 }
 0x2d0   : > { %v3640_v48 = vpop.eup %3639  ;;  %v1783_v34 = vadd.f32 %v3636_v6, %v1767_v22  ;;  %v1830_v13 = vmul.f32 %v3638_v11, %v4853_v23  ;;  %v1942_v28 = vmul.f32 %v3638_v11, %v4868_v9  ;;  %3659 = vpow2.f32 %v1751_v12  ;;  %1882 = vperm.xlu1 %3378, %v1828_v62  }
 0x2d1   : > { %v3642_v20 = vpop.eup %3641  ;;  %v2070_v4 = vmul.f32 %v3638_v11, %v4880_v37  ;;  %v2198_v5 = vmul.f32 %v3638_v11, %v4905_v10 }
 0x2d2   : > { %v3644_v19 = vpop.eup %3643  ;;  %v1799_v24 = vadd.f32 %v3640_v48, %v1783_v34  ;;  %2220 = vperm.xlu0 %3377, %v4858_v38  }
 0x2d3   : > { %v3646_v17 = vpop.eup %3645  ;;  %v1770_v31 = vadd.f32 %v3644_v19, %v3642_v20 }
 0x2d4   : > { %v3648_v41 = vpop.eup %3647  ;;  %3661 = vrcp.f32 %v1799_v24  ;;  %1994 = vperm.xlu1 %3378, %v4958_v55  }
 0x2d5   : > { %v3650_v40 = vpop.eup %3649  ;;  %v1786_v29 = vadd.f32 %v3646_v17, %v1770_v31  ;;  %v1941_v23 = vmul.f32 %v3648_v41, %v4928_v45  ;;  %v2069_v9 = vmul.f32 %v3648_v41, %v4938_v1  ;;  %v2197_v51 = vmul.f32 %v3648_v41, %v4952_v14  ;;  %v3705_v31 = vld [vmem:[%s4115_s20 + $0x108] sm:$0xff] }
 0x2d6   : > { %v3652_v37 = vpop.eup %3651  ;;  %v5019_v10 = vmul.f32 %v3648_v41, %v4916_v36  ;;  %1959 = vperm.xlu0 %3377, %v4862_v8  }
 0x2d7   : > { %v3654_v18 = vpop.eup %3653  ;;  %v1802_v3 = vadd.f32 %v3650_v40, %v1786_v29 }
 0x2d8   : > { %v3656_v53 = vpop.eup %3655  ;;  %v1769_v46 = vadd.f32 %v3654_v18, %v3652_v37  ;;  %2122 = vperm.xlu1 %3378, %v4967_v47  }
 0x2d9   : > { %v3658_v38 = vpop.eup %3657  ;;  %3663 = vrcp.f32 %v1802_v3 }
 0x2da   : > { %v1785_v62 = vadd.f32 %v3656_v53, %v1769_v46  ;;  %v1832_v45 = vmul.f32 %v3658_v38, %v4960_v0  ;;  %v1944_v1 = vmul.f32 %v3658_v38, %v4972_v15  ;;  %v2072_v14 = vmul.f32 %v3658_v38, %v4980_v61  ;;  %v3660_v57 = vpop.eup %3659  ;;  %2087 = vperm.xlu0 %3377, %v4866_v30  }
 0x2db   : > { %v2200_v36 = vmul.f32 %v3658_v38, %v3630_v52  ;;  %v3709_v38 = vld [vmem:[%s4115_s20 + $0x118] sm:$0xff] }
 0x2dc   : > { %v1801_v12 = vadd.f32 %v3660_v57, %v1785_v62  ;;  %2250 = vperm.xlu1 %3378, %v4970_v27  }
 0x2de   : > { %v3662_v22 = vpop.eup %3661  ;;  %3665 = vrcp.f32 %v1801_v12  ;;  %2215 = vperm.xlu0 %3377, %v4874_v60  }
 0x2df   : > { %v1943_v8 = vmul.f32 %v3662_v22, %v3634_v59  ;;  %v2071_v55 = vmul.f32 %v3662_v22, %v3636_v6  ;;  %v2199_v11 = vmul.f32 %v3662_v22, %v3640_v48  ;;  %v1831_v34 = vmul.f32 %v3662_v22, %v3632_v54 }
 0x2e0   : > { %1892 = vperm.xlu1 %3378, %v1830_v13   ;;  %v3703_v13 = vld [vmem:[%s4115_s20 + $0x88] sm:$0xff] }
 0x2e2   : > { %1974 = vperm.xlu0 %3377, %v4878_v26  }
 0x2e3   : > { %v3664_v0 = vpop.eup %3663 }
 0x2e4   : > { %v1834_v15 = vmul.f32 %v3664_v0, %v3642_v20  ;;  %v1946_v61 = vmul.f32 %v3664_v0, %v3644_v19  ;;  %v2074_v52 = vmul.f32 %v3664_v0, %v3646_v17  ;;  %v2202_v30 = vmul.f32 %v3664_v0, %v3650_v40  ;;  %2004 = vperm.xlu1 %3378, %v1942_v28   ;;  %v3704_v20 = vld [vmem:[%s4115_s20 + $0x8] sm:$0xff] }
 0x2e6   : > { %2102 = vperm.xlu0 %3377, %v4887_v44  }
 0x2e8   : > { %v3666_v24 = vpop.eup %3665  ;;  %2132 = vperm.xlu1 %3378, %v2070_v4  }
 0x2e9   : > { %v1945_v47 = vmul.f32 %v3666_v24, %v3654_v18  ;;  %v2073_v59 = vmul.f32 %v3666_v24, %v3656_v53  ;;  %v2201_v6 = vmul.f32 %v3666_v24, %v3660_v57  ;;  %v1833_v54 = vmul.f32 %v3666_v24, %v3652_v37  ;;  %v3708_v53 = vld [vmem:[%s4115_s20 + $0x18] sm:$0xff]  ;;  %v3714_v24 = vld [vmem:[%s4115_s20 + $0x48] sm:$0xff] }
 0x2ea   : > { %2230 = vperm.xlu0 %3377, %v4891_v2  }
 0x2ec   : > { %2260 = vperm.xlu1 %3378, %v2198_v5  }
 0x2ee   : > { %1857 = vperm.xlu0 %3377, %v4895_v49  }
 0x2f0   : > { %1999 = vperm.xlu1 %3378, %v1941_v23   ;;  %v3706_v23 = vld [vmem:[%s4115_s20 + $0x188] sm:$0xff] }
 0x2f2   : > { %1969 = vperm.xlu0 %3377, %v4899_v7  }
 0x2f4   : > { %2127 = vperm.xlu1 %3378, %v2069_v9  }
 0x2f6   : > { %2097 = vperm.xlu0 %3377, %v4903_v32  }
 0x2f8   : > { %2255 = vperm.xlu1 %3378, %v2197_v51   ;;  %v3707_v51 = vld [vmem:[%s4115_s20 + $0x98] sm:$0xff] }
 0x2fa   : > { %2225 = vperm.xlu0 %3377, %v4911_v33  }
 0x2fc   : > { %1902 = vperm.xlu1 %3378, %v1832_v45  }
 0x2fe   : > { %1984 = vperm.xlu0 %3377, %v4914_v56  }
 0x300   : > { %2014 = vperm.xlu1 %3378, %v1944_v1   ;;  %v3710_v1 = vld [vmem:[%s4115_s20 + $0x198] sm:$0xff] }
 0x302   : > { %2112 = vperm.xlu0 %3377, %v4920_v35  }
 0x304   : > { %2142 = vperm.xlu1 %3378, %v2072_v14  }
 0x306   : > { %2240 = vperm.xlu0 %3377, %v4923_v25   ;;  %v3699_v25 = vld [vmem:[%s4115_s20 + $0x80] sm:$0xff] }
 0x308   : > { %2270 = vperm.xlu1 %3378, %v2200_v36  }
 0x30a   : > { %1867 = vperm.xlu0 %3377, %v4926_v42  }
 0x30c   : > { %2009 = vperm.xlu1 %3378, %v1943_v8   ;;  %v3711_v8 = vld [vmem:[%s4115_s20 + $0x90] sm:$0xff] }
 0x30e   : > { %1979 = vperm.xlu0 %3377, %v4933_v39   ;;  %v3700_v39 = vld [vmem:[%s4115_s20] sm:$0xff] }
 0x310   : > { %2137 = vperm.xlu1 %3378, %v2071_v55  }
 0x312   : > { %2107 = vperm.xlu0 %3377, %v4936_v50  }
 0x314   : > { %2265 = vperm.xlu1 %3378, %v2199_v11   ;;  %v3712_v11 = vld [vmem:[%s4115_s20 + $0xc8] sm:$0xff] }
 0x316   : > { %2235 = vperm.xlu0 %3377, %v4947_v21   ;;  %v3701_v21 = vld [vmem:[%s4115_s20 + $0x100] sm:$0xff] }
 0x318   : > { %1912 = vperm.xlu1 %3378, %v1834_v15  }
 0x31a   : > { %1877 = vperm.xlu0 %3377, %v4992_v63  }
 0x31c   : > { %2024 = vperm.xlu1 %3378, %v1946_v61  }
 0x31e   : > { %1989 = vperm.xlu0 %3377, %v4995_v16  }
 0x320   : > { %2152 = vperm.xlu1 %3378, %v2074_v52   ;;  %v3713_v52 = vld [vmem:[%s4115_s20 + $0x10] sm:$0xff] }
 0x322   : > { %2117 = vperm.xlu0 %3377, %v5000_v58  }
 0x324   : > { %2019 = vperm.xlu1 %3378, %v1945_v47  }
 0x326   : > { %2245 = vperm.xlu0 %3377, %v5003_v43   ;;  %v3702_v43 = vld [vmem:[%s4115_s20 + $0x180] sm:$0xff] }
 0x328   : > { %2147 = vperm.xlu1 %3378, %v2073_v59   ;;  %v3715_v59 = vld [vmem:[%s4115_s20 + $0x110] sm:$0xff] }
 0x32a   : > { %1887 = vperm.xlu0 %3377, %v5019_v10  }
 0x32c   : > { %2275 = vperm.xlu1 %3378, %v2201_v6  }
 0x32e   : > { %1897 = vperm.xlu0 %3377, %v1831_v34  }
 0x330   : > { %2280 = vperm.xlu1 %3378, %v2202_v30  }
 0x332   : > { %1907 = vperm.xlu0 %3377, %v1833_v54   ;;  %v3716_v54 = vld [vmem:[%s4115_s20 + $0x148] sm:$0xff] }
 0x333   : > { %v1955_v60 = vpop.permute.xlu1 %1954 }
 0x334   : > { %v2028_v28 = vmul.f32 %v3703_v13, %v1955_v60 }
 0x335   : > { %v1843_v26 = vpop.permute.xlu0 %1842 }
 0x336   : > { %v1916_v4 = vmul.f32 %v3704_v20, %v1843_v26 }
 0x337   : > { %v2083_v44 = vpop.permute.xlu1 %2082 }
 0x338   : > { %v2156_v41 = vmul.f32 %v3705_v31, %v2083_v44  ;;  %v2044_v29 = vadd.f32 %v2028_v28, %v1916_v4  ;;  %v3721_v28 = vld [vmem:[%s4115_s20 + $0x128] sm:$0xff] }
 0x339   : > { %v1838_v2 = vpop.permute.xlu0 %1837 }
 0x33a   : > { %v1915_v50 = vmul.f32 %v3700_v39, %v1838_v2  ;;  %v2172_v3 = vadd.f32 %v2156_v41, %v2044_v29  ;;  %v3722_v41 = vld [vmem:[%s4115_s20 + $0x1a8] sm:$0xff] }
 0x33b   : > { %v2211_v49 = vpop.permute.xlu1 %2210 }
 0x33c   : > { %v2284_v9 = vmul.f32 %v3706_v23, %v2211_v49 }
 0x33d   : > { %v1950_v7 = vpop.permute.xlu0 %1949 }
 0x33e   : > { %v2027_v42 = vmul.f32 %v3699_v25, %v1950_v7  ;;  %v5068_v57 = vadd.f32 %v2284_v9, %v2172_v3 }
 0x33f   : > { %v1853_v33 = vpop.permute.xlu1 %1852 }
 0x340   : > { %v2043_v58 = vadd.f32 %v2027_v42, %v1915_v50  ;;  %v1918_v46 = vmul.f32 %v3708_v53, %v1853_v33  ;;  %v3717_v33 = vld [vmem:[%s4115_s20 + $0x190] sm:$0xff] }
 0x341   : > { %v2078_v32 = vpop.permute.xlu0 %2077 }
 0x342   : > { %v2155_v27 = vmul.f32 %v3701_v21, %v2078_v32 }
 0x343   : > { %v1848_v35 = vpop.permute.xlu1 %1847 }
 0x344   : > { %v2171_v5 = vadd.f32 %v2155_v27, %v2043_v58  ;;  %v1917_v30 = vmul.f32 %v3713_v52, %v1848_v35  ;;  %v3718_v35 = vld [vmem:[%s4115_s20 + $0x1c8] sm:$0xff] }
 0x345   : > { %v2206_v56 = vpop.permute.xlu0 %2205  ;;  %v3719_v27 = vld [vmem:[%s4115_s20 + $0xa8] sm:$0xff] }
 0x346   : > { %v2283_v48 = vmul.f32 %v3702_v43, %v2206_v56 }
 0x347   : > { %v5052_v16 = vpop.permute.xlu1 %1862 }
 0x348   : > { %v5060_v40 = vadd.f32 %v2283_v48, %v2171_v5  ;;  %v3720_v48 = vld [vmem:[%s4115_s20 + $0x28] sm:$0xff] }
 0x349   : > { %v1965_v63 = vpop.permute.xlu0 %1964  ;;  %v1920_v13 = vmul.f32 %v3720_v48, %v5052_v16 }
 0x34a   : > { %v2030_v37 = vmul.f32 %v3707_v51, %v1965_v63 }
 0x34b   : > { %v5057_v17 = vpop.permute.xlu1 %1872 }
 0x34c   : > { %v2046_v45 = vadd.f32 %v2030_v37, %v1918_v46  ;;  %v3724_v46 = vld [vmem:[%s4115_s20 + $0x20] sm:$0xff] }
 0x34d   : > { %v2093_v19 = vpop.permute.xlu0 %2092 }
 0x34e   : > { %v2158_v62 = vmul.f32 %v3709_v38, %v2093_v19 }
 0x34f   : > { %v1883_v18 = vpop.permute.xlu1 %1882 }
 0x350   : > { %v2174_v22 = vadd.f32 %v2158_v62, %v2046_v45  ;;  %v1924_v47 = vmul.f32 %v3714_v24, %v1883_v18  ;;  %v3725_v62 = vld [vmem:[%s4115_s20 + $0x120] sm:$0xff] }
 0x351   : > { %v2221_v10 = vpop.permute.xlu0 %2220  ;;  %2315 = vadd.xlane.f32.xlu0 %v5060_v40 }
 0x352   : > { %v2286_v14 = vmul.f32 %v3710_v1, %v2221_v10  ;;  %v3723_v10 = vld [vmem:[%s4115_s20 + $0xa0] sm:$0xff] }
 0x353   : > { %v1995_v12 = vpop.permute.xlu1 %1994 }
 0x354   : > { %2317 = vadd.xlane.f32.xlu1 %v5068_v57  ;;  %v2036_v34 = vmul.f32 %v3712_v11, %v1995_v12  ;;  %v5073_v0 = vadd.f32 %v2286_v14, %v2174_v22  ;;  %v3726_v22 = vld [vmem:[%s4115_s20 + $0x1a0] sm:$0xff] }
 0x355   : > { %v1960_v36 = vpop.permute.xlu0 %1959 }
 0x356   : > { %v2029_v55 = vmul.f32 %v3711_v8, %v1960_v36  ;;  %v2052_v44 = vadd.f32 %v2036_v34, %v1924_v47 }
 0x357   : > { %v2123_v61 = vpop.permute.xlu1 %2122 }
 0x358   : > { %v2164_v60 = vmul.f32 %v3716_v54, %v2123_v61  ;;  %2321 = vadd.xlane.f32.xlu1 %v5073_v0  ;;  %v2045_v26 = vadd.f32 %v2029_v55, %v1917_v30  ;;  %v3727_v54 = vld [vmem:[%s4115_s20 + $0xb0] sm:$0xff] }
 0x359   : > { %v2088_v15 = vpop.permute.xlu0 %2087 }
 0x35a   : > { %v2157_v6 = vmul.f32 %v3715_v59, %v2088_v15  ;;  %v2180_v32 = vadd.f32 %v2164_v60, %v2052_v44 }
 0x35b   : > { %v2251_v49 = vpop.permute.xlu1 %2250 }
 0x35c   : > { %v2173_v7 = vadd.f32 %v2157_v6, %v2045_v26  ;;  %v2292_v25 = vmul.f32 %v3718_v35, %v2251_v49 }
 0x35d   : > { %v2216_v2 = vpop.permute.xlu0 %2215 }
 0x35e   : > { %v2285_v56 = vmul.f32 %v3717_v33, %v2216_v2  ;;  %v5084_v39 = vadd.f32 %v2292_v25, %v2180_v32  ;;  %v3728_v2 = vld [vmem:[%s4115_s20 + $0x30] sm:$0xff]  ;;  %v3730_v33 = vld [vmem:[%s4115_s20 + $0xb8] sm:$0xff] }
 0x35f   : > { %v5086_v21 = vpop.permute.xlu1 %1892 }
 0x360   : > { %v5082_v42 = vadd.f32 %v2285_v56, %v2173_v7  ;;  %2333 = vadd.xlane.f32.xlu0 %v5084_v39  ;;  %v3729_v7 = vld [vmem:[%s4115_s20 + $0x130] sm:$0xff] }
 0x361   : > { %v1975_v50 = vpop.permute.xlu0 %1974 }
 0x362   : > { %2319 = vadd.xlane.f32.xlu1 %v5082_v42  ;;  %v2032_v63 = vmul.f32 %v3719_v27, %v1975_v50  ;;  %v3731_v27 = vld [vmem:[%s4115_s20 + $0x38] sm:$0xff] }
 0x363   : > { %v5091_v43 = vpop.permute.xlu1 %2004 }
 0x364   : > { %v2048_v4 = vadd.f32 %v2032_v63, %v1920_v13  ;;  %v1922_v63 = vmul.f32 %v3731_v27, %v5057_v17 }
 0x365   : > { %v2103_v58 = vpop.permute.xlu0 %2102 }
 0x366   : > { %v2160_v20 = vmul.f32 %v3721_v28, %v2103_v58  ;;  %v3732_v58 = vld [vmem:[%s4115_s20 + $0x138] sm:$0xff]  ;;  %v3733_v28 = vld [vmem:[%s4115_s20 + $0x1b0] sm:$0xff] }
 0x367   : > { %v5096_v19 = vpop.permute.xlu1 %2132 }
 0x368   : > { %v2176_v31 = vadd.f32 %v2160_v20, %v2048_v4 }
 0x369   : > { %v2231_v5 = vpop.permute.xlu0 %2230 }
 0x36a   : > { %v2288_v29 = vmul.f32 %v3722_v41, %v2231_v5  ;;  %v3734_v5 = vld [vmem:[%s4115_s20 + $0x1b8] sm:$0xff] }
 0x36b   : > { %v5101_v51 = vpop.permute.xlu1 %2260 }
 0x36c   : > { %v5099_v23 = vadd.f32 %v2288_v29, %v2176_v31 }
 0x36d   : > { %v1858_v9 = vpop.permute.xlu0 %1857 }
 0x36e   : > { %2325 = vadd.xlane.f32.xlu1 %v5099_v23  ;;  %v1919_v38 = vmul.f32 %v3724_v46, %v1858_v9 }
 0x36f   : > { %v5104_v37 = vpop.permute.xlu1 %1999 }
 0x371   : > { %v1970_v16 = vpop.permute.xlu0 %1969 }
 0x372   : > { %v2031_v18 = vmul.f32 %v3723_v10, %v1970_v16 }
 0x373   : > { %v5107_v53 = vpop.permute.xlu1 %2127 }
 0x374   : > { %v2047_v1 = vadd.f32 %v2031_v18, %v1919_v38 }
 0x375   : > { %v2098_v3 = vpop.permute.xlu0 %2097 }
 0x376   : > { %v2159_v45 = vmul.f32 %v3725_v62, %v2098_v3  ;;  %v3735_v3 = vld [vmem:[%s4115_s20 + $0xc0] sm:$0xff] }
 0x377   : > { %v5111_v36 = vpop.permute.xlu1 %2255 }
 0x378   : > { %v2175_v12 = vadd.f32 %v2159_v45, %v2047_v1  ;;  %v3736_v45 = vld [vmem:[%s4115_s20 + $0x40] sm:$0xff] }
 0x379   : > { %v2226_v14 = vpop.permute.xlu0 %2225 }
 0x37a   : > { %v2287_v8 = vmul.f32 %v3726_v22, %v2226_v14  ;;  %v3737_v14 = vld [vmem:[%s4115_s20 + $0x140] sm:$0xff]  ;;  %v3738_v22 = vld [vmem:[%s4115_s20 + $0xd8] sm:$0xff] }
 0x37b   : > { %v5116_v34 = vpop.permute.xlu1 %1902 }
 0x37c   : > { %v5114_v55 = vadd.f32 %v2287_v8, %v2175_v12  ;;  %v2038_v8 = vmul.f32 %v3738_v22, %v5091_v43  ;;  %v3753_v22 = vld [vmem:[%s4115_s20 + $0x160] sm:$0xff] }
 0x37d   : > { %v1985_v11 = vpop.permute.xlu0 %1984 }
 0x37e   : > { %2323 = vadd.xlane.f32.xlu1 %v5114_v55  ;;  %v2034_v56 = vmul.f32 %v3730_v33, %v1985_v11 }
 0x37f   : > { %v5119_v61 = vpop.permute.xlu1 %2014 }
 0x380   : > { %v2050_v4 = vadd.f32 %v2034_v56, %v1922_v63  ;;  %v3745_v63 = vld [vmem:[%s4115_s20 + $0x150] sm:$0xff] }
 0x381   : > { %v2113_v15 = vpop.permute.xlu0 %2112 }
 0x382   : > { %v2162_v48 = vmul.f32 %v3732_v58, %v2113_v15  ;;  %v2165_v58 = vmul.f32 %v3745_v63, %v5107_v53  ;;  %v3750_v53 = vld [vmem:[%s4115_s20 + $0xe0] sm:$0xff] }
 0x383   : > { %v5121_v30 = vpop.permute.xlu1 %2142 }
 0x384   : > { %v2178_v16 = vadd.f32 %v2162_v48, %v2050_v4  ;;  %v3746_v48 = vld [vmem:[%s4115_s20 + $0xe8] sm:$0xff] }
 0x385   : > { %v2241_v52 = vpop.permute.xlu0 %2240  ;;  %v3748_v4 = vld [vmem:[%s4115_s20 + $0x68] sm:$0xff] }
 0x386   : > { %v2290_v31 = vmul.f32 %v3734_v5, %v2241_v52  ;;  %v3739_v52 = vld [vmem:[%s4115_s20 + $0x58] sm:$0xff]  ;;  %v1928_v5 = vmul.f32 %v3748_v4, %v5116_v34 }
 0x387   : > { %v5123_v47 = vpop.permute.xlu1 %2270 }
 0x388   : > { %v5145_v17 = vadd.f32 %v2290_v31, %v2178_v16  ;;  %v3749_v16 = vld [vmem:[%s4115_s20 + $0x168] sm:$0xff] }
 0x389   : > { %v1868_v24 = vpop.permute.xlu0 %1867 }
 0x38a   : > { %v1921_v49 = vmul.f32 %v3728_v2, %v1868_v24  ;;  %v1926_v24 = vmul.f32 %v3739_v52, %v5086_v21  ;;  %v3743_v21 = vld [vmem:[%s4115_s20 + $0xd0] sm:$0xff] }
 0x38b   : > { %v5125_v6 = vpop.permute.xlu1 %2009 }
 0x38d   : > { %v1980_v59 = vpop.permute.xlu0 %1979 }
 0x38e   : > { %v2033_v60 = vmul.f32 %v3727_v54, %v1980_v59  ;;  %v3740_v59 = vld [vmem:[%s4115_s20 + $0x158] sm:$0xff] }
 0x38f   : > { %v5128_v44 = vpop.permute.xlu1 %2137  ;;  %v2166_v54 = vmul.f32 %v3740_v59, %v5096_v19  ;;  %v3744_v19 = vld [vmem:[%s4115_s20 + $0x50] sm:$0xff] }
 0x390   : > { %v2049_v35 = vadd.f32 %v2033_v60, %v1921_v49 }
 0x391   : > { %v2108_v26 = vpop.permute.xlu0 %2107 }
 0x392   : > { %v2161_v32 = vmul.f32 %v3729_v7, %v2108_v26  ;;  %v3741_v26 = vld [vmem:[%s4115_s20 + $0x1c0] sm:$0xff]  ;;  %v2054_v7 = vadd.f32 %v2038_v8, %v1926_v24  ;;  %v3754_v8 = vld [vmem:[%s4115_s20 + $0xf0] sm:$0xff] }
 0x393   : > { %v5133_v50 = vpop.permute.xlu1 %2265 }
 0x394   : > { %v2177_v13 = vadd.f32 %v2161_v32, %v2049_v35  ;;  %v3742_v32 = vld [vmem:[%s4115_s20 + $0x1d8] sm:$0xff]  ;;  %v2182_v35 = vadd.f32 %v2166_v54, %v2054_v7 }
 0x395   : > { %v2236_v25 = vpop.permute.xlu0 %2235  ;;  %v2294_v43 = vmul.f32 %v3742_v32, %v5101_v51  ;;  %v2040_v51 = vmul.f32 %v3746_v48, %v5119_v61  ;;  %v2039_v61 = vmul.f32 %v3750_v53, %v5125_v6  ;;  %v2167_v6 = vmul.f32 %v3753_v22, %v5128_v44 }
 0x396   : > { %v2289_v20 = vmul.f32 %v3733_v28, %v2236_v25  ;;  %v2037_v25 = vmul.f32 %v3743_v21, %v5104_v37 }
 0x397   : > { %v5142_v9 = vpop.permute.xlu1 %1912  ;;  %v5174_v28 = vadd.f32 %v2294_v43, %v2182_v35  ;;  %v3759_v35 = vld [vmem:[%s4115_s20 + $0x78] sm:$0xff] }
 0x398   : > { %v5140_v41 = vadd.f32 %v2289_v20, %v2177_v13  ;;  %v3747_v20 = vld [vmem:[%s4115_s20 + $0x1d0] sm:$0xff]  ;;  %v1930_v21 = vmul.f32 %v3759_v35, %v5142_v9 }
 0x399   : > { %v1878_v29 = vpop.permute.xlu0 %1877  ;;  %v2293_v37 = vmul.f32 %v3747_v20, %v5111_v36  ;;  %v2056_v36 = vadd.f32 %v2040_v51, %v1928_v5 }
 0x39a   : > { %2327 = vadd.xlane.f32.xlu1 %v5140_v41  ;;  %v1923_v1 = vmul.f32 %v3736_v45, %v1878_v29  ;;  %v3752_v45 = vld [vmem:[%s4115_s20 + $0x1e8] sm:$0xff] }
 0x39b   : > { %v5147_v18 = vpop.permute.xlu1 %2024  ;;  %v2296_v34 = vmul.f32 %v3752_v45, %v5123_v47 }
 0x39d   : > { %v1990_v10 = vpop.permute.xlu0 %1989 }
 0x39e   : > { %2329 = vadd.xlane.f32.xlu1 %v5145_v17  ;;  %v2035_v46 = vmul.f32 %v3735_v3, %v1990_v10  ;;  %v2168_v10 = vmul.f32 %v3749_v16, %v5121_v30  ;;  %v3751_v3 = vld [vmem:[%s4115_s20 + $0x60] sm:$0xff] }
 0x39f   : > { %v5151_v62 = vpop.permute.xlu1 %2152 }
 0x3a0   : > { %v2051_v11 = vadd.f32 %v2035_v46, %v1923_v1 }
 0x3a1   : > { %v2118_v38 = vpop.permute.xlu0 %2117 }
 0x3a2   : > { %v2163_v12 = vmul.f32 %v3737_v14, %v2118_v38 }
 0x3a3   : > { %v2020_v49 = vpop.permute.xlu1 %2019 }
 0x3a4   : > { %v2179_v60 = vadd.f32 %v2163_v12, %v2051_v11  ;;  %v2184_v12 = vadd.f32 %v2168_v10, %v2056_v36  ;;  %v2041_v11 = vmul.f32 %v3754_v8, %v2020_v49  ;;  %v3758_v49 = vld [vmem:[%s4115_s20 + $0xf8] sm:$0xff] }
 0x3a5   : > { %v2246_v15 = vpop.permute.xlu0 %2245  ;;  %v2042_v7 = vmul.f32 %v3758_v49, %v5147_v18 }
 0x3a6   : > { %v2291_v2 = vmul.f32 %v3741_v26, %v2246_v15  ;;  %v3755_v15 = vld [vmem:[%s4115_s20 + $0x70] sm:$0xff]  ;;  %v5195_v59 = vadd.f32 %v2296_v34, %v2184_v12 }
 0x3a7   : > { %v2148_v31 = vpop.permute.xlu1 %2147  ;;  %v2058_v63 = vadd.f32 %v2042_v7, %v1930_v21 }
 0x3a8   : > { %v5164_v33 = vadd.f32 %v2291_v2, %v2179_v60  ;;  %v3756_v60 = vld [vmem:[%s4115_s20 + $0x1e0] sm:$0xff]  ;;  %v3757_v2 = vld [vmem:[%s4115_s20 + $0x170] sm:$0xff] }
 0x3a9   : > { %v1888_v56 = vpop.permute.xlu0 %1887  ;;  %v2295_v26 = vmul.f32 %v3756_v60, %v5133_v50  ;;  %v2169_v44 = vmul.f32 %v3757_v2, %v2148_v31 }
 0x3aa   : > { %v1925_v27 = vmul.f32 %v3744_v19, %v1888_v56  ;;  %2331 = vadd.xlane.f32.xlu0 %v5164_v33 }
 0x3ab   : > { %v2276_v24 = vpop.permute.xlu1 %2275 }
 0x3ac   : > { %v2053_v13 = vadd.f32 %v2037_v25, %v1925_v27  ;;  %v3760_v25 = vld [vmem:[%s4115_s20 + $0x178] sm:$0xff]  ;;  %v3761_v27 = vld [vmem:[%s4115_s20 + $0x1f0] sm:$0xff] }
 0x3ad   : > { %v1898_v29 = vpop.permute.xlu0 %1897  ;;  %v2170_v19 = vmul.f32 %v3760_v25, %v5151_v62  ;;  %v2297_v50 = vmul.f32 %v3761_v27, %v2276_v24 }
 0x3ae   : > { %v1927_v46 = vmul.f32 %v3751_v3, %v1898_v29  ;;  %2337 = vadd.xlane.f32.xlu0 %v5174_v28  ;;  %v2181_v38 = vadd.f32 %v2165_v58, %v2053_v13  ;;  %v3762_v58 = vld [vmem:[%s4115_s20 + $0x1f8] sm:$0xff]  ;;  %s2692_s20 = scalar_lea.sflag [#allocation4], %s4103_s9 }
 0x3af   : > { %v2281_v56 = vpop.permute.xlu1 %2280  ;;  %v2186_v18 = vadd.f32 %v2170_v19, %v2058_v63 }
 0x3b0   : > { %v2055_v1 = vadd.f32 %v2039_v61, %v1927_v46  ;;  %v5188_v14 = vadd.f32 %v2293_v37, %v2181_v38  ;;  %v2298_v48 = vmul.f32 %v3762_v58, %v2281_v56 }
 0x3b1   : > { %v1908_v30 = vpop.permute.xlu0 %1907 }
 0x3b2   : > { %v1929_v52 = vmul.f32 %v3755_v15, %v1908_v30  ;;  %2335 = vadd.xlane.f32.xlu0 %v5188_v14  ;;  %v2183_v54 = vadd.f32 %v2167_v6, %v2055_v1  ;;  %v5215_v13 = vadd.f32 %v2298_v48, %v2186_v18 }
 0x3b4   : > { %v2057_v47 = vadd.f32 %v2041_v11, %v1929_v52  ;;  %v5203_v32 = vadd.f32 %v2295_v26, %v2183_v54 }
 0x3b6   : > { %2341 = vadd.xlane.f32.xlu0 %v5195_v59  ;;  %v2185_v43 = vadd.f32 %v2169_v44, %v2057_v47 }
 0x3b8   : > { %v5212_v51 = vadd.f32 %v2297_v50, %v2185_v43 }
 0x3ba   : > { %2339 = vadd.xlane.f32.xlu0 %v5203_v32 }
 0x3be   : > { %2343 = vadd.xlane.f32.xlu0 %v5212_v51 }
 0x3c2   : > { %2345 = vadd.xlane.f32.xlu0 %v5215_v13 }
 0x3de   : > { %v2316_v9 = vpop.xlane.xlu0 %2315 }
 0x3df   : > { %v2348_v20 = vmul.f32 0.0078125, %v2316_v9 }
 0x3e1   : > { %v5219_v62 = vsub.f32 %v5060_v40, %v2348_v20  ;;  %v2318_v37 = vpop.xlane.xlu1 %2317 }
 0x3e2   : > { %v2349_v5 = vmul.f32 0.0078125, %v2318_v37 }
 0x3e3   : > { %v2380_v4 = vmul.f32 %v5219_v62, %v5219_v62 }
 0x3e4   : > { %v5224_v31 = vsub.f32 %v5068_v57, %v2349_v5 }
 0x3e5   : > { %2396 = vadd.xlane.f32.xlu1 %v2380_v4  ;;  %v2322_v29 = vpop.xlane.xlu1 %2321 }
 0x3e6   : > { %v2351_v16 = vmul.f32 0.0078125, %v2322_v29  ;;  %v2381_v10 = vmul.f32 %v5224_v31, %v5224_v31 }
 0x3e8   : > { %v5229_v53 = vsub.f32 %v5073_v0, %v2351_v16  ;;  %2398 = vadd.xlane.f32.xlu0 %v2381_v10 }
 0x3ea   : > { %v2383_v40 = vmul.f32 %v5229_v53, %v5229_v53 }
 0x3ec   : > { %2402 = vadd.xlane.f32.xlu1 %v2383_v40 }
 0x3ed   : > { %v2334_v3 = vpop.xlane.xlu0 %2333 }
 0x3ee   : > { %v2357_v38 = vmul.f32 0.0078125, %v2334_v3  ;;  %v5301_v3 = vld [vmem:[%s5496_s4] ss:$0 sm:$0xff] }
 0x3ef   : > { %v2320_v61 = vpop.xlane.xlu1 %2319 }
 0x3f0   : > { %v2350_v46 = vmul.f32 0.0078125, %v2320_v61  ;;  %v5237_v36 = vsub.f32 %v5084_v39, %v2357_v38  ;;  %v5308_v38 = vld [vmem:[%s5497_s5] ss:$0 sm:$0xff] }
 0x3f2   : > { %v5234_v57 = vsub.f32 %v5082_v42, %v2350_v46  ;;  %v2389_v0 = vmul.f32 %v5237_v36, %v5237_v36 }
 0x3f4   : > { %v2382_v45 = vmul.f32 %v5234_v57, %v5234_v57  ;;  %2414 = vadd.xlane.f32.xlu0 %v2389_v0 }
 0x3f6   : > { %2400 = vadd.xlane.f32.xlu1 %v2382_v45 }
 0x3fb   : > { %v2326_v34 = vpop.xlane.xlu1 %2325 }
 0x3fc   : > { %v2353_v1 = vmul.f32 0.0078125, %v2326_v34 }
 0x3fe   : > { %v5244_v30 = vsub.f32 %v5099_v23, %v2353_v1 }
 0x400   : > { %v2385_v42 = vmul.f32 %v5244_v30, %v5244_v30 }
 0x402   : > { %2406 = vadd.xlane.f32.xlu1 %v2385_v42 }
 0x40b   : > { %v2324_v12 = vpop.xlane.xlu1 %2323 }
 0x40c   : > { %v2352_v39 = vmul.f32 0.0078125, %v2324_v12 }
 0x40e   : > { %v5249_v22 = vsub.f32 %v5114_v55, %v2352_v39 }
 0x410   : > { %v2384_v6 = vmul.f32 %v5249_v22, %v5249_v22 }
 0x412   : > { %2404 = vadd.xlane.f32.xlu1 %v2384_v6 }
 0x427   : > { %v2328_v8 = vpop.xlane.xlu1 %2327 }
 0x428   : > { %v2354_v15 = vmul.f32 0.0078125, %v2328_v8 }
 0x42a   : > { %v5257_v54 = vsub.f32 %v5140_v41, %v2354_v15 }
 0x42b   : > { %v2330_v24 = vpop.xlane.xlu1 %2329 }
 0x42c   : > { %v2355_v60 = vmul.f32 0.0078125, %v2330_v24 }
 0x42e   : > { %v5265_v49 = vsub.f32 %v5145_v17, %v2355_v60 }
 0x430   : > { %v2387_v35 = vmul.f32 %v5265_v49, %v5265_v49 }
 0x437   : > { %v2332_v11 = vpop.xlane.xlu0 %2331 }
 0x438   : > { %v2356_v52 = vmul.f32 0.0078125, %v2332_v11 }
 0x43a   : > { %v5254_v23 = vsub.f32 %v5164_v33, %v2356_v52  ;;  %v2386_v33 = vmul.f32 %v5257_v54, %v5257_v54 }
 0x43b   : > { %v2338_v47 = vpop.xlane.xlu0 %2337 }
 0x43c   : > { %v2359_v26 = vmul.f32 0.0078125, %v2338_v47  ;;  %v2388_v55 = vmul.f32 %v5254_v23, %v5254_v23 }
 0x43e   : > { %v5262_v2 = vsub.f32 %v5174_v28, %v2359_v26  ;;  %2412 = vadd.xlane.f32.xlu1 %v2388_v55 }
 0x43f   : > { %v2336_v44 = vpop.xlane.xlu0 %2335 }
 0x440   : > { %v2358_v7 = vmul.f32 0.0078125, %v2336_v44  ;;  %v2391_v41 = vmul.f32 %v5262_v2, %v5262_v2 }
 0x442   : > { %v5272_v43 = vsub.f32 %v5188_v14, %v2358_v7  ;;  %2408 = vadd.xlane.f32.xlu1 %v2386_v33  ;;  %2418 = vadd.xlane.f32.xlu0 %v2391_v41 }
 0x443   : > { %v2342_v56 = vpop.xlane.xlu0 %2341 }
 0x444   : > { %v2361_v28 = vmul.f32 0.0078125, %v2342_v56  ;;  %v2390_v17 = vmul.f32 %v5272_v43, %v5272_v43 }
 0x446   : > { %v5279_v21 = vsub.f32 %v5195_v59, %v2361_v28  ;;  %2410 = vadd.xlane.f32.xlu1 %v2387_v35  ;;  %2416 = vadd.xlane.f32.xlu0 %v2390_v17 }
 0x447   : > { %v2340_v25 = vpop.xlane.xlu0 %2339 }
 0x448   : > { %v2360_v19 = vmul.f32 0.0078125, %v2340_v25  ;;  %v2393_v14 = vmul.f32 %v5279_v21, %v5279_v21 }
 0x44a   : > { %v5284_v27 = vsub.f32 %v5203_v32, %v2360_v19  ;;  %2422 = vadd.xlane.f32.xlu0 %v2393_v14 }
 0x44b   : > { %v2344_v50 = vpop.xlane.xlu0 %2343 }
 0x44c   : > { %v2362_v63 = vmul.f32 0.0078125, %v2344_v50  ;;  %v2392_v58 = vmul.f32 %v5284_v27, %v5284_v27 }
 0x44e   : > { %v5289_v48 = vsub.f32 %v5212_v51, %v2362_v63  ;;  %2420 = vadd.xlane.f32.xlu0 %v2392_v58 }
 0x44f   : > { %v2346_v59 = vpop.xlane.xlu0 %2345 }
 0x450   : > { %v2363_v18 = vmul.f32 0.0078125, %v2346_v59  ;;  %v2394_v9 = vmul.f32 %v5289_v48, %v5289_v48 }
 0x452   : > { %v5294_v20 = vsub.f32 %v5215_v13, %v2363_v18  ;;  %2424 = vadd.xlane.f32.xlu0 %v2394_v9 }
 0x454   : > { %v2395_v32 = vmul.f32 %v5294_v20, %v5294_v20 }
 0x456   : > { %2426 = vadd.xlane.f32.xlu0 %v2395_v32 }
 0x472   : > { %v2397_v37 = vpop.xlane.xlu1 %2396 }
 0x473   : > { %v2428_v4 = vmul.f32 0.0078125, %v2397_v37 }
 0x475   : > { %v2445_v5 = vadd.f32 1e-12, %v2428_v4  ;;  %v2399_v51 = vpop.xlane.xlu0 %2398 }
 0x476   : > { %v2429_v29 = vmul.f32 0.0078125, %v2399_v51 }
 0x477   : > { %3667 = vrsqrt.f32 %v2445_v5 }
 0x478   : > { %v2446_v16 = vadd.f32 1e-12, %v2429_v29 }
 0x479   : > { %v2403_v10 = vpop.xlane.xlu1 %2402 }
 0x47a   : > { %3669 = vrsqrt.f32 %v2446_v16  ;;  %v2431_v40 = vmul.f32 0.0078125, %v2403_v10 }
 0x47c   : > { %v2448_v61 = vadd.f32 1e-12, %v2431_v40 }
 0x47e   : > { %3671 = vrsqrt.f32 %v2448_v61 }
 0x481   : > { %v3668_v13 = vpop.eup %3667  ;;  %v2415_v0 = vpop.xlane.xlu0 %2414 }
 0x482   : > { %v2477_v46 = vmul.f32 %v3668_v13, %v5219_v62  ;;  %v2437_v42 = vmul.f32 0.0078125, %v2415_v0 }
 0x483   : > { %v2401_v45 = vpop.xlane.xlu1 %2400 }
 0x484   : > { %v2499_v34 = vmul.f32 %v5301_v3, %v2477_v46  ;;  %v2430_v1 = vmul.f32 0.0078125, %v2401_v45  ;;  %v3670_v12 = vpop.eup %3669  ;;  %v2454_v8 = vadd.f32 1e-12, %v2437_v42 }
 0x485   : > { %v2478_v11 = vmul.f32 %v3670_v12, %v5224_v31 }
 0x486   : > { %v2522_v39 = vadd.f32 %v5308_v38, %v2499_v34  ;;  %v2447_v6 = vadd.f32 1e-12, %v2430_v1 }
 0x487   : > { %v2500_v15 = vmul.f32 %v5301_v3, %v2478_v11 }
 0x488   : > { %2538 = vst [vmem:[%s5313_s18] sm:$0xff] %v2522_v39  ;;  %v2554_v62 = vrot.slane %v2522_v39, 4  ;;  %3673 = vrsqrt.f32 %v2447_v6  ;;  %v3672_v52 = vpop.eup %3671 }
 0x489   : > { %3675 = vrsqrt.f32 %v2454_v8  ;;  %v2523_v47 = vadd.f32 %v5308_v38, %v2500_v15  ;;  %v2480_v60 = vmul.f32 %v3672_v52, %v5229_v53 }
 0x48a   : > { %v2555_v24 = vmax.f32 %v2522_v39, %v2554_v62 }
 0x48b   : > { %2539 = vst [vmem:[%s5313_s18 + $0x8] sm:$0xff] %v2523_v47  ;;  %v2560_v31 = vrot.slane %v2523_v47, 4  ;;  %v2502_v55 = vmul.f32 %v5301_v3, %v2480_v60 }
 0x48c   : > { %v2556_v26 = vrot.slane %v2555_v24, 2 }
 0x48d   : > { %v2561_v7 = vmax.f32 %v2523_v47, %v2560_v31  ;;  %v2525_v33 = vadd.f32 %v5308_v38, %v2502_v55 }
 0x48e   : > { %v2557_v44 = vmax.f32 %v2555_v24, %v2556_v26 }
 0x48f   : > { %v2407_v41 = vpop.xlane.xlu1 %2406  ;;  %v2562_v28 = vrot.slane %v2561_v7, 2  ;;  %2541 = vst [vmem:[%s5313_s18 + $0x18] sm:$0xff] %v2525_v33  ;;  %v2572_v35 = vrot.slane %v2525_v33, 4 }
 0x490   : > { %v2433_v56 = vmul.f32 0.0078125, %v2407_v41  ;;  %v2558_v14 = vrot.slane %v2557_v44, 1 }
 0x491   : > { %v2563_v53 = vmax.f32 %v2561_v7, %v2562_v28  ;;  %v2573_v63 = vmax.f32 %v2525_v33, %v2572_v35 }
 0x492   : > { %v3674_v17 = vpop.eup %3673  ;;  %v2450_v25 = vadd.f32 1e-12, %v2433_v56  ;;  %v2559_v32 = vmax.f32 %v2557_v44, %v2558_v14 }
 0x493   : > { %v3676_v19 = vpop.eup %3675  ;;  %v2479_v50 = vmul.f32 %v3674_v17, %v5234_v57  ;;  %v2564_v59 = vrot.slane %v2563_v53, 1  ;;  %v2574_v5 = vrot.slane %v2573_v63, 2 }
 0x494   : > { %v2486_v58 = vmul.f32 %v3676_v19, %v5237_v36  ;;  %3677 = vrsqrt.f32 %v2450_v25 }
 0x495   : > { %v2501_v18 = vmul.f32 %v5301_v3, %v2479_v50  ;;  %v2565_v37 = vmax.f32 %v2563_v53, %v2564_v59  ;;  %v2575_v16 = vmax.f32 %v2573_v63, %v2574_v5 }
 0x496   : > { %v2508_v9 = vmul.f32 %v5301_v3, %v2486_v58 }
 0x497   : > { %v2524_v4 = vadd.f32 %v5308_v38, %v2501_v18  ;;  %v2667_v29 = vsel %vm2666_vm0, %v2565_v37, %v2559_v32  ;;  %v2576_v45 = vrot.slane %v2575_v16, 1 }
 0x498   : > { %v5329_v51 = vadd.f32 %v5308_v38, %v2508_v9 }
 0x499   : > { %2540 = vst [vmem:[%s5313_s18 + $0x10] sm:$0xff] %v2524_v4  ;;  %v2566_v57 = vrot.slane %v2524_v4, 4  ;;  %v2577_v6 = vmax.f32 %v2575_v16, %v2576_v45 }
 0x49a   : > { %2547 = vst [vmem:[%s5313_s18 + $0x48] sm:$0xff] %v5329_v51 }
 0x49b   : > { %v2567_v36 = vmax.f32 %v2524_v4, %v2566_v57 }
 0x49d   : > { %v2568_v10 = vrot.slane %v2567_v36, 2 }
 0x49e   : > { %v3678_v40 = vpop.eup %3677 }
 0x49f   : > { %v2569_v61 = vmax.f32 %v2567_v36, %v2568_v10  ;;  %v2482_v13 = vmul.f32 %v3678_v40, %v5244_v30  ;;  %v2405_v46 = vpop.xlane.xlu1 %2404 }
 0x4a0   : > { %v2432_v0 = vmul.f32 0.0078125, %v2405_v46 }
 0x4a1   : > { %v2570_v34 = vrot.slane %v2569_v61, 1  ;;  %v2504_v1 = vmul.f32 %v5301_v3, %v2482_v13 }
 0x4a2   : > { %v2449_v42 = vadd.f32 1e-12, %v2432_v0 }
 0x4a3   : > { %v2571_v12 = vmax.f32 %v2569_v61, %v2570_v34  ;;  %v2527_v39 = vadd.f32 %v5308_v38, %v2504_v1 }
 0x4a4   : > { %3679 = vrsqrt.f32 %v2449_v42 }
 0x4a5   : > { %2543 = vst [vmem:[%s5313_s18 + $0x28] sm:$0xff] %v2527_v39  ;;  %v2669_v8 = vsel %vm2668_vm1, %v2571_v12, %v2667_v29  ;;  %v2584_v11 = vrot.slane %v2527_v39, 4 }
 0x4a6   : > { %v2671_v30 = vsel %vm2670_vm2, %v2577_v6, %v2669_v8  ;;  %v2608_v8 = vrot.slane %v5329_v51, 4 }
 0x4a7   : > { %v2585_v52 = vmax.f32 %v2527_v39, %v2584_v11 }
 0x4a9   : > { %v2586_v60 = vrot.slane %v2585_v52, 2 }
 0x4ab   : > { %v2587_v55 = vmax.f32 %v2585_v52, %v2586_v60 }
 0x4ad   : > { %v2588_v33 = vrot.slane %v2587_v55, 1 }
 0x4ae   : > { %v3680_v62 = vpop.eup %3679 }
 0x4af   : > { %v2481_v15 = vmul.f32 %v3680_v62, %v5249_v22  ;;  %v2589_v28 = vmax.f32 %v2587_v55, %v2588_v33 }
 0x4b1   : > { %v2503_v24 = vmul.f32 %v5301_v3, %v2481_v15 }
 0x4b3   : > { %v2526_v47 = vadd.f32 %v5308_v38, %v2503_v24 }
 0x4b5   : > { %2542 = vst [vmem:[%s5313_s18 + $0x20] sm:$0xff] %v2526_v47  ;;  %v2578_v26 = vrot.slane %v2526_v47, 4 }
 0x4b7   : > { %v2579_v31 = vmax.f32 %v2526_v47, %v2578_v26 }
 0x4b9   : > { %v2580_v44 = vrot.slane %v2579_v31, 2 }
 0x4bb   : > { %v2581_v7 = vmax.f32 %v2579_v31, %v2580_v44  ;;  %v2609_v44 = vmax.f32 %v5329_v51, %v2608_v8 }
 0x4bd   : > { %v2582_v41 = vrot.slane %v2581_v7, 1 }
 0x4bf   : > { %v2583_v56 = vmax.f32 %v2581_v7, %v2582_v41 }
 0x4c1   : > { %v2673_v22 = vsel %vm2672_vm3, %v2583_v56, %v2671_v30 }
 0x4c2   : > { %v5347_v35 = vsel %vm2674_vm4, %v2589_v28, %v2673_v22 }
 0x4cb   : > { %v2413_v17 = vpop.xlane.xlu1 %2412 }
 0x4cc   : > { %v2436_v25 = vmul.f32 0.0078125, %v2413_v17 }
 0x4ce   : > { %v2453_v19 = vadd.f32 1e-12, %v2436_v25 }
 0x4cf   : > { %v2409_v14 = vpop.xlane.xlu1 %2408  ;;  %v2419_v53 = vpop.xlane.xlu0 %2418 }
 0x4d0   : > { %3681 = vrsqrt.f32 %v2453_v19  ;;  %v2434_v50 = vmul.f32 0.0078125, %v2409_v14  ;;  %v2439_v63 = vmul.f32 0.0078125, %v2419_v53  ;;  %v2610_v14 = vrot.slane %v2609_v44, 2 }
 0x4d2   : > { %v2451_v58 = vadd.f32 1e-12, %v2434_v50  ;;  %v2456_v59 = vadd.f32 1e-12, %v2439_v63 }
 0x4d3   : > { %v2411_v18 = vpop.xlane.xlu1 %2410  ;;  %v2417_v9 = vpop.xlane.xlu0 %2416 }
 0x4d4   : > { %3683 = vrsqrt.f32 %v2451_v58  ;;  %v2435_v32 = vmul.f32 0.0078125, %v2411_v18  ;;  %v2438_v37 = vmul.f32 0.0078125, %v2417_v9 }
 0x4d5   : > { %3685 = vrsqrt.f32 %v2456_v59 }
 0x4d6   : > { %v2452_v4 = vadd.f32 1e-12, %v2435_v32  ;;  %v2455_v5 = vadd.f32 1e-12, %v2438_v37 }
 0x4d7   : > { %v2423_v57 = vpop.xlane.xlu0 %2422 }
 0x4d8   : > { %3687 = vrsqrt.f32 %v2452_v4  ;;  %v2441_v29 = vmul.f32 0.0078125, %v2423_v57  ;;  %v2611_v57 = vmax.f32 %v2609_v44, %v2610_v14 }
 0x4d9   : > { %3689 = vrsqrt.f32 %v2455_v5 }
 0x4da   : > { %v3682_v36 = vpop.eup %3681  ;;  %v2458_v16 = vadd.f32 1e-12, %v2441_v29 }
 0x4db   : > { %v2485_v10 = vmul.f32 %v3682_v36, %v5254_v23  ;;  %v2421_v40 = vpop.xlane.xlu0 %2420 }
 0x4dc   : > { %3691 = vrsqrt.f32 %v2458_v16  ;;  %v2440_v61 = vmul.f32 0.0078125, %v2421_v40 }
 0x4dd   : > { %v2507_v13 = vmul.f32 %v5301_v3, %v2485_v10 }
 0x4de   : > { %v3684_v46 = vpop.eup %3683  ;;  %v2457_v45 = vadd.f32 1e-12, %v2440_v61 }
 0x4df   : > { %v3686_v0 = vpop.eup %3685  ;;  %v2530_v34 = vadd.f32 %v5308_v38, %v2507_v13  ;;  %v2483_v1 = vmul.f32 %v3684_v46, %v5257_v54  ;;  %v2425_v42 = vpop.xlane.xlu0 %2424 }
 0x4e0   : > { %v2488_v12 = vmul.f32 %v3686_v0, %v5262_v2  ;;  %3693 = vrsqrt.f32 %v2457_v45  ;;  %v2442_v39 = vmul.f32 0.0078125, %v2425_v42 }
 0x4e1   : > { %2546 = vst [vmem:[%s5313_s18 + $0x40] sm:$0xff] %v2530_v34  ;;  %v2505_v23 = vmul.f32 %v5301_v3, %v2483_v1  ;;  %v2602_v15 = vrot.slane %v2530_v34, 4 }
 0x4e2   : > { %v3688_v6 = vpop.eup %3687  ;;  %v2510_v30 = vmul.f32 %v5301_v3, %v2488_v12  ;;  %v2459_v11 = vadd.f32 1e-12, %v2442_v39  ;;  %v2612_v12 = vrot.slane %v2611_v57, 1 }
 0x4e3   : > { %v3690_v62 = vpop.eup %3689  ;;  %v2528_v54 = vadd.f32 %v5308_v38, %v2505_v23  ;;  %v2484_v52 = vmul.f32 %v3688_v6, %v5265_v49  ;;  %v2427_v2 = vpop.xlane.xlu0 %2426  ;;  %v2603_v33 = vmax.f32 %v2530_v34, %v2602_v15 }
 0x4e4   : > { %v2533_v24 = vadd.f32 %v5308_v38, %v2510_v30  ;;  %v2487_v47 = vmul.f32 %v3690_v62, %v5272_v43  ;;  %3695 = vrsqrt.f32 %v2459_v11  ;;  %v2443_v60 = vmul.f32 0.0078125, %v2427_v2 }
 0x4e5   : > { %2544 = vst [vmem:[%s5313_s18 + $0x30] sm:$0xff] %v2528_v54  ;;  %v2590_v26 = vrot.slane %v2528_v54, 4  ;;  %v2506_v31 = vmul.f32 %v5301_v3, %v2484_v52  ;;  %v2604_v50 = vrot.slane %v2603_v33, 2 }
 0x4e6   : > { %v3692_v55 = vpop.eup %3691  ;;  %2549 = vst [vmem:[%s5313_s18 + $0x58] sm:$0xff] %v2533_v24  ;;  %v2509_v7 = vmul.f32 %v5301_v3, %v2487_v47  ;;  %v2460_v49 = vadd.f32 1e-12, %v2443_v60  ;;  %v2620_v28 = vrot.slane %v2533_v24, 4 }
 0x4e7   : > { %v2591_v41 = vmax.f32 %v2528_v54, %v2590_v26  ;;  %v2529_v56 = vadd.f32 %v5308_v38, %v2506_v31  ;;  %v2490_v43 = vmul.f32 %v3692_v55, %v5279_v21  ;;  %v2605_v16 = vmax.f32 %v2603_v33, %v2604_v50 }
 0x4e8   : > { %v2532_v22 = vadd.f32 %v5308_v38, %v2509_v7  ;;  %3697 = vrsqrt.f32 %v2460_v49  ;;  %v2621_v59 = vmax.f32 %v2533_v24, %v2620_v28 }
 0x4e9   : > { %v2592_v17 = vrot.slane %v2591_v41, 2  ;;  %2545 = vst [vmem:[%s5313_s18 + $0x38] sm:$0xff] %v2529_v56  ;;  %v2596_v25 = vrot.slane %v2529_v56, 4  ;;  %v2512_v51 = vmul.f32 %v5301_v3, %v2490_v43  ;;  %v2606_v39 = vrot.slane %v2605_v16, 1 }
 0x4ea   : > { %v3694_v19 = vpop.eup %3693  ;;  %2548 = vst [vmem:[%s5313_s18 + $0x50] sm:$0xff] %v2532_v22  ;;  %v2614_v53 = vrot.slane %v2532_v22, 4  ;;  %v2622_v61 = vrot.slane %v2621_v59, 2 }
 0x4eb   : > { %v2597_v63 = vmax.f32 %v2529_v56, %v2596_v25  ;;  %v2535_v58 = vadd.f32 %v5308_v38, %v2512_v51  ;;  %v2489_v21 = vmul.f32 %v3694_v19, %v5284_v27  ;;  %v2593_v9 = vmax.f32 %v2591_v41, %v2592_v17 }
 0x4ec   : > { %v2615_v18 = vmax.f32 %v2532_v22, %v2614_v53  ;;  %v2623_v8 = vmax.f32 %v2621_v59, %v2622_v61  ;;  %v2607_v24 = vmax.f32 %v2605_v16, %v2606_v39 }
 0x4ed   : > { %2551 = vst [vmem:[%s5313_s18 + $0x68] sm:$0xff] %v2535_v58  ;;  %v2632_v32 = vrot.slane %v2535_v58, 4  ;;  %v2511_v37 = vmul.f32 %v5301_v3, %v2489_v21  ;;  %v2598_v4 = vrot.slane %v2597_v63, 2  ;;  %v2594_v36 = vrot.slane %v2593_v9, 1 }
 0x4ee   : > { %v3696_v5 = vpop.eup %3695  ;;  %v2616_v29 = vrot.slane %v2615_v18, 2  ;;  %v2624_v26 = vrot.slane %v2623_v8, 1 }
 0x4ef   : > { %v2534_v10 = vadd.f32 %v5308_v38, %v2511_v37  ;;  %v2491_v40 = vmul.f32 %v3696_v5, %v5289_v48  ;;  %v2599_v27 = vmax.f32 %v2597_v63, %v2598_v4  ;;  %v2633_v46 = vmax.f32 %v2535_v58, %v2632_v32 }
 0x4f0   : > { %v2617_v13 = vmax.f32 %v2615_v18, %v2616_v29  ;;  %v2595_v34 = vmax.f32 %v2593_v9, %v2594_v36 }
 0x4f1   : > { %2550 = vst [vmem:[%s5313_s18 + $0x60] sm:$0xff] %v2534_v10  ;;  %v2626_v45 = vrot.slane %v2534_v10, 4  ;;  %v2513_v0 = vmul.f32 %v5301_v3, %v2491_v40  ;;  %v2600_v1 = vrot.slane %v2599_v27, 1  ;;  %v2634_v11 = vrot.slane %v2633_v46, 2 }
 0x4f2   : > { %v3698_v42 = vpop.eup %3697  ;;  %v2618_v30 = vrot.slane %v2617_v13, 1  ;;  %v2677_v2 = vsel %vm2676_vm5, %v2595_v34, %v5347_v35  ;;  %v2613_v35 = vmax.f32 %v2611_v57, %v2612_v12 }
 0x4f3   : > { %v2627_v48 = vmax.f32 %v2534_v10, %v2626_v45  ;;  %v2536_v23 = vadd.f32 %v5308_v38, %v2513_v0  ;;  %v2492_v6 = vmul.f32 %v3698_v42, %v5294_v20  ;;  %v2601_v62 = vmax.f32 %v2599_v27, %v2600_v1 }
 0x4f4   : > { %v2619_v31 = vmax.f32 %v2617_v13, %v2618_v30  ;;  %v2635_v55 = vmax.f32 %v2633_v46, %v2634_v11 }
 0x4f5   : > { %v2628_v15 = vrot.slane %v2627_v48, 2  ;;  %2552 = vst [vmem:[%s5313_s18 + $0x70] sm:$0xff] %v2536_v23  ;;  %v2638_v54 = vrot.slane %v2536_v23, 4  ;;  %v2514_v52 = vmul.f32 %v5301_v3, %v2492_v6  ;;  %v2679_v20 = vsel %vm2678_vm6, %v2601_v62, %v2677_v2 }
 0x4f6   : > { %2689 = vst [vmem:[%s5399_s13] sm:$0xff] %v2679_v20 }
 0x4f7   : > { %v2629_v47 = vmax.f32 %v2627_v48, %v2628_v15  ;;  %v2639_v3 = vmax.f32 %v2536_v23, %v2638_v54  ;;  %v2537_v60 = vadd.f32 %v5308_v38, %v2514_v52 }
 0x4f9   : > { %v2630_v44 = vrot.slane %v2629_v47, 1  ;;  %v2640_v7 = vrot.slane %v2639_v3, 2  ;;  %2553 = vst [vmem:[%s5313_s18 + $0x78] sm:$0xff] %v2537_v60  ;;  %v2644_v49 = vrot.slane %v2537_v60, 4 }
 0x4fa   : > { %3776 = shalt.err (!%p3773_p5)
}
 0x4fb   : > { %s3777_s18 = scalar_lea.hbm %s5393_s8, 2048  ;;  %s3781_s23 = scalar_lea.hbm %s5498_s6, 4096 }
 0x4fc   : > { %p3778_p7 = scmp.ne.s32.totalorder %s5393_s8, %s3777_s18  ;;  %p3782_p12 = scmp.lt.u32.totalorder %s5393_s8, %s5498_s6 }
 0x4fd   : > { %p3783_p13 = scmp.lt.u32.totalorder %s3781_s23, %s3777_s18  ;;  %p3785_p1 = scmp.lt.u32.totalorder %s3777_s18, %s5393_s8 }
 0x4fe   : > { %p3779_p10 = pnand %p3778_p7, %p3943_p6 }
 0x4ff   : > { %p3784_p0 = por %p3783_p13, %p3782_p12 }
 0x500   : > { %p3780_p11 = pneg %p3779_p10 }
 0x501   : > { %p3786_p2 = por %p3785_p1, %p3784_p0 }
 0x503   : > { %p3787_p3 = pnand %p3786_p2, %p3780_p11 }
 0x505   : > { %3790 = shalt.err (!%p3787_p3)
}
 0x506   : > { %s3861_s14 = smov 128   ;;  %s3862_s16 = smov 8   ;;  %v2645_v38 = vmax.f32 %v2537_v60, %v2644_v49  ;;  %v2641_v33 = vmax.f32 %v2639_v3, %v2640_v7  ;;  %v2680_v41 = vsel %vm2666_vm0, %v2613_v35, %v2607_v24  ;;  %v2631_v56 = vmax.f32 %v2629_v47, %v2630_v44 }
 0x507   : > { %3330 = dma.vmem_to_hbm [thread:$0]  (%p3943_p6), %s5395_s22, 2048, %s5393_s8, %s2692_s20, %s3861_s14, %s3861_s14, %s3862_s16   ;;  %v2681_v43 = vsel %vm2668_vm1, %v2619_v31, %v2680_v41  ;;  %v2625_v28 = vmax.f32 %v2623_v8, %v2624_v26  ;;  %v2636_v22 = vrot.slane %v2635_v55, 1 }
 0x508   : > { %v2642_v17 = vrot.slane %v2641_v33, 1  ;;  %v2646_v25 = vrot.slane %v2645_v38, 2  ;;  %s2849_s22 = sshll.u32 %s3925_s28, 8  ;;  %s2726_s8 = sshll.u32 %s5399_s13, 4  ;;  %s5443_s8 = int_to_ptr.vmem [resolvable:$true] %s2726_s8 }
 0x509   : > { %v2682_v19 = vsel %vm2670_vm2, %v2625_v28, %v2681_v43  ;;  %v2637_v50 = vmax.f32 %v2635_v55, %v2636_v22  ;;  %s5441_s18 = scalar_lea.hbm %s5499_s7, %s2849_s22  ;;  %s2697_s28 = scalar_lea.sflag [#allocation6], %s4103_s9 }
 0x50a   : > { %v2647_v51 = vmax.f32 %v2645_v38, %v2646_v25  ;;  %v2643_v14 = vmax.f32 %v2641_v33, %v2642_v17  ;;  %v2683_v53 = vsel %vm2672_vm3, %v2631_v56, %v2682_v19  ;;  %s3791_s19 = scalar_lea.vmem %s5443_s8, 256  ;;  %s3863_s21 = smov [#allocation5]  }
 0x50b   : > { %v2684_v21 = vsel %vm2674_vm4, %v2637_v50, %v2683_v53  ;;  %p3792_p4 = scmp.ne.s32.totalorder %s5443_s8, %s3791_s19  ;;  %s3795_s23 = sshll.u32 %s3863_s21, 4  ;;  %s3796_s23 = int_to_ptr.vmem [resolvable:$false] %s3795_s23 }
 0x50c   : > { %v2648_v63 = vrot.slane %v2647_v51, 1  ;;  %v2685_v59 = vsel %vm2676_vm5, %v2643_v14, %v2684_v21  ;;  %s3797_s29 = scalar_lea.vmem %s3796_s23, 512  ;;  %p3798_p10 = scmp.lt.s32.totalorder %s5443_s8, %s3796_s23 }
 0x50d   : > { %p3793_p5 = pnand %p3792_p4, %p3943_p6  ;;  %p3799_p11 = scmp.lt.s32.totalorder %s3797_s29, %s3791_s19 }
 0x50e   : > { %v2649_v58 = vmax.f32 %v2647_v51, %v2648_v63 }
 0x50f   : > { %p3794_p7 = pneg %p3793_p5  ;;  %p3800_p12 = por %p3799_p11, %p3798_p10 }
 0x510   : > { %v2686_v18 = vsel %vm2678_vm6, %v2649_v58, %v2685_v59 }
 0x511   : > { %2690 = vst [vmem:[%s5399_s13 + $0x8] sm:$0xff] %v2686_v18  ;;  %p3801_p13 = pnand %p3800_p12, %p3794_p7 }
 0x513   : > { %3804 = shalt.err (!%p3801_p13)
}
 0x514   : > { %s3805_s13 = scalar_lea.hbm %s5441_s18, 256  ;;  %s3809_s20 = scalar_lea.hbm %s5499_s7, 512 }
 0x515   : > { %p3806_p0 = scmp.ne.s32.totalorder %s5441_s18, %s3805_s13  ;;  %p3810_p3 = scmp.lt.u32.totalorder %s5441_s18, %s5499_s7 }
 0x516   : > { %p3811_p4 = scmp.lt.u32.totalorder %s3809_s20, %s3805_s13  ;;  %p3813_p7 = scmp.lt.u32.totalorder %s3805_s13, %s5441_s18 }
 0x517   : > { %p3807_p1 = pnand %p3806_p0, %p3943_p6 }
 0x518   : > { %p3812_p5 = por %p3811_p4, %p3810_p3 }
 0x519   : > { %p3808_p2 = pneg %p3807_p1 }
 0x51a   : > { %p3814_p10 = por %p3813_p7, %p3812_p5 }
 0x51c   : > { %p3815_p11 = pnand %p3814_p10, %p3808_p2 }
 0x51e   : > { %3818 = shalt.err (!%p3815_p11)
}
 0x51f   : > { %3331 = dma.vmem_to_hbm [thread:$0]  (%p3943_p6), %s5443_s8, 256, %s5441_s18, %s2697_s28, %s3861_s14, %s3861_s14, %s3862_s16  }
 0x520 PF: > { %s2741_s19 = sand.u32 1, %s3845_s24   ;;  %p3335_p12 = pnand %p2828_p9, %p3947_p8 }
 0x521   : > { %s2742_s23 = scalar_lea.sflag [#allocation4], %s2741_s19 }
 0x522   : > { %3836 = dma.done.wait (!%p3335_p12), %s2742_s23, 2048  }
 0x523   : > { %3838 = vsyncadd (!%p3335_p12), %s2742_s23, 4294965248  ;;  %s2751_s11 = scalar_lea.sflag [#allocation6], %s2741_s19 }
 0x524   : > { %3840 = dma.done.wait (!%p3335_p12), %s2751_s11, 256  }
 0x525   : > { %3842 = vsyncadd (!%p3335_p12), %s2751_s11, 4294967040  ;;  %p21_p6 = scmp.ge.s32.totalorder %s3929_s30, 4   ;;  %s5588_s24 = smov %s3849_s25 }
 0x526   : > { %s5589_s25 = smov %s3853_s26  ;;  %s5590_s26 = smov %s3941_s10 }
 0x527   : > { %s5591_s27 = smov %s3929_s30  ;;  %23 = sbr.rel (!%p21_p6) target bundleno = 5 (0x5), region = 139 }
 0x52e   :  { %2756 = vsyncpa [#allocation4], 1 }
 0x52f   :  { %2758 = vsyncpa [#allocation4 + $0x1], 1 }
 0x530   :  { %2759 = vsyncpa [#allocation6], 1 }
 0x531   :  { %2761 = vsyncpa [#allocation6 + $0x1], 1 }

</bundles_post_ra>
